<compile_context>
chip_gen: v7x
topology: tpu7x:2x2x1
jax: 0.10.0
libtpu: 0.0.40
codegen_flags: <defaults>
</compile_context>

<pallas_src>
import numpy as np
import jax
import jax.numpy as jnp
from jax import lax
from jax.experimental import pallas as pl
from jax.experimental.pallas import tpu as pltpu


# ----------------------------------------------------------------- model dimensions
B = 2                   # batch
H0 = W0 = 8             # input spatial (trunk must end at 1x1)
C0 = 1                  # input channels
C1, C2, C3 = 32, 63, 95
C2P, C3P = 64, 128      # lane-padded channel counts (structural zeros)
KSIZE, PAD = 11, 5
NCLASS, HID = 10, 256

H1 = H0                 # conv1 output spatial ("same")           -> 8
P1 = H1 // 2            # after MaxPool3d([1,2,2])                -> 4
H2 = P1                 # conv2 output spatial                    -> 4
P2 = H2 // 2            # after MaxPool3d([1,2,2])                -> 2
H3 = P2                 # conv3 output spatial                    -> 2

HP1 = H0 + 2 * PAD      # 18   row-padded conv1 input height
IN1 = W0 * C0           # 8    conv1 input lanes per row (x, c)
LANES = 128             # pooled-activation lane width, every layer
NOUT = 256              # conv output lane width, every layer
EPS = 1e-5


# ----------------------------------------------------------------------------- basis
def _hermite_e(x, n):
    """Probabilists' Hermite polynomial He_n evaluated at x (recurrence)."""
    h0 = np.ones_like(x)
    if n == 0:
        return h0
    h1 = x.copy()
    for k in range(1, n):
        h0, h1 = h1, x * h1 - k * h0
    return h1


def steerable_basis_a(size=11, scale=1.0, effective_size=7):
    """steerable_A for a single scale + normalize_basis_by_min_scale -> [F, K, K] (numpy)."""
    max_order = effective_size - 1
    xs = np.linspace(-(size // 2), size // 2, size)
    g = np.exp(-xs ** 2 / (2.0 * scale ** 2)) / scale
    order_y, order_x = np.indices([max_order + 1, max_order + 1])
    bx = np.stack([g * _hermite_e(xs / scale, int(n)) for n in order_x.ravel()])
    by = np.stack([g * _hermite_e(xs / scale, int(n)) for n in order_y.ravel()])
    basis = bx[:, :, None] * by[:, None, :]
    norm = np.sqrt((basis ** 2).sum(axis=(1, 2), keepdims=True))
    return (basis / norm).astype(np.float32)


# -------------------------------------------------------- host-side weight packing
def _folded_toeplitz(kern, width, pad, cin_pad, cout_pad):
    """ky-folded Toeplitz slab [KSIZE*width*cin_pad, width*cout_pad] (bf16).

    kern: [Cout, Cin, K, K] (PyTorch cross-correlation kernel).  Rows are ordered
    (ky, x, ci) to match the in-kernel im2col; columns are ordered (ox%2, ox//2, co) so a
    following 2x2 horizontal max-pool is a max of the two 128-lane halves.  Horizontal zero
    padding and channel padding are realised by structural zeros.
    """
    kern = np.asarray(kern, np.float32)
    cout, cin, k, _ = kern.shape
    half = (width // 2) * cout_pad
    t = np.zeros((k, width * cin_pad, width * cout_pad), np.float32)
    for ky in range(k):
        for ox in range(width):
            col = (ox % 2) * half + (ox // 2) * cout_pad
            for x in range(width):
                kx = x - ox + pad
                if 0 <= kx < k:
                    t[ky, x * cin_pad:x * cin_pad + cin, col:col + cout] = kern[:, :, ky, kx].T
    return jnp.asarray(t.reshape(k * width * cin_pad, width * cout_pad), jnp.bfloat16)


def _tile_lane(vec, c_pad, reps, total=256):
    """Pad a per-channel vector to c_pad, tile it reps times (matching the (x, c) lane
    layout), and zero-pad to `total` lanes."""
    v = np.zeros(c_pad, np.float32)
    v[: len(vec)] = np.asarray(vec, np.float32)
    out = np.zeros(total, np.float32)
    out[: c_pad * reps] = np.tile(v, reps)
    return out


def _group_mat(lanes, c):
    """0/1 [lanes, lanes] matrix: 1 iff two lanes belong to the same channel of the
    lane-packed (x, c) layout.  rowsum @ G = per-channel sum broadcast back to all lanes."""
    i = np.arange(lanes)
    return (i[:, None] % c == i[None, :] % c).astype(np.float32)


# --------------------------------------------------------------------- fused kernel
def _mnist_ses_v_kernel(
    x_ref,                        # [B, HP1, IN1]   row-padded input images (f32)
    t1_ref, t2_ref, t3_ref,       # [88,256], [1408,256], [1408,256]  bf16 Toeplitz slabs
    w1_ref,                       # [128, 256]  bf16  Linear(C3, 256, bias=False), K padded
    w2_ref,                       # [256, 10]   bf16  Linear(256, 10)
    pv_ref,                       # [12, 256]   f32   packed small vectors (biases, BN affine)
    g_ref,                        # [2, 128, 128] f32 BN channel fold/broadcast matrices
    out_ref,                      # [B, NCLASS]
    pool_ref,                     # VMEM scratch [B*H1, 128] f32 (pool staging)
):
    f32, bf16 = jnp.float32, jnp.bfloat16

    def im2col(xpad, ho):
        # [hin + 2*PAD, L] -> [ho, KSIZE*L]: ky taps folded into the contraction dim.
        return jnp.concatenate([xpad[ky:ky + ho, :] for ky in range(KSIZE)], axis=1)

    def conv_relu(xpads, t_ref, bias_row, ho):
        # batch folded into M: ONE MXU dot per conv (M=B*ho, K=11*W*Cin, N=W*Cout), bf16
        # operands, f32 accumulation; bias + ReLU fused into the epilogue.
        lhs = jnp.concatenate([im2col(xp, ho) for xp in xpads], axis=0)
        o = jnp.dot(lhs.astype(bf16), t_ref[...], preferred_element_type=f32)
        return jnp.maximum(o + bias_row, 0.0)

    def pool2x2(o, nrows):
        # horizontal 2x: columns ordered (ox%2, ox//2, c) -> max of the two lane halves;
        # vertical 2x: stage rows in VMEM scratch and read even/odd rows with a strided ds.
        oh = jnp.maximum(o[:, 0:LANES], o[:, LANES:2 * LANES])
        pool_ref[0:nrows, :] = oh
        return jnp.maximum(pool_ref[pl.ds(0, nrows // 2, 2), :],
                           pool_ref[pl.ds(1, nrows // 2, 2), :])

    def bn_fold(a, g_mat, gamma_t, beta_t, n):
        # training-mode BN over (batch, scale=1, H, W) on lane-packed (x, c) activations.
        # Channel fold + broadcast = one [1,128]x[128,128] matmul (MXU has slack here);
        # centered two-pass variance for numerical safety.
        rowsum = jnp.sum(a, axis=0, keepdims=True)
        mean_t = jnp.dot(rowsum, g_mat, preferred_element_type=f32) * (1.0 / n)
        diff = a - mean_t
        sqsum = jnp.sum(diff * diff, axis=0, keepdims=True)
        var_t = jnp.dot(sqsum, g_mat, preferred_element_type=f32) * (1.0 / n)
        return diff * (gamma_t * lax.rsqrt(var_t + EPS)) + beta_t

    def bn_batch(a, gamma_t, beta_t):
        # lanes == channels: training-mode BN stats over the batch rows (centered).
        inv_n = 1.0 / a.shape[0]
        mean = jnp.sum(a, axis=0, keepdims=True) * inv_n
        diff = a - mean
        var = jnp.sum(diff * diff, axis=0, keepdims=True) * inv_n
        return diff * (gamma_t * lax.rsqrt(var + EPS)) + beta_t

    def pad_rows(blk):
        z = jnp.zeros((PAD, blk.shape[1]), f32)
        return jnp.concatenate([z, blk, z], axis=0)

    # ---- layer 1: SESConv_Z2_H(1,C1) + ReLU + MaxPool3d([1,2,2]) + BatchNorm3d(C1) ----
    o1 = conv_relu([x_ref[b] for b in range(B)], t1_ref, pv_ref[0:1, :], H1)      # [16, 256]
    a1 = bn_fold(pool2x2(o1, B * H1), g_ref[0],
                 pv_ref[3:4, 0:LANES], pv_ref[4:5, 0:LANES], B * P1 * P1)         # [8, 128]

    # ---- layer 2: SESConv_H_H(C1,C2) + ReLU + MaxPool3d([1,2,2]) + BatchNorm3d(C2) ----
    o2 = conv_relu([pad_rows(a1[b * P1:(b + 1) * P1, :]) for b in range(B)],
                   t2_ref, pv_ref[1:2, :], H2)                                    # [8, 256]
    a2 = bn_fold(pool2x2(o2, B * H2), g_ref[1],
                 pv_ref[5:6, 0:LANES], pv_ref[6:7, 0:LANES], B * P2 * P2)         # [4, 128]

    # ---- layer 3: SESConv_H_H(C2,C3) + SESMaxProjection + ReLU + MaxPool2d(4, pad=2) ----
    o3 = conv_relu([pad_rows(a2[b * P2:(b + 1) * P2, :]) for b in range(B)],
                   t3_ref, pv_ref[2:3, :], H3)                                    # [4, 256]
    # SESMaxProjection over the scale axis is the identity for scales=[1.0];
    # MaxPool2d(4, stride=4, padding=2) on the remaining 2x2 map is a global max, which is
    # exactly the same lane-half + row-pair max as pool2x2.
    feat = pool2x2(o3, B * H3)                                                    # [2, 128]
    # BatchNorm2d(C3), training-mode batch statistics (spatial is 1x1 here).
    h = bn_batch(feat, pv_ref[7:8, 0:LANES], pv_ref[8:9, 0:LANES])

    # ---- classifier: Linear(C3,256,no bias) + BN1d(256) + ReLU + Dropout + Linear ----
    z = jnp.dot(h.astype(bf16), w1_ref[...], preferred_element_type=f32)          # [2, 256]
    z = bn_batch(z, pv_ref[9:10, :], pv_ref[10:11, :])
    z = jnp.maximum(z, 0.0)
    # TODO(synk): nn.Dropout(0.7) applied as identity (inference semantics).
    out_ref[...] = (jnp.dot(z.astype(bf16), w2_ref[...], preferred_element_type=f32)
                    + pv_ref[11:12, 0:NCLASS])


# ------------------------------------------------------------------------ parameters
def init_params(key):
    basis = steerable_basis_a(KSIZE, 1.0, 7)            # [49, 11, 11]
    nf = basis.shape[0]
    bas2d = basis.reshape(nf, KSIZE * KSIZE)
    keys = jax.random.split(key, 9)

    def ses_kernel(k, cin, cout):
        # SESConv weight [cout, cin, num_funcs]; spatial kernel = weight @ hermite basis.
        w = np.asarray(jax.random.normal(k, (cout, cin, nf), jnp.float32)) / np.sqrt(cin * nf)
        return (w.reshape(cout * cin, nf) @ bas2d).reshape(cout, cin, KSIZE, KSIZE)

    b1 = 0.01 * np.asarray(jax.random.normal(keys[3], (C1,), jnp.float32))
    b2 = 0.01 * np.asarray(jax.random.normal(keys[4], (C2,), jnp.float32))
    b3 = 0.01 * np.asarray(jax.random.normal(keys[5], (C3,), jnp.float32))
    b_fc2 = 0.01 * np.asarray(jax.random.normal(keys[8], (NCLASS,), jnp.float32))

    # BatchNorm affine params (PyTorch default init: weight=1, bias=0).
    g1, be1 = np.ones(C1, np.float32), np.zeros(C1, np.float32)
    g2, be2 = np.ones(C2, np.float32), np.zeros(C2, np.float32)
    g3, be3 = np.ones(C3, np.float32), np.zeros(C3, np.float32)
    g4, be4 = np.ones(HID, np.float32), np.zeros(HID, np.float32)

    w_fc1 = np.zeros((C3P, HID), np.float32)             # K padded 95 -> 128 (zero rows)
    w_fc1[:C3] = np.asarray(jax.random.normal(keys[6], (C3, HID), jnp.float32)) / np.sqrt(C3)
    w_fc2 = np.asarray(jax.random.normal(keys[7], (HID, NCLASS), jnp.float32)) / np.sqrt(HID)

    # All small per-channel vectors packed into one [12, 256] array, pre-tiled to match the
    # lane-packed (x, c) layouts (one DMA instead of 12).
    pvec = np.stack([
        _tile_lane(b1, C1, W0),          # 0: conv1 bias  (256 = 8 * 32)
        _tile_lane(b2, C2P, P1),         # 1: conv2 bias  (256 = 4 * 64)
        _tile_lane(b3, C3P, P2),         # 2: conv3 bias  (256 = 2 * 128)
        _tile_lane(g1, C1, P1),          # 3: BN1 gamma   (128 = 4 * 32)
        _tile_lane(be1, C1, P1),         # 4: BN1 beta
        _tile_lane(g2, C2P, P2),         # 5: BN2 gamma   (128 = 2 * 64)
        _tile_lane(be2, C2P, P2),        # 6: BN2 beta
        _tile_lane(g3, C3P, 1),          # 7: BN3 gamma   (128)
        _tile_lane(be3, C3P, 1),         # 8: BN3 beta
        _tile_lane(g4, HID, 1),          # 9: BN4 gamma   (256)
        _tile_lane(be4, HID, 1),         # 10: BN4 beta
        _tile_lane(b_fc2, NCLASS, 1),    # 11: fc2 bias   (10)
    ]).astype(np.float32)

    return {
        # ky-folded, channel-padded, bf16 Toeplitz weight slabs.
        "t1": _folded_toeplitz(ses_kernel(keys[0], C0, C1), W0, PAD, C0, C1),    # [88, 256]
        "t2": _folded_toeplitz(ses_kernel(keys[1], C1, C2), P1, PAD, C1, C2P),   # [1408, 256]
        "t3": _folded_toeplitz(ses_kernel(keys[2], C2, C3), P2, PAD, C2P, C3P),  # [1408, 256]
        "w_fc1": jnp.asarray(w_fc1, jnp.bfloat16),                               # [128, 256]
        "w_fc2": jnp.asarray(w_fc2, jnp.bfloat16),                               # [256, 10]
        "pvec": jnp.asarray(pvec),                                               # [12, 256]
        "G": jnp.asarray(np.stack([_group_mat(LANES, C1),                        # [2,128,128]
                                   _group_mat(LANES, C2P)])),
    }


# --------------------------------------------------------------------------- forward
@jax.jit
def forward(x_nchw, p):
    # NCHW [B,1,H,W] -> row-padded, lane-packed [B, H + 2*PAD, W*C0]  (C0 == 1).
    x = x_nchw.astype(jnp.float32).reshape(B, H0, W0)
    x = jnp.pad(x, ((0, 0), (PAD, PAD), (0, 0)))
    vmem = pl.BlockSpec(memory_space=pltpu.MemorySpace.VMEM)
    args = (x, p["t1"], p["t2"], p["t3"], p["w_fc1"], p["w_fc2"], p["pvec"], p["G"])
    return pl.pallas_call(
        _mnist_ses_v_kernel,
        out_shape=jax.ShapeDtypeStruct((B, NCLASS), jnp.float32),
        in_specs=[vmem] * len(args),
        out_specs=vmem,
        scratch_shapes=[pltpu.VMEM((B * H1, LANES), jnp.float32)],
    )(*args)


if __name__ == "__main__":
    key = jax.random.PRNGKey(0)
    k_x, k_p = jax.random.split(key)
    x = jax.random.normal(k_x, (B, C0, H0, W0), jnp.float32)    # PyTorch NCHW input
    params = init_params(k_p)
    y = jax.block_until_ready(forward(x, params))
    assert y.shape == (B, NCLASS), y.shape
    assert bool(jnp.all(jnp.isfinite(y)))
    print("KERNEL_OK")
</pallas_src>

<mosaic_0001>
module attributes {stable_mosaic.version = 11 : i64} {
  func.func @_mnist_ses_v_kernel(%arg0: memref<2x18x8xf32, #tpu.memory_space<vmem>>, %arg1: memref<88x256xbf16, #tpu.memory_space<vmem>>, %arg2: memref<1408x256xbf16, #tpu.memory_space<vmem>>, %arg3: memref<1408x256xbf16, #tpu.memory_space<vmem>>, %arg4: memref<128x256xbf16, #tpu.memory_space<vmem>>, %arg5: memref<256x10xbf16, #tpu.memory_space<vmem>>, %arg6: memref<12x256xf32, #tpu.memory_space<vmem>>, %arg7: memref<2x128x128xf32, #tpu.memory_space<vmem>>, %arg8: memref<2x10xf32, #tpu.memory_space<vmem>>, %arg9: memref<16x128xf32, #tpu.memory_space<vmem>>) attributes {dimension_semantics = [], scalar_prefetch = 0 : i64, scratch_operands = 1 : i64, tpu.core_type = #tpu.core_type<tc>} {
    %c0 = arith.constant 0 : index
    %c0_0 = arith.constant 0 : index
    %c0_1 = arith.constant 0 : index
    %0 = vector.load %arg0[%c0, %c0_0, %c0_1] : memref<2x18x8xf32, #tpu.memory_space<vmem>>, vector<1x18x8xf32>
    %1 = vector.shape_cast %0 : vector<1x18x8xf32> to vector<18x8xf32>
    %c1 = arith.constant 1 : index
    %c0_2 = arith.constant 0 : index
    %c0_3 = arith.constant 0 : index
    %2 = vector.load %arg0[%c1, %c0_2, %c0_3] : memref<2x18x8xf32, #tpu.memory_space<vmem>>, vector<1x18x8xf32>
    %3 = vector.shape_cast %2 : vector<1x18x8xf32> to vector<18x8xf32>
    %c0_4 = arith.constant 0 : index
    %c0_5 = arith.constant 0 : index
    %4 = vector.load %arg6[%c0_4, %c0_5] : memref<12x256xf32, #tpu.memory_space<vmem>>, vector<1x256xf32>
    %5 = vector.extract_strided_slice %1 {offsets = [0, 0], sizes = [8, 8], strides = [1, 1]} : vector<18x8xf32> to vector<8x8xf32>
    %6 = vector.extract_strided_slice %1 {offsets = [1, 0], sizes = [8, 8], strides = [1, 1]} : vector<18x8xf32> to vector<8x8xf32>
    %7 = vector.extract_strided_slice %1 {offsets = [2, 0], sizes = [8, 8], strides = [1, 1]} : vector<18x8xf32> to vector<8x8xf32>
    %8 = vector.extract_strided_slice %1 {offsets = [3, 0], sizes = [8, 8], strides = [1, 1]} : vector<18x8xf32> to vector<8x8xf32>
    %9 = vector.extract_strided_slice %1 {offsets = [4, 0], sizes = [8, 8], strides = [1, 1]} : vector<18x8xf32> to vector<8x8xf32>
    %10 = vector.extract_strided_slice %1 {offsets = [5, 0], sizes = [8, 8], strides = [1, 1]} : vector<18x8xf32> to vector<8x8xf32>
    %11 = vector.extract_strided_slice %1 {offsets = [6, 0], sizes = [8, 8], strides = [1, 1]} : vector<18x8xf32> to vector<8x8xf32>
    %12 = vector.extract_strided_slice %1 {offsets = [7, 0], sizes = [8, 8], strides = [1, 1]} : vector<18x8xf32> to vector<8x8xf32>
    %13 = vector.extract_strided_slice %1 {offsets = [8, 0], sizes = [8, 8], strides = [1, 1]} : vector<18x8xf32> to vector<8x8xf32>
    %14 = vector.extract_strided_slice %1 {offsets = [9, 0], sizes = [8, 8], strides = [1, 1]} : vector<18x8xf32> to vector<8x8xf32>
    %15 = vector.extract_strided_slice %1 {offsets = [10, 0], sizes = [8, 8], strides = [1, 1]} : vector<18x8xf32> to vector<8x8xf32>
    %16 = tpu.concatenate %5, %6, %7, %8, %9, %10, %11, %12, %13, %14, %15 in 1 : vector<8x8xf32>, vector<8x8xf32>, vector<8x8xf32>, vector<8x8xf32>, vector<8x8xf32>, vector<8x8xf32>, vector<8x8xf32>, vector<8x8xf32>, vector<8x8xf32>, vector<8x8xf32>, vector<8x8xf32> -> vector<8x88xf32>
    %17 = vector.extract_strided_slice %3 {offsets = [0, 0], sizes = [8, 8], strides = [1, 1]} : vector<18x8xf32> to vector<8x8xf32>
    %18 = vector.extract_strided_slice %3 {offsets = [1, 0], sizes = [8, 8], strides = [1, 1]} : vector<18x8xf32> to vector<8x8xf32>
    %19 = vector.extract_strided_slice %3 {offsets = [2, 0], sizes = [8, 8], strides = [1, 1]} : vector<18x8xf32> to vector<8x8xf32>
    %20 = vector.extract_strided_slice %3 {offsets = [3, 0], sizes = [8, 8], strides = [1, 1]} : vector<18x8xf32> to vector<8x8xf32>
    %21 = vector.extract_strided_slice %3 {offsets = [4, 0], sizes = [8, 8], strides = [1, 1]} : vector<18x8xf32> to vector<8x8xf32>
    %22 = vector.extract_strided_slice %3 {offsets = [5, 0], sizes = [8, 8], strides = [1, 1]} : vector<18x8xf32> to vector<8x8xf32>
    %23 = vector.extract_strided_slice %3 {offsets = [6, 0], sizes = [8, 8], strides = [1, 1]} : vector<18x8xf32> to vector<8x8xf32>
    %24 = vector.extract_strided_slice %3 {offsets = [7, 0], sizes = [8, 8], strides = [1, 1]} : vector<18x8xf32> to vector<8x8xf32>
    %25 = vector.extract_strided_slice %3 {offsets = [8, 0], sizes = [8, 8], strides = [1, 1]} : vector<18x8xf32> to vector<8x8xf32>
    %26 = vector.extract_strided_slice %3 {offsets = [9, 0], sizes = [8, 8], strides = [1, 1]} : vector<18x8xf32> to vector<8x8xf32>
    %27 = vector.extract_strided_slice %3 {offsets = [10, 0], sizes = [8, 8], strides = [1, 1]} : vector<18x8xf32> to vector<8x8xf32>
    %28 = tpu.concatenate %17, %18, %19, %20, %21, %22, %23, %24, %25, %26, %27 in 1 : vector<8x8xf32>, vector<8x8xf32>, vector<8x8xf32>, vector<8x8xf32>, vector<8x8xf32>, vector<8x8xf32>, vector<8x8xf32>, vector<8x8xf32>, vector<8x8xf32>, vector<8x8xf32>, vector<8x8xf32> -> vector<8x88xf32>
    %29 = tpu.concatenate %16, %28 in 0 : vector<8x88xf32>, vector<8x88xf32> -> vector<16x88xf32>
    %30 = arith.truncf %29 : vector<16x88xf32> to vector<16x88xbf16>
    %c0_6 = arith.constant 0 : index
    %c0_7 = arith.constant 0 : index
    %31 = vector.load %arg1[%c0_6, %c0_7] : memref<88x256xbf16, #tpu.memory_space<vmem>>, vector<88x256xbf16>
    %cst = arith.constant dense<0.000000e+00> : vector<16x256xf32>
    %32 = tpu.matmul %30, %31, %cst {dimension_numbers = #tpu.dot_dimension_numbers<[1], [0], [0], [1], [0, 0, 1, 1], [], []>} : vector<16x88xbf16>, vector<88x256xbf16>, vector<16x256xf32> -> vector<16x256xf32>
    %33 = vector.broadcast %4 : vector<1x256xf32> to vector<16x256xf32>
    %34 = arith.addf %32, %33 : vector<16x256xf32>
    %cst_8 = arith.constant 0.000000e+00 : f32
    %35 = vector.broadcast %cst_8 : f32 to vector<16x256xf32>
    %36 = arith.maximumf %34, %35 : vector<16x256xf32>
    %37 = vector.extract_strided_slice %36 {offsets = [0, 0], sizes = [16, 128], strides = [1, 1]} : vector<16x256xf32> to vector<16x128xf32>
    %38 = vector.extract_strided_slice %36 {offsets = [0, 128], sizes = [16, 128], strides = [1, 1]} : vector<16x256xf32> to vector<16x128xf32>
    %39 = arith.maximumf %37, %38 : vector<16x128xf32>
    %c0_9 = arith.constant 0 : index
    %c0_10 = arith.constant 0 : index
    %40 = vector.load %arg9[%c0_9, %c0_10] : memref<16x128xf32, #tpu.memory_space<vmem>>, vector<16x128xf32>
    tpu.vector_store %arg9[%c0_9, %c0_10], %39 {strides = array<i32>} : memref<16x128xf32, #tpu.memory_space<vmem>>, vector<16x128xf32>,
    %c0_11 = arith.constant 0 : index
    %c0_12 = arith.constant 0 : index
    %41 = tpu.strided_load %arg9[%c0_11, %c0_12] {strides = array<i32: 2, 1>} : memref<16x128xf32, #tpu.memory_space<vmem>>, vector<8x128xf32>
    %c1_13 = arith.constant 1 : index
    %c0_14 = arith.constant 0 : index
    %42 = tpu.strided_load %arg9[%c1_13, %c0_14] {strides = array<i32: 2, 1>} : memref<16x128xf32, #tpu.memory_space<vmem>>, vector<8x128xf32>
    %43 = arith.maximumf %41, %42 : vector<8x128xf32>
    %c0_15 = arith.constant 0 : index
    %c0_16 = arith.constant 0 : index
    %c0_17 = arith.constant 0 : index
    %44 = vector.load %arg7[%c0_15, %c0_16, %c0_17] : memref<2x128x128xf32, #tpu.memory_space<vmem>>, vector<1x128x128xf32>
    %45 = vector.shape_cast %44 : vector<1x128x128xf32> to vector<128x128xf32>
    %c3 = arith.constant 3 : index
    %c0_18 = arith.constant 0 : index
    %46 = vector.load %arg6[%c3, %c0_18] : memref<12x256xf32, #tpu.memory_space<vmem>>, vector<1x128xf32>
    %c4 = arith.constant 4 : index
    %c0_19 = arith.constant 0 : index
    %47 = vector.load %arg6[%c4, %c0_19] : memref<12x256xf32, #tpu.memory_space<vmem>>, vector<1x128xf32>
    %cst_20 = arith.constant dense<0.000000e+00> : vector<128xf32>
    %48 = vector.multi_reduction <add>, %43, %cst_20 [0] : vector<8x128xf32> to vector<128xf32>
    %49 = vector.shape_cast %48 : vector<128xf32> to vector<1x128xf32>
    %cst_21 = arith.constant dense<0.000000e+00> : vector<1x128xf32>
    %50 = tpu.matmul %49, %45, %cst_21 {dimension_numbers = #tpu.dot_dimension_numbers<[1], [0], [0], [1], [0, 0, 1, 1], [], []>} : vector<1x128xf32>, vector<128x128xf32>, vector<1x128xf32> -> vector<1x128xf32>
    %cst_22 = arith.constant 3.125000e-02 : f32
    %51 = vector.broadcast %cst_22 : f32 to vector<1x128xf32>
    %52 = arith.mulf %50, %51 : vector<1x128xf32>
    %53 = vector.broadcast %52 : vector<1x128xf32> to vector<8x128xf32>
    %54 = arith.subf %43, %53 : vector<8x128xf32>
    %55 = arith.mulf %54, %54 : vector<8x128xf32>
    %cst_23 = arith.constant dense<0.000000e+00> : vector<128xf32>
    %56 = vector.multi_reduction <add>, %55, %cst_23 [0] : vector<8x128xf32> to vector<128xf32>
    %57 = vector.shape_cast %56 : vector<128xf32> to vector<1x128xf32>
    %cst_24 = arith.constant dense<0.000000e+00> : vector<1x128xf32>
    %58 = tpu.matmul %57, %45, %cst_24 {dimension_numbers = #tpu.dot_dimension_numbers<[1], [0], [0], [1], [0, 0, 1, 1], [], []>} : vector<1x128xf32>, vector<128x128xf32>, vector<1x128xf32> -> vector<1x128xf32>
    %cst_25 = arith.constant 3.125000e-02 : f32
    %59 = vector.broadcast %cst_25 : f32 to vector<1x128xf32>
    %60 = arith.mulf %58, %59 : vector<1x128xf32>
    %cst_26 = arith.constant 9.99999974E-6 : f32
    %61 = vector.broadcast %cst_26 : f32 to vector<1x128xf32>
    %62 = arith.addf %60, %61 : vector<1x128xf32>
    %63 = math.rsqrt %62 : vector<1x128xf32>
    %64 = arith.mulf %46, %63 : vector<1x128xf32>
    %65 = vector.broadcast %64 : vector<1x128xf32> to vector<8x128xf32>
    %66 = arith.mulf %54, %65 : vector<8x128xf32>
    %67 = vector.broadcast %47 : vector<1x128xf32> to vector<8x128xf32>
    %68 = arith.addf %66, %67 : vector<8x128xf32>
    %69 = vector.extract_strided_slice %68 {offsets = [0, 0], sizes = [4, 128], strides = [1, 1]} : vector<8x128xf32> to vector<4x128xf32>
    %cst_27 = arith.constant 0.000000e+00 : f32
    %70 = vector.broadcast %cst_27 : f32 to vector<5x128xf32>
    %71 = tpu.concatenate %70, %69, %70 in 0 : vector<5x128xf32>, vector<4x128xf32>, vector<5x128xf32> -> vector<14x128xf32>
    %72 = vector.extract_strided_slice %68 {offsets = [4, 0], sizes = [4, 128], strides = [1, 1]} : vector<8x128xf32> to vector<4x128xf32>
    %cst_28 = arith.constant 0.000000e+00 : f32
    %73 = vector.broadcast %cst_28 : f32 to vector<5x128xf32>
    %74 = tpu.concatenate %73, %72, %73 in 0 : vector<5x128xf32>, vector<4x128xf32>, vector<5x128xf32> -> vector<14x128xf32>
    %c1_29 = arith.constant 1 : index
    %c0_30 = arith.constant 0 : index
    %75 = vector.load %arg6[%c1_29, %c0_30] : memref<12x256xf32, #tpu.memory_space<vmem>>, vector<1x256xf32>
    %76 = vector.extract_strided_slice %71 {offsets = [0, 0], sizes = [4, 128], strides = [1, 1]} : vector<14x128xf32> to vector<4x128xf32>
    %77 = vector.extract_strided_slice %71 {offsets = [1, 0], sizes = [4, 128], strides = [1, 1]} : vector<14x128xf32> to vector<4x128xf32>
    %78 = vector.extract_strided_slice %71 {offsets = [2, 0], sizes = [4, 128], strides = [1, 1]} : vector<14x128xf32> to vector<4x128xf32>
    %79 = vector.extract_strided_slice %71 {offsets = [3, 0], sizes = [4, 128], strides = [1, 1]} : vector<14x128xf32> to vector<4x128xf32>
    %80 = vector.extract_strided_slice %71 {offsets = [4, 0], sizes = [4, 128], strides = [1, 1]} : vector<14x128xf32> to vector<4x128xf32>
    %81 = vector.extract_strided_slice %71 {offsets = [5, 0], sizes = [4, 128], strides = [1, 1]} : vector<14x128xf32> to vector<4x128xf32>
    %82 = vector.extract_strided_slice %71 {offsets = [6, 0], sizes = [4, 128], strides = [1, 1]} : vector<14x128xf32> to vector<4x128xf32>
    %83 = vector.extract_strided_slice %71 {offsets = [7, 0], sizes = [4, 128], strides = [1, 1]} : vector<14x128xf32> to vector<4x128xf32>
    %84 = vector.extract_strided_slice %71 {offsets = [8, 0], sizes = [4, 128], strides = [1, 1]} : vector<14x128xf32> to vector<4x128xf32>
    %85 = vector.extract_strided_slice %71 {offsets = [9, 0], sizes = [4, 128], strides = [1, 1]} : vector<14x128xf32> to vector<4x128xf32>
    %86 = vector.extract_strided_slice %71 {offsets = [10, 0], sizes = [4, 128], strides = [1, 1]} : vector<14x128xf32> to vector<4x128xf32>
    %87 = tpu.concatenate %76, %77, %78, %79, %80, %81, %82, %83, %84, %85, %86 in 1 : vector<4x128xf32>, vector<4x128xf32>, vector<4x128xf32>, vector<4x128xf32>, vector<4x128xf32>, vector<4x128xf32>, vector<4x128xf32>, vector<4x128xf32>, vector<4x128xf32>, vector<4x128xf32>, vector<4x128xf32> -> vector<4x1408xf32>
    %88 = vector.extract_strided_slice %74 {offsets = [0, 0], sizes = [4, 128], strides = [1, 1]} : vector<14x128xf32> to vector<4x128xf32>
    %89 = vector.extract_strided_slice %74 {offsets = [1, 0], sizes = [4, 128], strides = [1, 1]} : vector<14x128xf32> to vector<4x128xf32>
    %90 = vector.extract_strided_slice %74 {offsets = [2, 0], sizes = [4, 128], strides = [1, 1]} : vector<14x128xf32> to vector<4x128xf32>
    %91 = vector.extract_strided_slice %74 {offsets = [3, 0], sizes = [4, 128], strides = [1, 1]} : vector<14x128xf32> to vector<4x128xf32>
    %92 = vector.extract_strided_slice %74 {offsets = [4, 0], sizes = [4, 128], strides = [1, 1]} : vector<14x128xf32> to vector<4x128xf32>
    %93 = vector.extract_strided_slice %74 {offsets = [5, 0], sizes = [4, 128], strides = [1, 1]} : vector<14x128xf32> to vector<4x128xf32>
    %94 = vector.extract_strided_slice %74 {offsets = [6, 0], sizes = [4, 128], strides = [1, 1]} : vector<14x128xf32> to vector<4x128xf32>
    %95 = vector.extract_strided_slice %74 {offsets = [7, 0], sizes = [4, 128], strides = [1, 1]} : vector<14x128xf32> to vector<4x128xf32>
    %96 = vector.extract_strided_slice %74 {offsets = [8, 0], sizes = [4, 128], strides = [1, 1]} : vector<14x128xf32> to vector<4x128xf32>
    %97 = vector.extract_strided_slice %74 {offsets = [9, 0], sizes = [4, 128], strides = [1, 1]} : vector<14x128xf32> to vector<4x128xf32>
    %98 = vector.extract_strided_slice %74 {offsets = [10, 0], sizes = [4, 128], strides = [1, 1]} : vector<14x128xf32> to vector<4x128xf32>
    %99 = tpu.concatenate %88, %89, %90, %91, %92, %93, %94, %95, %96, %97, %98 in 1 : vector<4x128xf32>, vector<4x128xf32>, vector<4x128xf32>, vector<4x128xf32>, vector<4x128xf32>, vector<4x128xf32>, vector<4x128xf32>, vector<4x128xf32>, vector<4x128xf32>, vector<4x128xf32>, vector<4x128xf32> -> vector<4x1408xf32>
    %100 = tpu.concatenate %87, %99 in 0 : vector<4x1408xf32>, vector<4x1408xf32> -> vector<8x1408xf32>
    %101 = arith.truncf %100 : vector<8x1408xf32> to vector<8x1408xbf16>
    %c0_31 = arith.constant 0 : index
    %c0_32 = arith.constant 0 : index
    %102 = vector.load %arg2[%c0_31, %c0_32] : memref<1408x256xbf16, #tpu.memory_space<vmem>>, vector<1408x256xbf16>
    %cst_33 = arith.constant dense<0.000000e+00> : vector<8x256xf32>
    %103 = tpu.matmul %101, %102, %cst_33 {dimension_numbers = #tpu.dot_dimension_numbers<[1], [0], [0], [1], [0, 0, 1, 1], [], []>} : vector<8x1408xbf16>, vector<1408x256xbf16>, vector<8x256xf32> -> vector<8x256xf32>
    %104 = vector.broadcast %75 : vector<1x256xf32> to vector<8x256xf32>
    %105 = arith.addf %103, %104 : vector<8x256xf32>
    %cst_34 = arith.constant 0.000000e+00 : f32
    %106 = vector.broadcast %cst_34 : f32 to vector<8x256xf32>
    %107 = arith.maximumf %105, %106 : vector<8x256xf32>
    %108 = vector.extract_strided_slice %107 {offsets = [0, 0], sizes = [8, 128], strides = [1, 1]} : vector<8x256xf32> to vector<8x128xf32>
    %109 = vector.extract_strided_slice %107 {offsets = [0, 128], sizes = [8, 128], strides = [1, 1]} : vector<8x256xf32> to vector<8x128xf32>
    %110 = arith.maximumf %108, %109 : vector<8x128xf32>
    %c0_35 = arith.constant 0 : index
    %c0_36 = arith.constant 0 : index
    %111 = vector.load %arg9[%c0_35, %c0_36] : memref<16x128xf32, #tpu.memory_space<vmem>>, vector<8x128xf32>
    tpu.vector_store %arg9[%c0_35, %c0_36], %110 {strides = array<i32>} : memref<16x128xf32, #tpu.memory_space<vmem>>, vector<8x128xf32>,
    %c0_37 = arith.constant 0 : index
    %c0_38 = arith.constant 0 : index
    %112 = tpu.strided_load %arg9[%c0_37, %c0_38] {strides = array<i32: 2, 1>} : memref<16x128xf32, #tpu.memory_space<vmem>>, vector<4x128xf32>
    %c1_39 = arith.constant 1 : index
    %c0_40 = arith.constant 0 : index
    %113 = tpu.strided_load %arg9[%c1_39, %c0_40] {strides = array<i32: 2, 1>} : memref<16x128xf32, #tpu.memory_space<vmem>>, vector<4x128xf32>
    %114 = arith.maximumf %112, %113 : vector<4x128xf32>
    %c1_41 = arith.constant 1 : index
    %c0_42 = arith.constant 0 : index
    %c0_43 = arith.constant 0 : index
    %115 = vector.load %arg7[%c1_41, %c0_42, %c0_43] : memref<2x128x128xf32, #tpu.memory_space<vmem>>, vector<1x128x128xf32>
    %116 = vector.shape_cast %115 : vector<1x128x128xf32> to vector<128x128xf32>
    %c5 = arith.constant 5 : index
    %c0_44 = arith.constant 0 : index
    %117 = vector.load %arg6[%c5, %c0_44] : memref<12x256xf32, #tpu.memory_space<vmem>>, vector<1x128xf32>
    %c6 = arith.constant 6 : index
    %c0_45 = arith.constant 0 : index
    %118 = vector.load %arg6[%c6, %c0_45] : memref<12x256xf32, #tpu.memory_space<vmem>>, vector<1x128xf32>
    %cst_46 = arith.constant dense<0.000000e+00> : vector<128xf32>
    %119 = vector.multi_reduction <add>, %114, %cst_46 [0] : vector<4x128xf32> to vector<128xf32>
    %120 = vector.shape_cast %119 : vector<128xf32> to vector<1x128xf32>
    %cst_47 = arith.constant dense<0.000000e+00> : vector<1x128xf32>
    %121 = tpu.matmul %120, %116, %cst_47 {dimension_numbers = #tpu.dot_dimension_numbers<[1], [0], [0], [1], [0, 0, 1, 1], [], []>} : vector<1x128xf32>, vector<128x128xf32>, vector<1x128xf32> -> vector<1x128xf32>
    %cst_48 = arith.constant 1.250000e-01 : f32
    %122 = vector.broadcast %cst_48 : f32 to vector<1x128xf32>
    %123 = arith.mulf %121, %122 : vector<1x128xf32>
    %124 = vector.broadcast %123 : vector<1x128xf32> to vector<4x128xf32>
    %125 = arith.subf %114, %124 : vector<4x128xf32>
    %126 = arith.mulf %125, %125 : vector<4x128xf32>
    %cst_49 = arith.constant dense<0.000000e+00> : vector<128xf32>
    %127 = vector.multi_reduction <add>, %126, %cst_49 [0] : vector<4x128xf32> to vector<128xf32>
    %128 = vector.shape_cast %127 : vector<128xf32> to vector<1x128xf32>
    %cst_50 = arith.constant dense<0.000000e+00> : vector<1x128xf32>
    %129 = tpu.matmul %128, %116, %cst_50 {dimension_numbers = #tpu.dot_dimension_numbers<[1], [0], [0], [1], [0, 0, 1, 1], [], []>} : vector<1x128xf32>, vector<128x128xf32>, vector<1x128xf32> -> vector<1x128xf32>
    %cst_51 = arith.constant 1.250000e-01 : f32
    %130 = vector.broadcast %cst_51 : f32 to vector<1x128xf32>
    %131 = arith.mulf %129, %130 : vector<1x128xf32>
    %cst_52 = arith.constant 9.99999974E-6 : f32
    %132 = vector.broadcast %cst_52 : f32 to vector<1x128xf32>
    %133 = arith.addf %131, %132 : vector<1x128xf32>
    %134 = math.rsqrt %133 : vector<1x128xf32>
    %135 = arith.mulf %117, %134 : vector<1x128xf32>
    %136 = vector.broadcast %135 : vector<1x128xf32> to vector<4x128xf32>
    %137 = arith.mulf %125, %136 : vector<4x128xf32>
    %138 = vector.broadcast %118 : vector<1x128xf32> to vector<4x128xf32>
    %139 = arith.addf %137, %138 : vector<4x128xf32>
    %140 = vector.extract_strided_slice %139 {offsets = [0, 0], sizes = [2, 128], strides = [1, 1]} : vector<4x128xf32> to vector<2x128xf32>
    %cst_53 = arith.constant 0.000000e+00 : f32
    %141 = vector.broadcast %cst_53 : f32 to vector<5x128xf32>
    %142 = tpu.concatenate %141, %140, %141 in 0 : vector<5x128xf32>, vector<2x128xf32>, vector<5x128xf32> -> vector<12x128xf32>
    %143 = vector.extract_strided_slice %139 {offsets = [2, 0], sizes = [2, 128], strides = [1, 1]} : vector<4x128xf32> to vector<2x128xf32>
    %cst_54 = arith.constant 0.000000e+00 : f32
    %144 = vector.broadcast %cst_54 : f32 to vector<5x128xf32>
    %145 = tpu.concatenate %144, %143, %144 in 0 : vector<5x128xf32>, vector<2x128xf32>, vector<5x128xf32> -> vector<12x128xf32>
    %c2 = arith.constant 2 : index
    %c0_55 = arith.constant 0 : index
    %146 = vector.load %arg6[%c2, %c0_55] : memref<12x256xf32, #tpu.memory_space<vmem>>, vector<1x256xf32>
    %147 = vector.extract_strided_slice %142 {offsets = [0, 0], sizes = [2, 128], strides = [1, 1]} : vector<12x128xf32> to vector<2x128xf32>
    %148 = vector.extract_strided_slice %142 {offsets = [1, 0], sizes = [2, 128], strides = [1, 1]} : vector<12x128xf32> to vector<2x128xf32>
    %149 = vector.extract_strided_slice %142 {offsets = [2, 0], sizes = [2, 128], strides = [1, 1]} : vector<12x128xf32> to vector<2x128xf32>
    %150 = vector.extract_strided_slice %142 {offsets = [3, 0], sizes = [2, 128], strides = [1, 1]} : vector<12x128xf32> to vector<2x128xf32>
    %151 = vector.extract_strided_slice %142 {offsets = [4, 0], sizes = [2, 128], strides = [1, 1]} : vector<12x128xf32> to vector<2x128xf32>
    %152 = vector.extract_strided_slice %142 {offsets = [5, 0], sizes = [2, 128], strides = [1, 1]} : vector<12x128xf32> to vector<2x128xf32>
    %153 = vector.extract_strided_slice %142 {offsets = [6, 0], sizes = [2, 128], strides = [1, 1]} : vector<12x128xf32> to vector<2x128xf32>
    %154 = vector.extract_strided_slice %142 {offsets = [7, 0], sizes = [2, 128], strides = [1, 1]} : vector<12x128xf32> to vector<2x128xf32>
    %155 = vector.extract_strided_slice %142 {offsets = [8, 0], sizes = [2, 128], strides = [1, 1]} : vector<12x128xf32> to vector<2x128xf32>
    %156 = vector.extract_strided_slice %142 {offsets = [9, 0], sizes = [2, 128], strides = [1, 1]} : vector<12x128xf32> to vector<2x128xf32>
    %157 = vector.extract_strided_slice %142 {offsets = [10, 0], sizes = [2, 128], strides = [1, 1]} : vector<12x128xf32> to vector<2x128xf32>
    %158 = tpu.concatenate %147, %148, %149, %150, %151, %152, %153, %154, %155, %156, %157 in 1 : vector<2x128xf32>, vector<2x128xf32>, vector<2x128xf32>, vector<2x128xf32>, vector<2x128xf32>, vector<2x128xf32>, vector<2x128xf32>, vector<2x128xf32>, vector<2x128xf32>, vector<2x128xf32>, vector<2x128xf32> -> vector<2x1408xf32>
    %159 = vector.extract_strided_slice %145 {offsets = [0, 0], sizes = [2, 128], strides = [1, 1]} : vector<12x128xf32> to vector<2x128xf32>
    %160 = vector.extract_strided_slice %145 {offsets = [1, 0], sizes = [2, 128], strides = [1, 1]} : vector<12x128xf32> to vector<2x128xf32>
    %161 = vector.extract_strided_slice %145 {offsets = [2, 0], sizes = [2, 128], strides = [1, 1]} : vector<12x128xf32> to vector<2x128xf32>
    %162 = vector.extract_strided_slice %145 {offsets = [3, 0], sizes = [2, 128], strides = [1, 1]} : vector<12x128xf32> to vector<2x128xf32>
    %163 = vector.extract_strided_slice %145 {offsets = [4, 0], sizes = [2, 128], strides = [1, 1]} : vector<12x128xf32> to vector<2x128xf32>
    %164 = vector.extract_strided_slice %145 {offsets = [5, 0], sizes = [2, 128], strides = [1, 1]} : vector<12x128xf32> to vector<2x128xf32>
    %165 = vector.extract_strided_slice %145 {offsets = [6, 0], sizes = [2, 128], strides = [1, 1]} : vector<12x128xf32> to vector<2x128xf32>
    %166 = vector.extract_strided_slice %145 {offsets = [7, 0], sizes = [2, 128], strides = [1, 1]} : vector<12x128xf32> to vector<2x128xf32>
    %167 = vector.extract_strided_slice %145 {offsets = [8, 0], sizes = [2, 128], strides = [1, 1]} : vector<12x128xf32> to vector<2x128xf32>
    %168 = vector.extract_strided_slice %145 {offsets = [9, 0], sizes = [2, 128], strides = [1, 1]} : vector<12x128xf32> to vector<2x128xf32>
    %169 = vector.extract_strided_slice %145 {offsets = [10, 0], sizes = [2, 128], strides = [1, 1]} : vector<12x128xf32> to vector<2x128xf32>
    %170 = tpu.concatenate %159, %160, %161, %162, %163, %164, %165, %166, %167, %168, %169 in 1 : vector<2x128xf32>, vector<2x128xf32>, vector<2x128xf32>, vector<2x128xf32>, vector<2x128xf32>, vector<2x128xf32>, vector<2x128xf32>, vector<2x128xf32>, vector<2x128xf32>, vector<2x128xf32>, vector<2x128xf32> -> vector<2x1408xf32>
    %171 = tpu.concatenate %158, %170 in 0 : vector<2x1408xf32>, vector<2x1408xf32> -> vector<4x1408xf32>
    %172 = arith.truncf %171 : vector<4x1408xf32> to vector<4x1408xbf16>
    %c0_56 = arith.constant 0 : index
    %c0_57 = arith.constant 0 : index
    %173 = vector.load %arg3[%c0_56, %c0_57] : memref<1408x256xbf16, #tpu.memory_space<vmem>>, vector<1408x256xbf16>
    %cst_58 = arith.constant dense<0.000000e+00> : vector<4x256xf32>
    %174 = tpu.matmul %172, %173, %cst_58 {dimension_numbers = #tpu.dot_dimension_numbers<[1], [0], [0], [1], [0, 0, 1, 1], [], []>} : vector<4x1408xbf16>, vector<1408x256xbf16>, vector<4x256xf32> -> vector<4x256xf32>
    %175 = vector.broadcast %146 : vector<1x256xf32> to vector<4x256xf32>
    %176 = arith.addf %174, %175 : vector<4x256xf32>
    %cst_59 = arith.constant 0.000000e+00 : f32
    %177 = vector.broadcast %cst_59 : f32 to vector<4x256xf32>
    %178 = arith.maximumf %176, %177 : vector<4x256xf32>
    %179 = vector.extract_strided_slice %178 {offsets = [0, 0], sizes = [4, 128], strides = [1, 1]} : vector<4x256xf32> to vector<4x128xf32>
    %180 = vector.extract_strided_slice %178 {offsets = [0, 128], sizes = [4, 128], strides = [1, 1]} : vector<4x256xf32> to vector<4x128xf32>
    %181 = arith.maximumf %179, %180 : vector<4x128xf32>
    %c0_60 = arith.constant 0 : index
    %c0_61 = arith.constant 0 : index
    %182 = vector.load %arg9[%c0_60, %c0_61] : memref<16x128xf32, #tpu.memory_space<vmem>>, vector<4x128xf32>
    tpu.vector_store %arg9[%c0_60, %c0_61], %181 {strides = array<i32>} : memref<16x128xf32, #tpu.memory_space<vmem>>, vector<4x128xf32>,
    %c0_62 = arith.constant 0 : index
    %c0_63 = arith.constant 0 : index
    %183 = tpu.strided_load %arg9[%c0_62, %c0_63] {strides = array<i32: 2, 1>} : memref<16x128xf32, #tpu.memory_space<vmem>>, vector<2x128xf32>
    %c1_64 = arith.constant 1 : index
    %c0_65 = arith.constant 0 : index
    %184 = tpu.strided_load %arg9[%c1_64, %c0_65] {strides = array<i32: 2, 1>} : memref<16x128xf32, #tpu.memory_space<vmem>>, vector<2x128xf32>
    %185 = arith.maximumf %183, %184 : vector<2x128xf32>
    %c7 = arith.constant 7 : index
    %c0_66 = arith.constant 0 : index
    %186 = vector.load %arg6[%c7, %c0_66] : memref<12x256xf32, #tpu.memory_space<vmem>>, vector<1x128xf32>
    %c8 = arith.constant 8 : index
    %c0_67 = arith.constant 0 : index
    %187 = vector.load %arg6[%c8, %c0_67] : memref<12x256xf32, #tpu.memory_space<vmem>>, vector<1x128xf32>
    %cst_68 = arith.constant dense<0.000000e+00> : vector<128xf32>
    %188 = vector.multi_reduction <add>, %185, %cst_68 [0] : vector<2x128xf32> to vector<128xf32>
    %189 = vector.shape_cast %188 : vector<128xf32> to vector<1x128xf32>
    %cst_69 = arith.constant 5.000000e-01 : f32
    %190 = vector.broadcast %cst_69 : f32 to vector<1x128xf32>
    %191 = arith.mulf %189, %190 : vector<1x128xf32>
    %192 = vector.broadcast %191 : vector<1x128xf32> to vector<2x128xf32>
    %193 = arith.subf %185, %192 : vector<2x128xf32>
    %194 = arith.mulf %193, %193 : vector<2x128xf32>
    %cst_70 = arith.constant dense<0.000000e+00> : vector<128xf32>
    %195 = vector.multi_reduction <add>, %194, %cst_70 [0] : vector<2x128xf32> to vector<128xf32>
    %196 = vector.shape_cast %195 : vector<128xf32> to vector<1x128xf32>
    %cst_71 = arith.constant 5.000000e-01 : f32
    %197 = vector.broadcast %cst_71 : f32 to vector<1x128xf32>
    %198 = arith.mulf %196, %197 : vector<1x128xf32>
    %cst_72 = arith.constant 9.99999974E-6 : f32
    %199 = vector.broadcast %cst_72 : f32 to vector<1x128xf32>
    %200 = arith.addf %198, %199 : vector<1x128xf32>
    %201 = math.rsqrt %200 : vector<1x128xf32>
    %202 = arith.mulf %186, %201 : vector<1x128xf32>
    %203 = vector.broadcast %202 : vector<1x128xf32> to vector<2x128xf32>
    %204 = arith.mulf %193, %203 : vector<2x128xf32>
    %205 = vector.broadcast %187 : vector<1x128xf32> to vector<2x128xf32>
    %206 = arith.addf %204, %205 : vector<2x128xf32>
    %207 = arith.truncf %206 : vector<2x128xf32> to vector<2x128xbf16>
    %c0_73 = arith.constant 0 : index
    %c0_74 = arith.constant 0 : index
    %208 = vector.load %arg4[%c0_73, %c0_74] : memref<128x256xbf16, #tpu.memory_space<vmem>>, vector<128x256xbf16>
    %cst_75 = arith.constant dense<0.000000e+00> : vector<2x256xf32>
    %209 = tpu.matmul %207, %208, %cst_75 {dimension_numbers = #tpu.dot_dimension_numbers<[1], [0], [0], [1], [0, 0, 1, 1], [], []>} : vector<2x128xbf16>, vector<128x256xbf16>, vector<2x256xf32> -> vector<2x256xf32>
    %c9 = arith.constant 9 : index
    %c0_76 = arith.constant 0 : index
    %210 = vector.load %arg6[%c9, %c0_76] : memref<12x256xf32, #tpu.memory_space<vmem>>, vector<1x256xf32>
    %c10 = arith.constant 10 : index
    %c0_77 = arith.constant 0 : index
    %211 = vector.load %arg6[%c10, %c0_77] : memref<12x256xf32, #tpu.memory_space<vmem>>, vector<1x256xf32>
    %cst_78 = arith.constant dense<0.000000e+00> : vector<256xf32>
    %212 = vector.multi_reduction <add>, %209, %cst_78 [0] : vector<2x256xf32> to vector<256xf32>
    %213 = vector.shape_cast %212 : vector<256xf32> to vector<1x256xf32>
    %cst_79 = arith.constant 5.000000e-01 : f32
    %214 = vector.broadcast %cst_79 : f32 to vector<1x256xf32>
    %215 = arith.mulf %213, %214 : vector<1x256xf32>
    %216 = vector.broadcast %215 : vector<1x256xf32> to vector<2x256xf32>
    %217 = arith.subf %209, %216 : vector<2x256xf32>
    %218 = arith.mulf %217, %217 : vector<2x256xf32>
    %cst_80 = arith.constant dense<0.000000e+00> : vector<256xf32>
    %219 = vector.multi_reduction <add>, %218, %cst_80 [0] : vector<2x256xf32> to vector<256xf32>
    %220 = vector.shape_cast %219 : vector<256xf32> to vector<1x256xf32>
    %cst_81 = arith.constant 5.000000e-01 : f32
    %221 = vector.broadcast %cst_81 : f32 to vector<1x256xf32>
    %222 = arith.mulf %220, %221 : vector<1x256xf32>
    %cst_82 = arith.constant 9.99999974E-6 : f32
    %223 = vector.broadcast %cst_82 : f32 to vector<1x256xf32>
    %224 = arith.addf %222, %223 : vector<1x256xf32>
    %225 = math.rsqrt %224 : vector<1x256xf32>
    %226 = arith.mulf %210, %225 : vector<1x256xf32>
    %227 = vector.broadcast %226 : vector<1x256xf32> to vector<2x256xf32>
    %228 = arith.mulf %217, %227 : vector<2x256xf32>
    %229 = vector.broadcast %211 : vector<1x256xf32> to vector<2x256xf32>
    %230 = arith.addf %228, %229 : vector<2x256xf32>
    %cst_83 = arith.constant 0.000000e+00 : f32
    %231 = vector.broadcast %cst_83 : f32 to vector<2x256xf32>
    %232 = arith.maximumf %230, %231 : vector<2x256xf32>
    %233 = arith.truncf %232 : vector<2x256xf32> to vector<2x256xbf16>
    %c0_84 = arith.constant 0 : index
    %c0_85 = arith.constant 0 : index
    %234 = vector.load %arg5[%c0_84, %c0_85] : memref<256x10xbf16, #tpu.memory_space<vmem>>, vector<256x10xbf16>
    %cst_86 = arith.constant dense<0.000000e+00> : vector<2x10xf32>
    %235 = tpu.matmul %233, %234, %cst_86 {dimension_numbers = #tpu.dot_dimension_numbers<[1], [0], [0], [1], [0, 0, 1, 1], [], []>} : vector<2x256xbf16>, vector<256x10xbf16>, vector<2x10xf32> -> vector<2x10xf32>
    %c11 = arith.constant 11 : index
    %c0_87 = arith.constant 0 : index
    %236 = vector.load %arg6[%c11, %c0_87] : memref<12x256xf32, #tpu.memory_space<vmem>>, vector<1x10xf32>
    %237 = vector.broadcast %236 : vector<1x10xf32> to vector<2x10xf32>
    %238 = arith.addf %235, %237 : vector<2x10xf32>
    %c0_88 = arith.constant 0 : index
    %c0_89 = arith.constant 0 : index
    %239 = vector.load %arg8[%c0_88, %c0_89] : memref<2x10xf32, #tpu.memory_space<vmem>>, vector<2x10xf32>
    tpu.vector_store %arg8[%c0_88, %c0_89], %238 {strides = array<i32>} : memref<2x10xf32, #tpu.memory_space<vmem>>, vector<2x10xf32>,
    return
  }
}

</mosaic_0001>

<bundles_post_ra>
// kernel: forward.1
= control target key start
LH: loop header
LB: loop body
LE: loop exit
PB: predicated region body
PF: predicated region fallthrough
CT: control target
= control target key end

     0   :  { %13 = vsyncpa [#allocation4], 0  ;;  %s6156_s0 = inlined_call_operand.vmem [shape: f32[2,18,8], index: 0, kind: input, shape index: {}]   ;;  %s6157_s1 = inlined_call_operand.vmem [shape: bf16[88,256], index: 1, kind: input, shape index: {}]   ;;  %s6158_s2 = inlined_call_operand.hbm [shape: bf16[1408,256], index: 2, kind: input, shape index: {}]   ;;  %s6159_s3 = inlined_call_operand.hbm [shape: bf16[1408,256], index: 3, kind: input, shape index: {}]   ;;  %s6160_s4 = inlined_call_operand.vmem [shape: bf16[128,256], index: 4, kind: input, shape index: {}]   ;;  %s6161_s5 = inlined_call_operand.vmem [shape: bf16[256,10], index: 5, kind: input, shape index: {}]   ;;  %s6162_s6 = inlined_call_operand.hbm [shape: f32[12,256], index: 6, kind: input, shape index: {}]   ;;  %s6163_s7 = inlined_call_operand.hbm [shape: f32[2,128,128], index: 7, kind: input, shape index: {}]   ;;  %s6164_s8 = inlined_call_operand.hbm [shape: f32[2,10], index: 8, kind: output, shape index: {}]  }
   0x1   :  { %14 = vsyncpa [#allocation7], 0 }
   0x2   :  { %15 = vsyncpa [#allocation10], 0 }
   0x3   :  { %16 = vsyncpa [#allocation5], 0  ;;  %s5604_s27 = smov [#allocation6]   ;;  %s5605_s29 = smov [#allocation3]  }
   0x4   :  { %s38_s28 = sshll.u32 %s5604_s27, 4  ;;  %s26_s30 = sshll.u32 %s5605_s29, 4  ;;  %s39_s28 = int_to_ptr.vmem [resolvable:$true] %s38_s28  ;;  %s5671_s30 = int_to_ptr.vmem [resolvable:$true] %s26_s30 }
   0x5   :  { %s5486_s11 = scalar_lea.hbm %s6159_s3, 22528 }
   0x6   :  { %p5487_p0 = scmp.ne.s32.totalorder %s6159_s3, %s5486_s11  ;;  %p5490_p1 = scmp.lt.u32.totalorder %s5486_s11, %s6159_s3 }
   0x8   :  { %p5492_p2 = pnand %p5490_p1, %p5487_p0 }
   0xa   :  { %5495 = shalt.err (!%p5492_p2)
}
   0xb   :  { %s5496_s16 = scalar_lea.vmem %s39_s28, 22528  ;;  %p5501_p4 = scmp.lt.s32.totalorder %s39_s28, %s39_s28 }
   0xc   :  { %p5497_p3 = scmp.ne.s32.totalorder %s39_s28, %s5496_s16  ;;  %p5502_p5 = scmp.lt.s32.totalorder %s5496_s16, %s5496_s16 }
   0xe   :  { %p5503_p6 = por %p5502_p5, %p5501_p4 }
  0x10   :  { %p5504_p7 = pnand %p5503_p6, %p5497_p3 }
  0x12   :  { %5507 = shalt.err (!%p5504_p7)
}
  0x13   :  { %s5606_s17 = smov 128   ;;  %s5607_s18 = smov 8  }
  0x14   :  { %44 = dma.hbm_to_vmem [thread:$0]  %s6159_s3, 22528, %s39_s28, [#allocation7], %s5606_s17, %s5606_s17, %s5607_s18  }
  0x15   :  { %s5508_s23 = scalar_lea.hbm %s6158_s2, 22528 }
  0x16   :  { %p5509_p8 = scmp.ne.s32.totalorder %s6158_s2, %s5508_s23  ;;  %p5512_p9 = scmp.lt.u32.totalorder %s5508_s23, %s6158_s2 }
  0x18   :  { %p5514_p10 = pnand %p5512_p9, %p5509_p8 }
  0x1a   :  { %5517 = shalt.err (!%p5514_p10)
}
  0x1b   :  { %s5518_s29 = scalar_lea.vmem %s5671_s30, 22528  ;;  %p5523_p12 = scmp.lt.s32.totalorder %s5671_s30, %s5671_s30 }
  0x1c   :  { %p5519_p11 = scmp.ne.s32.totalorder %s5671_s30, %s5518_s29  ;;  %p5524_p13 = scmp.lt.s32.totalorder %s5518_s29, %s5518_s29 }
  0x1e   :  { %p5525_p0 = por %p5524_p13, %p5523_p12 }
  0x20   :  { %p5526_p1 = pnand %p5525_p0, %p5519_p11 }
  0x22   :  { %5529 = shalt.err (!%p5526_p1)
}
  0x23   :  { %32 = dma.hbm_to_vmem [thread:$0]  %s6158_s2, 22528, %s5671_s30, [#allocation4], %s5606_s17, %s5606_s17, %s5607_s18  }
  0x24   :  { %s5608_s9 = smov [#allocation8]   ;;  %s5530_s13 = scalar_lea.hbm %s6162_s6, 512 }
  0x25   :  { %s54_s10 = sshll.u32 %s5608_s9, 4  ;;  %p5531_p2 = scmp.ne.s32.totalorder %s6162_s6, %s5530_s13  ;;  %s55_s10 = int_to_ptr.vmem [resolvable:$true] %s54_s10 }
  0x26   :  { %p5534_p3 = scmp.lt.u32.totalorder %s5530_s13, %s6162_s6 }
  0x28   :  { %p5536_p4 = pnand %p5534_p3, %p5531_p2 }
  0x2a   :  { %5539 = shalt.err (!%p5536_p4)
}
  0x2b   :  { %s5540_s20 = scalar_lea.vmem %s55_s10, 512  ;;  %p5545_p6 = scmp.lt.s32.totalorder %s55_s10, %s55_s10 }
  0x2c   :  { %p5541_p5 = scmp.ne.s32.totalorder %s55_s10, %s5540_s20  ;;  %p5546_p7 = scmp.lt.s32.totalorder %s5540_s20, %s5540_s20 }
  0x2e   :  { %p5547_p8 = por %p5546_p7, %p5545_p6 }
  0x30   :  { %p5548_p9 = pnand %p5547_p8, %p5541_p5 }
  0x32   :  { %5551 = shalt.err (!%p5548_p9)
}
  0x33   :  { %s5609_s2 = smov 256   ;;  %s5610_s30 = smov 16  }
  0x34   :  { %60 = dma.hbm_to_vmem [thread:$0]  %s6162_s6, 512, %s55_s10, [#allocation7], %s5609_s2, %s5609_s2, %s5610_s30  }
  0x35   :  { %s5611_s23 = smov [#allocation9]   ;;  %s5552_s27 = scalar_lea.hbm %s6163_s7, 4096 }
  0x36   :  { %s66_s24 = sshll.u32 %s5611_s23, 4  ;;  %p5553_p10 = scmp.ne.s32.totalorder %s6163_s7, %s5552_s27  ;;  %s67_s24 = int_to_ptr.vmem [resolvable:$true] %s66_s24 }
  0x37   :  { %p5556_p11 = scmp.lt.u32.totalorder %s5552_s27, %s6163_s7 }
  0x39   :  { %p5558_p12 = pnand %p5556_p11, %p5553_p10 }
  0x3b   :  { %5561 = shalt.err (!%p5558_p12)
}
  0x3c   :  { %s5562_s11 = scalar_lea.vmem %s67_s24, 4096  ;;  %p5567_p0 = scmp.lt.s32.totalorder %s67_s24, %s67_s24 }
  0x3d   :  { %p5563_p13 = scmp.ne.s32.totalorder %s67_s24, %s5562_s11  ;;  %p5568_p1 = scmp.lt.s32.totalorder %s5562_s11, %s5562_s11 }
  0x3f   :  { %p5569_p2 = por %p5568_p1, %p5567_p0 }
  0x41   :  { %p5570_p3 = pnand %p5569_p2, %p5563_p13 }
  0x43   :  { %5573 = shalt.err (!%p5570_p3)
}
  0x44   :  { %72 = dma.hbm_to_vmem [thread:$0]  %s6163_s7, 4096, %s67_s24, [#allocation10], %s5606_s17, %s5606_s17, %s5607_s18  }
  0x45   :  { %5596 = dma.done.wait [#allocation4], 22528  }
  0x46   :  { %5597 = vsyncadd [#allocation4], 4294944768 }
  0x47   :  { %5598 = dma.done.wait [#allocation7], 23040  }
  0x48   :  { %5599 = vsyncadd [#allocation7], 4294944256 }
  0x49   :  { %5600 = dma.done.wait [#allocation10], 4096  }
  0x4a   :  { %5601 = vsyncadd [#allocation10], 4294963200  ;;  %vm96_vm0 = vcmask 1046528   ;;  %vm110_vm1 = vcmask 1044480   ;;  %vm103_vm2 = vcmask 1045504   ;;  %v5739_v0 = vld [vmem:[%s6156_s0] sm:$0xff] }
  0x4b   :  { %v5744_v1 = vld [vmem:[%s6156_s0 + $0x8] sm:$0xff]  ;;  %v5749_v2 = vld [vmem:[%s6156_s0 + $0x18] sm:$0xff]  ;;  %vm117_vm3 = vcmask 1043456   ;;  %vm124_vm4 = vcmask 1042432   ;;  %vm131_vm5 = vcmask 1041408   ;;  %v5754_v3 = vld [vmem:[%s6156_s0 + $0x20] sm:$0xff] }
  0x4c   :  { %v97_v4 = vrot.slane %v5739_v0, 1  ;;  %v98_v5 = vrot.slane %v5744_v1, 1  ;;  %v181_v6 = vrot.slane %v5749_v2, 1  ;;  %v111_v7 = vrot.slane %v5739_v0, 3  ;;  %v4891_v20 = vld [vmem:[%s6157_s1 + $0x4] ss:$8 sps:$4 sm:$0xff]  }
  0x4d   :  { %vm138_vm6 = vcmask 1040384   ;;  %v182_v8 = vrot.slane %v5754_v3, 1  ;;  %v112_v9 = vrot.slane %v5744_v1, 3  ;;  %v193_v10 = vrot.slane %v5749_v2, 3  ;;  %v4893_v21 = vld [vmem:[%s6157_s1] ss:$8 sps:$4 sm:$0xff]   ;;  %335 = vmatprep.subr.bf16.mxu0 %v4891_v20 }
  0x4e   :  { %v194_v11 = vrot.slane %v5754_v3, 3  ;;  %v99_v12 = vsel %vm96_vm0, %v97_v4, %v98_v5  ;;  %v104_v13 = vrot.slane %v5739_v0, 2  ;;  %v105_v14 = vrot.slane %v5744_v1, 2  ;;  %v4894_v26 = vld [vmem:[%s6157_s1 + $0x14] ss:$8 sps:$4 sm:$0xff]   ;;  %s5612_s25 = smov 24   ;;  %336 = vmatpush1.bf16.msra.mxu0 %v4893_v21 }
  0x4f   :  { %v187_v15 = vrot.slane %v5749_v2, 2  ;;  %v183_v16 = vsel %vm96_vm0, %v181_v6, %v182_v8  ;;  %v113_v17 = vsel %vm110_vm1, %v111_v7, %v112_v9  ;;  %v188_v19 = vrot.slane %v5754_v3, 2  ;;  %v88_v35 = vld [vmem:[%s6156_s0 + $0x10] sm:$0x3]  ;;  %v4035_v40 = vld [vmem:[%s6156_s0 + $0x28] sm:$0x3]  ;;  %337 = vmatprep.subr.bf16.mxu0 %v4894_v26 }
  0x50   :  { %v195_v18 = vsel %vm110_vm1, %v193_v10, %v194_v11  ;;  %v4841_v22 = vpack.i.bf16 %v183_v16, %v99_v12  ;;  %v106_v24 = vsel %vm103_vm2, %v104_v13, %v105_v14  ;;  %v118_v25 = vrot.slane %v5739_v0, 4  ;;  %v4896_v41 = vld [vmem:[%s6157_s1 + $0x10] ss:$8 sps:$4 sm:$0xff]   ;;  %v4897_v46 = vld [vmem:[%s6157_s1 + $0x24] ss:$8 sps:$4 sm:$0xff]   ;;  %s5613_s10 = smov 32  }
  0x51   :  { %v4851_v23 = vpack.i.bf16 %v195_v18, %v113_v17  ;;  %v189_v27 = vsel %vm103_vm2, %v187_v15, %v188_v19  ;;  %v119_v28 = vrot.slane %v5744_v1, 4  ;;  %v199_v29 = vrot.slane %v5749_v2, 4  ;;  %v4899_v51 = vld [vmem:[%s6157_s1 + $0x20] ss:$8 sps:$4 sm:$0xff]   ;;  %v4900_v56 = vld [vmem:[%s6157_s1 + $0x34] ss:$8 sps:$4 sm:$0xff]  }
  0x52   :  { %v200_v30 = vrot.slane %v5754_v3, 4  ;;  %4842 = vrot.lane.b32.xlu0 %v4841_v22, %s5607_s18  ;;  %v4846_v31 = vpack.i.bf16 %v189_v27, %v106_v24  ;;  %v125_v32 = vrot.slane %v5739_v0, 5  ;;  %v126_v33 = vrot.slane %v5744_v1, 5  ;;  %338 = vmatpush1.bf16.msra.mxu0 %v4896_v41  ;;  %v4902_v6 = vld [vmem:[%s6157_s1 + $0x30] ss:$8 sps:$4 sm:$0xff]   ;;  %s5614_s15 = smov 40  }
  0x53   :  { %4852 = vrot.lane.b32.xlu1 %v4851_v23, %s5612_s25  ;;  %v205_v34 = vrot.slane %v5749_v2, 5  ;;  %v120_v36 = vsel %vm117_vm3, %v118_v25, %v119_v28  ;;  %v206_v38 = vrot.slane %v5754_v3, 5  ;;  %v132_v39 = vrot.slane %v5739_v0, 6  ;;  %339 = vmatprep.subr.bf16.mxu0 %v4897_v46  ;;  %s5615_s7 = smov 48   ;;  %v4903_v15 = vld [vmem:[%s6157_s1 + $0x44] ss:$8 sps:$4 sm:$0xff]  }
  0x54   :  { %v201_v37 = vsel %vm117_vm3, %v199_v29, %v200_v30  ;;  %v127_v43 = vsel %vm124_vm4, %v125_v32, %v126_v33  ;;  %v133_v44 = vrot.slane %v5744_v1, 6  ;;  %v211_v45 = vrot.slane %v5749_v2, 6  ;;  %s5616_s22 = smov 56   ;;  %s5617_s23 = smov 64  }
  0x55   :  { %v4856_v42 = vpack.i.bf16 %v201_v37, %v120_v36  ;;  %v207_v47 = vsel %vm124_vm4, %v205_v34, %v206_v38  ;;  %v212_v48 = vrot.slane %v5754_v3, 6  ;;  %v139_v49 = vrot.slane %v5739_v0, 7  ;;  %s5619_s24 = smov 72   ;;  %s5620_s25 = smov 80  }
  0x56   :  { %v140_v50 = vrot.slane %v5744_v1, 7  ;;  %4847 = vrot.lane.b32.xlu0 %v4846_v31, %s5610_s30  ;;  %v4861_v52 = vpack.i.bf16 %v207_v47, %v127_v43  ;;  %v134_v53 = vsel %vm131_vm5, %v132_v39, %v133_v44  ;;  %v217_v54 = vrot.slane %v5749_v2, 7  ;;  %340 = vmatpush1.bf16.msra.mxu0 %v4899_v51 }
  0x57   :  { %4857 = vrot.lane.b32.xlu1 %v4856_v42, %s5613_s10  ;;  %v218_v55 = vrot.slane %v5754_v3, 7  ;;  %v213_v57 = vsel %vm131_vm5, %v211_v45, %v212_v48  ;;  %v149_v59 = vrot.slane %v88_v35, 1  ;;  %v227_v62 = vrot.slane %v4035_v40, 1  ;;  %341 = vmatprep.subr.bf16.mxu0 %v4900_v56 }
  0x58   :  { %v141_v58 = vsel %vm138_vm6, %v139_v49, %v140_v50  ;;  %v4866_v60 = vpack.i.bf16 %v213_v57, %v134_v53  ;;  %v154_v63 = vrot.slane %v88_v35, 2  ;;  %v232_v4 = vrot.slane %v4035_v40, 2 }
  0x59   :  { %v219_v61 = vsel %vm138_vm6, %v217_v54, %v218_v55  ;;  %v4876_v9 = vpack.i.bf16 %v5754_v3, %v5744_v1  ;;  %v150_v10 = vsel %vm96_vm0, %v98_v5, %v149_v59  ;;  %v228_v11 = vsel %vm96_vm0, %v182_v8, %v227_v62  ;;  %v258_v5 = vld [vmem:[%s6157_s1 + $0x50] sm:$0xff]  ;;  %v4905_v1 = vld [vmem:[%s6157_s1 + $0x40] ss:$8 sps:$4 sm:$0xff]  }
  0x5a   :  { %4862 = vrot.lane.b32.xlu0 %v4861_v52, %s5614_s15  ;;  %v4871_v7 = vpack.i.bf16 %v219_v61, %v141_v58  ;;  %v155_v12 = vsel %vm103_vm2, %v105_v14, %v154_v63  ;;  %v233_v13 = vsel %vm103_vm2, %v188_v19, %v232_v4  ;;  %v4881_v3 = vpack.i.bf16 %v228_v11, %v150_v10  ;;  %v390_v10 = vld [vmem:[#allocation9] sm:$0xff]  ;;  %v391_v11 = vld [vmem:[#allocation9 + $0x8] sm:$0xff] }
  0x5b   :  { %4867 = vrot.lane.b32.xlu1 %v4866_v60, %s5615_s7  ;;  %v4886_v8 = vpack.i.bf16 %v233_v13, %v155_v12  ;;  %342 = vmatpush1.bf16.msra.mxu0 %v4902_v6  ;;  %v5618_v14 = vmov 0   ;;  %v4047_v16 = vcombine.high %v258_v5, %v258_v5  ;;  %v4046_v17 = vcombine.low %v258_v5, %v258_v5  ;;  %v393_v5 = vld [vmem:[#allocation9 + $0x18] sm:$0xff] }
  0x5c   :  { %367 = vmatprep.mubr.bf16.mxu0 %v5618_v14  ;;  %343 = vmatprep.subr.bf16.mxu0 %v4903_v15  ;;  %vm159_vm7 = vcmask 64512   ;;  %vm161_vm8 = vcmask 130048   ;;  %vm163_vm9 = vcmask 195584   ;;  %vm165_vm10 = vcmask 261120   ;;  %v392_v15 = vld [vmem:[#allocation9 + $0x10] sm:$0xff] }
  0x5d   :  { %v330_v18 = vsel %vm117_vm3, %v4046_v17, 0  ;;  %vm167_vm11 = vcmask 326656   ;;  %vm169_vm12 = vcmask 392192   ;;  %vm171_vm13 = vcmask 457728   ;;  %v396_v17 = vld [vmem:[#allocation9 + $0x30] sm:$0xff] }
  0x5e   :  { %4872 = vrot.lane.b32.xlu0 %v4871_v7, %s5616_s22  ;;  %vm173_vm14 = vcmask 523264   ;;  %vm175_vm15 = vcmask 588800   ;;  %vm177_vm2 = vcmask 654336   ;;  %v4680_v12 = vpack.c.bf16 %v391_v11, %v390_v10  ;;  %v4917_v10 = vld [vmem:[#allocation3 + $0x30] ss:$8 sps:$4 sm:$0xff]  }
  0x5f   :  { %4877 = vrot.lane.b32.xlu1 %v4876_v9, %s5617_s23  ;;  %344 = vmatpush1.bf16.msra.mxu0 %v4905_v1  ;;  %v5621_v13 = vmov 0.0|0.0   ;;  %v4683_v1 = vpack.c.bf16 %v393_v5, %v392_v15  ;;  %v4922_v11 = vld [vmem:[#allocation3 + $0x44] ss:$8 sps:$4 sm:$0xff]   ;;  %v4925_v15 = vld [vmem:[#allocation3 + $0x54] ss:$8 sps:$4 sm:$0xff]  }
  0x60   :  { %4048 = vmatprep.subr.msk.bf16.mxu0 %vm117_vm3, %v4047_v16  ;;  %4679 = vmatprep.subr.bf16.mxu1 %v5621_v13  ;;  %v4923_v5 = vld [vmem:[#allocation3 + $0x50] ss:$8 sps:$4 sm:$0xff]  }
  0x61   :  { %4681 = vmatpush3.bf16.msra.mxu1 %v4680_v12 }
  0x62   :  { %4882 = vrot.lane.b32.xlu0 %v4881_v3, %s5619_s24  ;;  %4682 = vmatprep.subr.bf16.mxu1 %v5621_v13  ;;  %v394_v3 = vld [vmem:[#allocation9 + $0x20] sm:$0xff] }
  0x63   :  { %4887 = vrot.lane.b32.xlu1 %v4886_v8, %s5620_s25  ;;  %346 = vmatpush1.bf16.msra.mxu0 %v330_v18  ;;  %v395_v8 = vld [vmem:[#allocation9 + $0x28] sm:$0xff]  ;;  %v397_v18 = vld [vmem:[#allocation9 + $0x38] sm:$0xff] }
  0x64   :  { %4703 = vmatprep.subr.bf16.mxu0 %v5621_v13  ;;  %v4686_v16 = vpack.c.bf16 %v395_v8, %v394_v3  ;;  %v4926_v3 = vld [vmem:[#allocation3 + $0x60] ss:$8 sps:$4 sm:$0xff]   ;;  %v4931_v8 = vld [vmem:[#allocation3 + $0x74] ss:$8 sps:$4 sm:$0xff]  }
  0x65   :  { %4684 = vmatpush3.bf16.msra.mxu1 %v4683_v1 }
  0x66   :  { %4685 = vmatprep.subr.bf16.mxu1 %v5621_v13 }
  0x69   :  { %4687 = vmatpush3.bf16.msra.mxu1 %v4686_v16 }
  0x6a   :  { %4688 = vmatprep.subr.bf16.mxu1 %v5621_v13 }
  0xc4   :  { %v4843_v19 = vpop.permute.xlu0 %4842 }
  0xc5   :  { %v4853_v20 = vpop.permute.xlu1 %4852  ;;  %v4845_v21 = vunpack.i.h.bf16 %v4843_v19  ;;  %v4844_v22 = vunpack.i.l.bf16 %v4843_v19  ;;  %v398_v19 = vld [vmem:[#allocation9 + $0x40] sm:$0xff] }
  0xc6   :  { %v4855_v31 = vunpack.i.h.bf16 %v4853_v20  ;;  %v4854_v32 = vunpack.i.l.bf16 %v4853_v20  ;;  %v4689_v20 = vpack.c.bf16 %v397_v18, %v396_v17 }
  0xc7   :  { %v237_v29 = vsel %vm159_vm7, %v5749_v2, %v4845_v21  ;;  %v160_v30 = vsel %vm159_vm7, %v5739_v0, %v4844_v22  ;;  %vm325_vm7 = vcmask 719872   ;;  %v399_v21 = vld [vmem:[#allocation9 + $0x48] sm:$0xff]  ;;  %v5623_v22 = vmov 0.0  }
  0xc8   :  { %v4848_v23 = vpop.permute.xlu0 %4847  ;;  %4690 = vmatpush3.bf16.msra.mxu1 %v4689_v20 }
  0xc9   :  { %v4858_v24 = vpop.permute.xlu1 %4857  ;;  %v4850_v25 = vunpack.i.h.bf16 %v4848_v23  ;;  %v4849_v26 = vunpack.i.l.bf16 %v4848_v23  ;;  %v4692_v23 = vpack.c.bf16 %v399_v21, %v398_v19  ;;  %4691 = vmatprep.subr.bf16.mxu1 %v5621_v13 }
  0xca   :  { %v4860_v27 = vunpack.i.h.bf16 %v4858_v24  ;;  %v4859_v28 = vunpack.i.l.bf16 %v4858_v24  ;;  %v400_v24 = vld [vmem:[#allocation9 + $0x50] sm:$0xff] }
  0xcb   :  { %v162_v33 = vsel %vm161_vm8, %v160_v30, %v4849_v26  ;;  %v238_v34 = vsel %vm161_vm8, %v237_v29, %v4850_v25  ;;  %vm5622_vm8 = vmmov 0   ;;  %v401_v25 = vld [vmem:[#allocation9 + $0x58] sm:$0xff]  ;;  %v404_v30 = vld [vmem:[#allocation9 + $0x70] sm:$0xff] }
  0xcc   :  { %v164_v35 = vsel %vm163_vm9, %v162_v33, %v4854_v32  ;;  %v239_v36 = vsel %vm163_vm9, %v238_v34, %v4855_v31  ;;  %v4863_v37 = vpop.permute.xlu0 %4862  ;;  %4571 = vmatprep.mubr.msk.f32.mxu1 %vm5622_vm8, %v5623_v22  ;;  %4693 = vmatpush3.bf16.msra.mxu1 %v4692_v23  ;;  %v4695_v26 = vpack.c.bf16 %v401_v25, %v400_v24  ;;  %v405_v31 = vld [vmem:[#allocation9 + $0x78] sm:$0xff]  ;;  %v260_v33 = vlaneseq }
  0xcd   :  { %v4868_v38 = vpop.permute.xlu1 %4867  ;;  %v166_v39 = vsel %vm165_vm10, %v164_v35, %v4859_v28  ;;  %v240_v40 = vsel %vm165_vm10, %v239_v36, %v4860_v27  ;;  %v4865_v41 = vunpack.i.h.bf16 %v4863_v37  ;;  %v4864_v42 = vunpack.i.l.bf16 %v4863_v37  ;;  %4694 = vmatprep.subr.bf16.mxu1 %v5621_v13  ;;  %v402_v27 = vld [vmem:[#allocation9 + $0x60] sm:$0xff]  ;;  %v403_v28 = vld [vmem:[#allocation9 + $0x68] sm:$0xff] }
  0xce   :  { %v4870_v43 = vunpack.i.h.bf16 %v4868_v38  ;;  %v4869_v44 = vunpack.i.l.bf16 %v4868_v38  ;;  %v4698_v29 = vpack.c.bf16 %v403_v28, %v402_v27  ;;  %v4701_v32 = vpack.c.bf16 %v405_v31, %v404_v30  ;;  %v93_v36 = vld [vmem:[#allocation8] ss:$8 sm:$0x3]  ;;  %v4934_v30 = vld [vmem:[#allocation3 + $0x84] ss:$8 sps:$4 sm:$0xff]  }
  0xcf   :  { %v168_v2 = vsel %vm167_vm11, %v166_v39, %v4864_v42  ;;  %v241_v45 = vsel %vm167_vm11, %v240_v40, %v4865_v41  ;;  %v5896_v34 = vshrl.u32 %v260_v33, 7  ;;  %v4932_v31 = vld [vmem:[#allocation3 + $0x80] ss:$8 sps:$4 sm:$0xff]   ;;  %v4935_v33 = vld [vmem:[#allocation3 + $0x90] ss:$8 sps:$4 sm:$0xff]  }
  0xd0   :  { %v4873_v0 = vpop.permute.xlu0 %4872  ;;  %v170_v49 = vsel %vm169_vm12, %v168_v2, %v4869_v44  ;;  %v242_v50 = vsel %vm169_vm12, %v241_v45, %v4870_v43  ;;  %4696 = vmatpush3.bf16.msra.mxu1 %v4695_v26 }
  0xd1   :  { %v4878_v46 = vpop.permute.xlu1 %4877  ;;  %v4875_v47 = vunpack.i.h.bf16 %v4873_v0  ;;  %v4874_v48 = vunpack.i.l.bf16 %v4873_v0  ;;  %4697 = vmatprep.subr.bf16.mxu1 %v5621_v13  ;;  %v5899_v35 = vsub.s32 0, %v5896_v34  ;;  %v5902_v37 = vsub.s32 1, %v5896_v34 }
  0xd2   :  { %v4880_v51 = vunpack.i.h.bf16 %v4878_v46  ;;  %v4879_v52 = vunpack.i.l.bf16 %v4878_v46 }
  0xd3   :  { %v172_v53 = vsel %vm171_vm13, %v170_v49, %v4874_v48  ;;  %v243_v54 = vsel %vm171_vm13, %v242_v50, %v4875_v47  ;;  %v263_v38 = vrot.slane %v93_v36, %v5899_v35  ;;  %v267_v39 = vrot.slane %v93_v36, %v5902_v37  ;;  %v4940_v36 = vld [vmem:[#allocation3 + $0xa4] ss:$8 sps:$4 sm:$0xff]  }
  0xd4   :  { %v4883_v55 = vpop.permute.xlu0 %4882  ;;  %v174_v61 = vsel %vm173_vm14, %v172_v53, %v4879_v52  ;;  %v244_v62 = vsel %vm173_vm14, %v243_v54, %v4880_v51  ;;  %4699 = vmatpush3.bf16.msra.mxu1 %v4698_v29 }
  0xd5   :  { %v4888_v56 = vpop.permute.xlu1 %4887  ;;  %v4885_v57 = vunpack.i.h.bf16 %v4883_v55  ;;  %v4884_v58 = vunpack.i.l.bf16 %v4883_v55  ;;  %4700 = vmatprep.subr.bf16.mxu1 %v5621_v13 }
  0xd6   :  { %v4890_v59 = vunpack.i.h.bf16 %v4888_v56  ;;  %v4889_v60 = vunpack.i.l.bf16 %v4888_v56 }
  0xd7   :  { %v176_v63 = vsel %vm175_vm15, %v174_v61, %v4884_v58  ;;  %v245_v4 = vsel %vm175_vm15, %v244_v62, %v4885_v57  ;;  %v4908_v61 = vld [vmem:[#allocation3] ss:$8 sps:$4 sm:$0xff]   ;;  %v4910_v62 = vld [vmem:[#allocation3 + $0x4] ss:$8 sps:$4 sm:$0xff]  }
  0xd8   :  { %v178_v6 = vsel %vm177_vm2, %v176_v63, %v4889_v60  ;;  %v246_v7 = vsel %vm177_vm2, %v245_v4, %v4890_v59  ;;  %4702 = vmatpush3.bf16.msra.mxu1 %v4701_v32  ;;  %v4913_v63 = vld [vmem:[#allocation3 + $0x14] ss:$8 sps:$4 sm:$0xff]   ;;  %v4911_v4 = vld [vmem:[#allocation3 + $0x10] ss:$8 sps:$4 sm:$0xff]  }
  0xd9   :  { %v247_v9 = vpack.c.bf16 %v246_v7, %v178_v6  ;;  %1741 = vmatprep.subr.bf16.mxu1 %v4910_v62  ;;  %v4916_v6 = vld [vmem:[#allocation3 + $0x24] ss:$8 sps:$4 sm:$0xff]   ;;  %v4914_v7 = vld [vmem:[#allocation3 + $0x20] ss:$8 sps:$4 sm:$0xff]  }
  0xdb   :  { %4049 = vmatmul.mubr.msk.bf16.vlgmr.msra.gmra.mrb[0].mxu0 %vm325_vm7, %v247_v9  ;;  %v4919_v9 = vld [vmem:[#allocation3 + $0x34] ss:$8 sps:$4 sm:$0xff]  }
  0xdc   :  { %4705 = vmatpush3.bf16.msra.mxu0 %v4680_v12  ;;  %4606 = vmatprep.mubr.msk.f32.mxu0 %vm5622_vm8, %v5623_v22  ;;  %v4920_v12 = vld [vmem:[#allocation3 + $0x40] ss:$8 sps:$4 sm:$0xff]  }
  0xdd   :  { %4706 = vmatprep.subr.bf16.mxu0 %v5621_v13 }
  0xe0   :  { %4708 = vmatpush3.bf16.msra.mxu0 %v4683_v1  ;;  %v4928_v1 = vld [vmem:[#allocation3 + $0x64] ss:$8 sps:$4 sm:$0xff]  }
  0xe1   :  { %4709 = vmatprep.subr.bf16.mxu0 %v5621_v13 }
  0xe4   :  { %4711 = vmatpush3.bf16.msra.mxu0 %v4686_v16  ;;  %v4929_v16 = vld [vmem:[#allocation3 + $0x70] ss:$8 sps:$4 sm:$0xff]  }
  0xe5   :  { %4712 = vmatprep.subr.bf16.mxu0 %v5621_v13 }
  0xe8   :  { %4714 = vmatpush3.bf16.msra.mxu0 %v4689_v20 }
  0xe9   :  { %4715 = vmatprep.subr.bf16.mxu0 %v5621_v13 }
  0xec   :  { %4717 = vmatpush3.bf16.msra.mxu0 %v4692_v23 }
  0xed   :  { %4718 = vmatprep.subr.bf16.mxu0 %v5621_v13 }
  0xf0   :  { %4720 = vmatpush3.bf16.msra.mxu0 %v4695_v26 }
  0xf1   :  { %4721 = vmatprep.subr.bf16.mxu0 %v5621_v13 }
  0xf4   :  { %4723 = vmatpush3.bf16.msra.mxu0 %v4698_v29 }
  0xf5   :  { %4724 = vmatprep.subr.bf16.mxu0 %v5621_v13 }
  0xf8   :  { %4726 = vmatpush3.bf16.msra.mxu0 %v4701_v32  ;;  %v4937_v32 = vld [vmem:[#allocation3 + $0x94] ss:$8 sps:$4 sm:$0xff]  }
  0xf9   :  { %4727 = vmatprep.subr.bf16.mxu0 %v5621_v13 }
 0x1ae   :  { %v369_v40 = vpop.f32.mrb[0].mxu0 }
 0x1af   :  { %v370_v41 = vadd.f32 %v369_v40, %v263_v38  ;;  %v371_v42 = vpop.f32.mrb[1].mxu0  ;;  %v4941_v40 = vld [vmem:[#allocation3 + $0xb0] ss:$8 sps:$4 sm:$0xff]  }
 0x1b0   :  { %v372_v43 = vadd.f32 %v371_v42, %v267_v39  ;;  %v373_v44 = vpop.f32.mrb[2].mxu0  ;;  %v4944_v42 = vld [vmem:[#allocation3 + $0xc0] ss:$8 sps:$4 sm:$0xff]  }
 0x1b1   :  { %v378_v2 = vmax.f32 %v370_v41, 0.0  ;;  %v374_v45 = vadd.f32 %v373_v44, %v263_v38  ;;  %v375_v0 = vpop.f32.mrb[3].mxu0  ;;  %v4938_v38 = vld [vmem:[#allocation3 + $0xa0] ss:$8 sps:$4 sm:$0xff]   ;;  %v4946_v41 = vld [vmem:[#allocation3 + $0xc4] ss:$8 sps:$4 sm:$0xff]  }
 0x1b2   :  { %v379_v46 = vmax.f32 %v372_v43, 0.0  ;;  %v376_v47 = vadd.f32 %v375_v0, %v267_v39  ;;  %v4943_v39 = vld [vmem:[#allocation3 + $0xb4] ss:$8 sps:$4 sm:$0xff]   ;;  %v4947_v44 = vld [vmem:[#allocation3 + $0xd0] ss:$8 sps:$4 sm:$0xff]  }
 0x1b3   :  { %v380_v48 = vmax.f32 %v374_v45, 0.0  ;;  %v4949_v43 = vld [vmem:[#allocation3 + $0xd4] ss:$8 sps:$4 sm:$0xff]   ;;  %v4950_v45 = vld [vmem:[#allocation3 + $0xe0] ss:$8 sps:$4 sm:$0xff]  }
 0x1b4   :  { %v382_v49 = vmax.f32 %v378_v2, %v379_v46  ;;  %v381_v50 = vmax.f32 %v376_v47, 0.0  ;;  %v4952_v2 = vld [vmem:[#allocation3 + $0xe4] ss:$8 sps:$4 sm:$0xff]   ;;  %v4955_v0 = vld [vmem:[#allocation3 + $0xf4] ss:$8 sps:$4 sm:$0xff]  }
 0x1b5   :  { %v4953_v46 = vld [vmem:[#allocation3 + $0xf0] ss:$8 sps:$4 sm:$0xff]   ;;  %v4958_v47 = vld [vmem:[#allocation3 + $0x104] ss:$8 sps:$4 sm:$0xff]  }
 0x1b6   :  { %384 = vst [vmem:[#allocation2] sm:$0xff] %v382_v49  ;;  %v383_v51 = vmax.f32 %v380_v48, %v381_v50 }
 0x1b8   :  { %385 = vst [vmem:[#allocation2 + $0x8] sm:$0xff] %v383_v51 }
 0x1bf   :  { %v386_v52 = vld [vmem:[#allocation2] ss:$2 sm:$0xff]  ;;  %v388_v53 = vld [vmem:[#allocation2 + $0x1] ss:$2 sm:$0xff] }
 0x1c0   :  { %v389_v54 = vmax.f32 %v386_v52, %v388_v53  ;;  %v406_v52 = vld [vmem:[#allocation8 + $0x3] ss:$0 sm:$0xff] }
 0x1c2   :  { %v408_v55 = vrot.slane %v389_v54, 4 }
 0x1c4   :  { %v409_v56 = vadd.f32 %v408_v55, %v389_v54 }
 0x1c6   :  { %v410_v57 = vrot.slane %v409_v56, 2 }
 0x1c8   :  { %v411_v58 = vadd.f32 %v410_v57, %v409_v56  ;;  %v407_v56 = vld [vmem:[#allocation8 + $0x4] ss:$0 sm:$0xff] }
 0x1ca   :  { %v412_v59 = vrot.slane %v411_v58, 1 }
 0x1cc   :  { %v413_v60 = vadd.f32 %v412_v59, %v411_v58 }
 0x1ce   :  { %4572 = vmatmul.mubr.f32.vlgmr.msra.gmra.mrb[0].mxu1 %v413_v60 }
 0x1cf   :  { %1742 = vmatpush1.bf16.msra.mxu1 %v4908_v61 }
 0x1d0   :  { %1743 = vmatprep.subr.bf16.mxu1 %v4913_v63 }
 0x1d3   :  { %1744 = vmatpush1.bf16.msra.mxu1 %v4911_v4 }
 0x1d4   :  { %1745 = vmatprep.subr.bf16.mxu1 %v4916_v6 }
 0x1d7   :  { %1746 = vmatpush1.bf16.msra.mxu1 %v4914_v7 }
 0x1d8   :  { %1747 = vmatprep.subr.bf16.mxu1 %v4919_v9 }
 0x1db   :  { %1748 = vmatpush1.bf16.msra.mxu1 %v4917_v10 }
 0x1dc   :  { %1749 = vmatprep.subr.bf16.mxu1 %v4922_v11 }
 0x1df   :  { %1750 = vmatpush1.bf16.msra.mxu1 %v4920_v12 }
 0x1e0   :  { %1751 = vmatprep.subr.bf16.mxu1 %v4925_v15 }
 0x1e3   :  { %1752 = vmatpush1.bf16.msra.mxu1 %v4923_v5 }
 0x1e4   :  { %1753 = vmatprep.subr.bf16.mxu1 %v4928_v1 }
 0x1e7   :  { %1754 = vmatpush1.bf16.msra.mxu1 %v4926_v3 }
 0x1e8   :  { %1755 = vmatprep.subr.bf16.mxu1 %v4931_v8 }
 0x1eb   :  { %1756 = vmatpush1.bf16.msra.mxu1 %v4929_v16 }
 0x1ec   :  { %1757 = vmatprep.subr.bf16.mxu1 %v4934_v30 }
 0x1ef   :  { %1758 = vmatpush1.bf16.msra.mxu1 %v4932_v31 }
 0x1f0   :  { %1759 = vmatprep.subr.bf16.mxu1 %v4937_v32 }
 0x1f3   :  { %1760 = vmatpush1.bf16.msra.mxu1 %v4935_v33  ;;  %v4959_v33 = vld [vmem:[#allocation3 + $0x110] ss:$8 sps:$4 sm:$0xff]  }
 0x1f4   :  { %1761 = vmatprep.subr.bf16.mxu1 %v4940_v36 }
 0x1f7   :  { %1762 = vmatpush1.bf16.msra.mxu1 %v4938_v38 }
 0x1f8   :  { %1763 = vmatprep.subr.bf16.mxu1 %v4943_v39 }
 0x1fb   :  { %1764 = vmatpush1.bf16.msra.mxu1 %v4941_v40 }
 0x1fc   :  { %1765 = vmatprep.subr.bf16.mxu1 %v4946_v41  ;;  %v4964_v41 = vld [vmem:[#allocation3 + $0x124] ss:$8 sps:$4 sm:$0xff]  }
 0x1ff   :  { %1766 = vmatpush1.bf16.msra.mxu1 %v4944_v42 }
 0x200   :  { %1767 = vmatprep.subr.bf16.mxu1 %v4949_v43 }
 0x203   :  { %1768 = vmatpush1.bf16.msra.mxu1 %v4947_v44 }
 0x204   :  { %1769 = vmatprep.subr.bf16.mxu1 %v4952_v2 }
 0x207   :  { %1770 = vmatpush1.bf16.msra.mxu1 %v4950_v45 }
 0x208   :  { %1771 = vmatprep.subr.bf16.mxu1 %v4955_v0 }
 0x20b   :  { %1772 = vmatpush1.bf16.msra.mxu1 %v4953_v46 }
 0x20c   :  { %1782 = vmatprep.subr.bf16.mxu1 %v4958_v47 }
 0x2a1   :  { %v480_v17 = vpop.f32.mrb[0].mxu1 }
 0x2a2   :  { %v484_v18 = vmul.f32 0.03125, %v480_v17  ;;  %v4573_v19 = vpop.f32.mrb[1].mxu1 }
 0x2a4   :  { %v488_v20 = vrot.slane %v484_v18, %v5899_v35  ;;  %v4956_v18 = vld [vmem:[#allocation3 + $0x100] ss:$8 sps:$4 sm:$0xff]  }
 0x2a6   :  { %v489_v21 = vsub.f32 %v389_v54, %v488_v20 }
 0x2a8   :  { %v490_v23 = vmul.f32 %v489_v21, %v489_v21 }
 0x2aa   :  { %v491_v24 = vrot.slane %v490_v23, 4 }
 0x2ac   :  { %v492_v25 = vadd.f32 %v491_v24, %v490_v23  ;;  %v4961_v24 = vld [vmem:[#allocation3 + $0x114] ss:$8 sps:$4 sm:$0xff]  }
 0x2ae   :  { %v493_v26 = vrot.slane %v492_v25, 2 }
 0x2b0   :  { %v494_v27 = vadd.f32 %v493_v26, %v492_v25 }
 0x2b2   :  { %v495_v28 = vrot.slane %v494_v27, 1 }
 0x2b4   :  { %v496_v29 = vadd.f32 %v495_v28, %v494_v27 }
 0x2b6   :  { %4607 = vmatmul.mubr.f32.vlgmr.msra.gmra.mrb[4].mxu0 %v496_v29 }
 0x2b7   :  { %4641 = vmatprep.mubr.msk.f32.mxu0 %vm5622_vm8, %v5623_v22 }
 0x389   :  { %v563_v48 = vpop.f32.mrb[4].mxu0 }
 0x38a   :  { %v567_v49 = vmul.f32 0.03125, %v563_v48  ;;  %v4608_v50 = vpop.f32.mrb[5].mxu0  ;;  %v4962_v48 = vld [vmem:[#allocation3 + $0x120] ss:$8 sps:$4 sm:$0xff]  }
 0x38c   :  { %v568_v51 = vadd.f32 1e-05, %v567_v49 }
 0x38e   :  { %5476 = vrsqrt.f32 %v568_v51 }
 0x398   :  { %v5477_v53 = vpop.eup %5476 }
 0x399   :  { %v570_v54 = vmul.f32 %v5477_v53, %v406_v52  ;;  %v4967_v52 = vld [vmem:[#allocation3 + $0x134] ss:$8 sps:$4 sm:$0xff]  }
 0x39b   :  { %v574_v55 = vrot.slane %v570_v54, %v5899_v35 }
 0x39d   :  { %v575_v57 = vmul.f32 %v574_v55, %v489_v21 }
 0x39f   :  { %v576_v58 = vadd.f32 %v575_v57, %v407_v56  ;;  %v4965_v57 = vld [vmem:[#allocation3 + $0x130] ss:$8 sps:$4 sm:$0xff]  }
 0x3a1   :  { %v578_v59 = vrot.slane %v576_v58, 3  ;;  %v582_v60 = vrot.slane %v576_v58, 7  ;;  %v4970_v58 = vld [vmem:[#allocation3 + $0x144] ss:$8 sps:$4 sm:$0xff]  }
 0x3a3   :  { %v580_v61 = vsel %vm110_vm1, 0.0, %v578_v59  ;;  %v584_v62 = vsel %vm110_vm1, 0.0, %v582_v60  ;;  %v585_v63 = vsel %vm138_vm6, %v582_v60, 0.0  ;;  %v581_v4 = vsel %vm138_vm6, %v578_v59, 0.0  ;;  %v4968_v59 = vld [vmem:[#allocation3 + $0x140] ss:$8 sps:$4 sm:$0xff]  }
 0x3a4   :  { %v589_v6 = vrot.slane %v580_v61, 1  ;;  %v620_v7 = vrot.slane %v584_v62, 5  ;;  %v618_v9 = vrot.slane %v584_v62, 4  ;;  %v593_v10 = vrot.slane %v580_v61, 3  ;;  %v4973_v60 = vld [vmem:[#allocation3 + $0x154] ss:$8 sps:$4 sm:$0xff]  }
 0x3a5   :  { %v626_v11 = vrot.slane %v584_v62, 7  ;;  %v591_v12 = vrot.slane %v580_v61, 2  ;;  %v623_v15 = vrot.slane %v584_v62, 6  ;;  %v598_v5 = vrot.slane %v580_v61, 5  ;;  %v4976_v62 = vld [vmem:[#allocation3 + $0x164] ss:$8 sps:$4 sm:$0xff]  }
 0x3a6   :  { %v653_v1 = vsel %vm117_vm3, %v589_v6, %v620_v7  ;;  %v652_v3 = vsel %vm117_vm3, %v580_v61, %v618_v9  ;;  %v599_v8 = vrot.slane %v581_v4, 5  ;;  %v621_v16 = vrot.slane %v585_v63, 5  ;;  %v4977_v6 = vld [vmem:[#allocation3 + $0x170] ss:$8 sps:$4 sm:$0xff]  }
 0x3a7   :  { %v664_v17 = vpack.c.bf16 %v653_v1, %v653_v1  ;;  %v663_v19 = vpack.c.bf16 %v652_v3, %v652_v3  ;;  %v655_v20 = vsel %vm117_vm3, %v593_v10, %v626_v11  ;;  %v5918_v21 = vsel %vm117_vm3, %v591_v12, %v623_v15  ;;  %v4985_v10 = vld [vmem:[#allocation3 + $0x194] ss:$8 sps:$4 sm:$0xff]   ;;  %v4988_v12 = vld [vmem:[#allocation3 + $0x1a4] ss:$8 sps:$4 sm:$0xff]   ;;  %v4989_v1 = vld [vmem:[#allocation3 + $0x1b0] ss:$8 sps:$4 sm:$0xff]  }
 0x3a8   :  { %v666_v23 = vpack.c.bf16 %v655_v20, %v655_v20  ;;  %v600_v25 = vsel %vm124_vm4, %v598_v5, %v599_v8  ;;  %v622_v26 = vsel %vm124_vm4, %v620_v7, %v621_v16  ;;  %v595_v28 = vrot.slane %v580_v61, 4  ;;  %v4982_v7 = vld [vmem:[#allocation3 + $0x184] ss:$8 sps:$4 sm:$0xff]   ;;  %v4991_v5 = vld [vmem:[#allocation3 + $0x1b4] ss:$8 sps:$4 sm:$0xff]  }
 0x3a9   :  { %1773 = vmatprep.mubr.bf16.mxu1 %v664_v17  ;;  %v635_v27 = vrot.slane %v622_v26, 4  ;;  %v634_v29 = vrot.slane %v618_v9, 4  ;;  %v606_v30 = vrot.slane %v580_v61, 7  ;;  %v607_v31 = vrot.slane %v581_v4, 7  ;;  %v4980_v9 = vld [vmem:[#allocation3 + $0x180] ss:$8 sps:$4 sm:$0xff]  }
 0x3aa   :  { %1774 = vmatmul.mubr.bf16.vlgmr.msra.gmra.mrb[4].mxu1 %v663_v19  ;;  %v627_v32 = vrot.slane %v585_v63, 7  ;;  %v602_v39 = vrot.slane %v580_v61, 6  ;;  %v603_v40 = vrot.slane %v581_v4, 6  ;;  %v624_v45 = vrot.slane %v585_v63, 6  ;;  %v4971_v61 = vld [vmem:[#allocation3 + $0x150] ss:$8 sps:$4 sm:$0xff]  }
 0x3ab   :  { %1783 = vmatpush1.bf16.msra.mxu1 %v4956_v18  ;;  %1814 = vmatprep.mubr.bf16.mxu1 %v666_v23  ;;  %v5923_v36 = vsel %vm117_vm3, %v600_v25, %v635_v27  ;;  %v5926_v38 = vsel %vm117_vm3, %v595_v28, %v634_v29  ;;  %v608_v42 = vsel %vm138_vm6, %v606_v30, %v607_v31  ;;  %v610_v0 = vrot.slane %v581_v4, 1  ;;  %v4994_v3 = vld [vmem:[#allocation3 + $0x1c4] ss:$8 sps:$4 sm:$0xff]   ;;  %v4992_v8 = vld [vmem:[#allocation3 + $0x1c0] ss:$8 sps:$4 sm:$0xff]  }
 0x3ac   :  { %1784 = vmatprep.subr.bf16.mxu1 %v4961_v24  ;;  %v628_v43 = vsel %vm138_vm6, %v626_v11, %v627_v32  ;;  %v604_v2 = vsel %vm131_vm5, %v602_v39, %v603_v40  ;;  %v638_v46 = vrot.slane %v585_v63, 4  ;;  %v612_v47 = vrot.slane %v581_v4, 2  ;;  %v4974_v63 = vld [vmem:[#allocation3 + $0x160] ss:$8 sps:$4 sm:$0xff]   ;;  %v4983_v11 = vld [vmem:[#allocation3 + $0x190] ss:$8 sps:$4 sm:$0xff]  }
 0x3ad   :  { %v637_v44 = vrot.slane %v628_v43, 4  ;;  %v625_v50 = vsel %vm131_vm5, %v623_v15, %v624_v45  ;;  %v5936_v51 = vsel %vm117_vm3, %v610_v0, %v621_v16  ;;  %v4986_v15 = vld [vmem:[#allocation3 + $0x1a0] ss:$8 sps:$4 sm:$0xff]   ;;  %v4997_v16 = vld [vmem:[#allocation3 + $0x1d4] ss:$8 sps:$4 sm:$0xff]   ;;  %v665_v26 = vpack.c.bf16 %v5918_v21, %v5918_v21 }
 0x3ae   :  { %v636_v53 = vrot.slane %v625_v50, 4  ;;  %v5939_v54 = vsel %vm117_vm3, %v581_v4, %v638_v46  ;;  %v5942_v55 = vsel %vm117_vm3, %v612_v47, %v624_v45  ;;  %v4979_v4 = vld [vmem:[#allocation3 + $0x174] ss:$8 sps:$4 sm:$0xff]   ;;  %v4995_v17 = vld [vmem:[#allocation3 + $0x1d0] ss:$8 sps:$4 sm:$0xff]   ;;  %v668_v28 = vpack.c.bf16 %v5923_v36, %v5923_v36 }
 0x3af   :  { %1785 = vmatpush1.bf16.msra.mxu1 %v4959_v33  ;;  %v5932_v49 = vsel %vm117_vm3, %v608_v42, %v637_v44  ;;  %v5000_v18 = vld [vmem:[#allocation3 + $0x1e4] ss:$8 sps:$4 sm:$0xff]   ;;  %v4998_v19 = vld [vmem:[#allocation3 + $0x1e0] ss:$8 sps:$4 sm:$0xff]   ;;  %v5003_v20 = vld [vmem:[#allocation3 + $0x1f4] ss:$8 sps:$4 sm:$0xff]  }
 0x3b0   :  { %1786 = vmatprep.subr.bf16.mxu1 %v4964_v41  ;;  %v5945_v56 = vsel %vm117_vm3, %v604_v2, %v636_v53  ;;  %v5001_v23 = vld [vmem:[#allocation3 + $0x1f0] ss:$8 sps:$4 sm:$0xff]   ;;  %v5006_v24 = vld [vmem:[#allocation3 + $0x204] ss:$8 sps:$4 sm:$0xff]   ;;  %v5004_v25 = vld [vmem:[#allocation3 + $0x200] ss:$8 sps:$4 sm:$0xff]  }
 0x3b1   :  { %v5009_v27 = vld [vmem:[#allocation3 + $0x214] ss:$8 sps:$4 sm:$0xff]   ;;  %v5007_v29 = vld [vmem:[#allocation3 + $0x210] ss:$8 sps:$4 sm:$0xff]   ;;  %v5012_v30 = vld [vmem:[#allocation3 + $0x224] ss:$8 sps:$4 sm:$0xff]  }
 0x3b2   :  { %v5010_v31 = vld [vmem:[#allocation3 + $0x220] ss:$8 sps:$4 sm:$0xff]   ;;  %v5015_v32 = vld [vmem:[#allocation3 + $0x234] ss:$8 sps:$4 sm:$0xff]   ;;  %v5013_v33 = vld [vmem:[#allocation3 + $0x230] ss:$8 sps:$4 sm:$0xff]  }
 0x3b3   :  { %1787 = vmatpush1.bf16.msra.mxu1 %v4962_v48  ;;  %v5018_v39 = vld [vmem:[#allocation3 + $0x244] ss:$8 sps:$4 sm:$0xff]   ;;  %v5016_v21 = vld [vmem:[#allocation3 + $0x240] ss:$8 sps:$4 sm:$0xff]   ;;  %v5021_v40 = vld [vmem:[#allocation3 + $0x254] ss:$8 sps:$4 sm:$0xff]  }
 0x3b4   :  { %1788 = vmatprep.subr.bf16.mxu1 %v4967_v52  ;;  %v5019_v36 = vld [vmem:[#allocation3 + $0x250] ss:$8 sps:$4 sm:$0xff]   ;;  %v5024_v41 = vld [vmem:[#allocation3 + $0x264] ss:$8 sps:$4 sm:$0xff]   ;;  %v5022_v42 = vld [vmem:[#allocation3 + $0x260] ss:$8 sps:$4 sm:$0xff]  }
 0x3b5   :  { %v5027_v43 = vld [vmem:[#allocation3 + $0x274] ss:$8 sps:$4 sm:$0xff]   ;;  %v5025_v44 = vld [vmem:[#allocation3 + $0x270] ss:$8 sps:$4 sm:$0xff]   ;;  %v5030_v2 = vld [vmem:[#allocation3 + $0x284] ss:$8 sps:$4 sm:$0xff]  }
 0x3b6   :  { %v5028_v45 = vld [vmem:[#allocation3 + $0x280] ss:$8 sps:$4 sm:$0xff]   ;;  %v5033_v0 = vld [vmem:[#allocation3 + $0x294] ss:$8 sps:$4 sm:$0xff]   ;;  %v5031_v46 = vld [vmem:[#allocation3 + $0x290] ss:$8 sps:$4 sm:$0xff]  }
 0x3b7   :  { %1789 = vmatpush1.bf16.msra.mxu1 %v4965_v57  ;;  %v5036_v47 = vld [vmem:[#allocation3 + $0x2a4] ss:$8 sps:$4 sm:$0xff]   ;;  %v5034_v48 = vld [vmem:[#allocation3 + $0x2a0] ss:$8 sps:$4 sm:$0xff]   ;;  %v5039_v50 = vld [vmem:[#allocation3 + $0x2b4] ss:$8 sps:$4 sm:$0xff]  }
 0x3b8   :  { %1790 = vmatprep.subr.bf16.mxu1 %v4970_v58  ;;  %v5037_v52 = vld [vmem:[#allocation3 + $0x2b0] ss:$8 sps:$4 sm:$0xff]   ;;  %v5042_v53 = vld [vmem:[#allocation3 + $0x2c4] ss:$8 sps:$4 sm:$0xff]   ;;  %v5040_v57 = vld [vmem:[#allocation3 + $0x2c0] ss:$8 sps:$4 sm:$0xff]  }
 0x3b9   :  { %v5045_v58 = vld [vmem:[#allocation3 + $0x2d4] ss:$8 sps:$4 sm:$0xff]  }
 0x3bb   :  { %1791 = vmatpush1.bf16.msra.mxu1 %v4968_v59  ;;  %v5043_v59 = vld [vmem:[#allocation3 + $0x2d0] ss:$8 sps:$4 sm:$0xff]  }
 0x3bc   :  { %1792 = vmatprep.subr.bf16.mxu1 %v4973_v60  ;;  %v5048_v60 = vld [vmem:[#allocation3 + $0x2e4] ss:$8 sps:$4 sm:$0xff]  }
 0x3bf   :  { %1793 = vmatpush1.bf16.msra.mxu1 %v4971_v61  ;;  %v5046_v61 = vld [vmem:[#allocation3 + $0x2e0] ss:$8 sps:$4 sm:$0xff]  }
 0x3c0   :  { %1794 = vmatprep.subr.bf16.mxu1 %v4976_v62  ;;  %v5051_v62 = vld [vmem:[#allocation3 + $0x2f4] ss:$8 sps:$4 sm:$0xff]  }
 0x3c3   :  { %1795 = vmatpush1.bf16.msra.mxu1 %v4974_v63  ;;  %v5049_v63 = vld [vmem:[#allocation3 + $0x2f0] ss:$8 sps:$4 sm:$0xff]  }
 0x3c4   :  { %1796 = vmatprep.subr.bf16.mxu1 %v4979_v4  ;;  %v5054_v4 = vld [vmem:[#allocation3 + $0x304] ss:$8 sps:$4 sm:$0xff]  }
 0x3c7   :  { %1797 = vmatpush1.bf16.msra.mxu1 %v4977_v6  ;;  %v5052_v6 = vld [vmem:[#allocation3 + $0x300] ss:$8 sps:$4 sm:$0xff]  }
 0x3c8   :  { %1798 = vmatprep.subr.bf16.mxu1 %v4982_v7  ;;  %v667_v7 = vpack.c.bf16 %v5926_v38, %v5926_v38  ;;  %v5064_v38 = vld [vmem:[#allocation3 + $0x340] ss:$8 sps:$4 sm:$0xff]  }
 0x3cb   :  { %1799 = vmatpush1.bf16.msra.mxu1 %v4980_v9  ;;  %v5057_v9 = vld [vmem:[#allocation3 + $0x314] ss:$8 sps:$4 sm:$0xff]  }
 0x3cc   :  { %1800 = vmatprep.subr.bf16.mxu1 %v4985_v10  ;;  %v670_v10 = vpack.c.bf16 %v5932_v49, %v5932_v49  ;;  %v5067_v49 = vld [vmem:[#allocation3 + $0x350] ss:$8 sps:$4 sm:$0xff]  }
 0x3cf   :  { %1801 = vmatpush1.bf16.msra.mxu1 %v4983_v11  ;;  %v5055_v11 = vld [vmem:[#allocation3 + $0x310] ss:$8 sps:$4 sm:$0xff]  }
 0x3d0   :  { %1802 = vmatprep.subr.bf16.mxu1 %v4988_v12  ;;  %v5060_v12 = vld [vmem:[#allocation3 + $0x324] ss:$8 sps:$4 sm:$0xff]  }
 0x3d3   :  { %1803 = vmatpush1.bf16.msra.mxu1 %v4986_v15  ;;  %v5058_v15 = vld [vmem:[#allocation3 + $0x320] ss:$8 sps:$4 sm:$0xff]  }
 0x3d4   :  { %1804 = vmatprep.subr.bf16.mxu1 %v4991_v5  ;;  %v5063_v5 = vld [vmem:[#allocation3 + $0x334] ss:$8 sps:$4 sm:$0xff]  }
 0x3d7   :  { %1805 = vmatpush1.bf16.msra.mxu1 %v4989_v1  ;;  %v5061_v1 = vld [vmem:[#allocation3 + $0x330] ss:$8 sps:$4 sm:$0xff]  }
 0x3d8   :  { %1806 = vmatprep.subr.bf16.mxu1 %v4994_v3  ;;  %v5066_v3 = vld [vmem:[#allocation3 + $0x344] ss:$8 sps:$4 sm:$0xff]  }
 0x3db   :  { %1807 = vmatpush1.bf16.msra.mxu1 %v4992_v8  ;;  %v5069_v8 = vld [vmem:[#allocation3 + $0x354] ss:$8 sps:$4 sm:$0xff]  }
 0x3dc   :  { %1808 = vmatprep.subr.bf16.mxu1 %v4997_v16  ;;  %v5072_v16 = vld [vmem:[#allocation3 + $0x364] ss:$8 sps:$4 sm:$0xff]  }
 0x3df   :  { %1809 = vmatpush1.bf16.msra.mxu1 %v4995_v17  ;;  %v5070_v17 = vld [vmem:[#allocation3 + $0x360] ss:$8 sps:$4 sm:$0xff]  }
 0x3e0   :  { %1810 = vmatprep.subr.bf16.mxu1 %v5000_v18  ;;  %v5075_v18 = vld [vmem:[#allocation3 + $0x374] ss:$8 sps:$4 sm:$0xff]  }
 0x3e3   :  { %1811 = vmatpush1.bf16.msra.mxu1 %v4998_v19  ;;  %v5073_v19 = vld [vmem:[#allocation3 + $0x370] ss:$8 sps:$4 sm:$0xff]  }
 0x3e4   :  { %1812 = vmatprep.subr.bf16.mxu1 %v5003_v20  ;;  %v5078_v20 = vld [vmem:[#allocation3 + $0x384] ss:$8 sps:$4 sm:$0xff]  }
 0x3e7   :  { %1813 = vmatpush1.bf16.msra.mxu1 %v5001_v23  ;;  %v5076_v23 = vld [vmem:[#allocation3 + $0x380] ss:$8 sps:$4 sm:$0xff]  }
 0x3e8   :  { %1823 = vmatprep.subr.bf16.mxu1 %v5006_v24  ;;  %v5081_v24 = vld [vmem:[#allocation3 + $0x394] ss:$8 sps:$4 sm:$0xff]  }
 0x3ea   :  { %1815 = vmatmul.mubr.bf16.vlgmr.msra.gmra.mrb[4].mxu1 %v665_v26  ;;  %v5084_v26 = vld [vmem:[#allocation3 + $0x3a4] ss:$8 sps:$4 sm:$0xff]  }
 0x3eb   :  { %1824 = vmatpush1.bf16.msra.mxu1 %v5004_v25  ;;  %1855 = vmatprep.mubr.bf16.mxu1 %v668_v28  ;;  %v5079_v25 = vld [vmem:[#allocation3 + $0x390] ss:$8 sps:$4 sm:$0xff]   ;;  %v5087_v28 = vld [vmem:[#allocation3 + $0x3b4] ss:$8 sps:$4 sm:$0xff]  }
 0x3ec   :  { %1825 = vmatprep.subr.bf16.mxu1 %v5009_v27  ;;  %v5082_v27 = vld [vmem:[#allocation3 + $0x3a0] ss:$8 sps:$4 sm:$0xff]  }
 0x3ef   :  { %1826 = vmatpush1.bf16.msra.mxu1 %v5007_v29  ;;  %v5085_v29 = vld [vmem:[#allocation3 + $0x3b0] ss:$8 sps:$4 sm:$0xff]  }
 0x3f0   :  { %1827 = vmatprep.subr.bf16.mxu1 %v5012_v30  ;;  %v5090_v30 = vld [vmem:[#allocation3 + $0x3c4] ss:$8 sps:$4 sm:$0xff]  }
 0x3f3   :  { %1828 = vmatpush1.bf16.msra.mxu1 %v5010_v31  ;;  %v5088_v31 = vld [vmem:[#allocation3 + $0x3c0] ss:$8 sps:$4 sm:$0xff]  }
 0x3f4   :  { %1829 = vmatprep.subr.bf16.mxu1 %v5015_v32  ;;  %v5093_v32 = vld [vmem:[#allocation3 + $0x3d4] ss:$8 sps:$4 sm:$0xff]  }
 0x3f7   :  { %1830 = vmatpush1.bf16.msra.mxu1 %v5013_v33  ;;  %v5091_v33 = vld [vmem:[#allocation3 + $0x3d0] ss:$8 sps:$4 sm:$0xff]  }
 0x3f8   :  { %1831 = vmatprep.subr.bf16.mxu1 %v5018_v39  ;;  %v5096_v39 = vld [vmem:[#allocation3 + $0x3e4] ss:$8 sps:$4 sm:$0xff]  }
 0x3fb   :  { %1832 = vmatpush1.bf16.msra.mxu1 %v5016_v21  ;;  %v5094_v21 = vld [vmem:[#allocation3 + $0x3e0] ss:$8 sps:$4 sm:$0xff]  }
 0x3fc   :  { %1833 = vmatprep.subr.bf16.mxu1 %v5021_v40  ;;  %v5099_v40 = vld [vmem:[#allocation3 + $0x3f4] ss:$8 sps:$4 sm:$0xff]  }
 0x3ff   :  { %1834 = vmatpush1.bf16.msra.mxu1 %v5019_v36  ;;  %v5097_v36 = vld [vmem:[#allocation3 + $0x3f0] ss:$8 sps:$4 sm:$0xff]  }
 0x400   :  { %1835 = vmatprep.subr.bf16.mxu1 %v5024_v41  ;;  %v5102_v41 = vld [vmem:[#allocation3 + $0x404] ss:$8 sps:$4 sm:$0xff]  }
 0x403   :  { %1836 = vmatpush1.bf16.msra.mxu1 %v5022_v42  ;;  %v5100_v42 = vld [vmem:[#allocation3 + $0x400] ss:$8 sps:$4 sm:$0xff]  }
 0x404   :  { %1837 = vmatprep.subr.bf16.mxu1 %v5027_v43  ;;  %v669_v43 = vpack.c.bf16 %v5945_v56, %v5945_v56  ;;  %v5112_v56 = vld [vmem:[#allocation3 + $0x440] ss:$8 sps:$4 sm:$0xff]  }
 0x407   :  { %1838 = vmatpush1.bf16.msra.mxu1 %v5025_v44  ;;  %v5105_v44 = vld [vmem:[#allocation3 + $0x414] ss:$8 sps:$4 sm:$0xff]  }
 0x408   :  { %1839 = vmatprep.subr.bf16.mxu1 %v5030_v2  ;;  %v672_v2 = vpack.c.bf16 %v5936_v51, %v5936_v51  ;;  %v5115_v51 = vld [vmem:[#allocation3 + $0x450] ss:$8 sps:$4 sm:$0xff]  }
 0x40b   :  { %1840 = vmatpush1.bf16.msra.mxu1 %v5028_v45  ;;  %v5103_v45 = vld [vmem:[#allocation3 + $0x410] ss:$8 sps:$4 sm:$0xff]  }
 0x40c   :  { %1841 = vmatprep.subr.bf16.mxu1 %v5033_v0  ;;  %v5108_v0 = vld [vmem:[#allocation3 + $0x424] ss:$8 sps:$4 sm:$0xff]  }
 0x40f   :  { %1842 = vmatpush1.bf16.msra.mxu1 %v5031_v46  ;;  %v5106_v46 = vld [vmem:[#allocation3 + $0x420] ss:$8 sps:$4 sm:$0xff]  }
 0x410   :  { %1843 = vmatprep.subr.bf16.mxu1 %v5036_v47  ;;  %v5111_v47 = vld [vmem:[#allocation3 + $0x434] ss:$8 sps:$4 sm:$0xff]  }
 0x413   :  { %1844 = vmatpush1.bf16.msra.mxu1 %v5034_v48  ;;  %v5109_v48 = vld [vmem:[#allocation3 + $0x430] ss:$8 sps:$4 sm:$0xff]  }
 0x414   :  { %1845 = vmatprep.subr.bf16.mxu1 %v5039_v50  ;;  %v5114_v50 = vld [vmem:[#allocation3 + $0x444] ss:$8 sps:$4 sm:$0xff]  }
 0x417   :  { %1846 = vmatpush1.bf16.msra.mxu1 %v5037_v52  ;;  %v5117_v52 = vld [vmem:[#allocation3 + $0x454] ss:$8 sps:$4 sm:$0xff]  }
 0x418   :  { %1847 = vmatprep.subr.bf16.mxu1 %v5042_v53  ;;  %v5120_v53 = vld [vmem:[#allocation3 + $0x464] ss:$8 sps:$4 sm:$0xff]  }
 0x41b   :  { %1848 = vmatpush1.bf16.msra.mxu1 %v5040_v57  ;;  %v5118_v57 = vld [vmem:[#allocation3 + $0x460] ss:$8 sps:$4 sm:$0xff]  }
 0x41c   :  { %1849 = vmatprep.subr.bf16.mxu1 %v5045_v58  ;;  %v5123_v58 = vld [vmem:[#allocation3 + $0x474] ss:$8 sps:$4 sm:$0xff]  }
 0x41f   :  { %1850 = vmatpush1.bf16.msra.mxu1 %v5043_v59  ;;  %v5121_v59 = vld [vmem:[#allocation3 + $0x470] ss:$8 sps:$4 sm:$0xff]  }
 0x420   :  { %1851 = vmatprep.subr.bf16.mxu1 %v5048_v60  ;;  %v5126_v60 = vld [vmem:[#allocation3 + $0x484] ss:$8 sps:$4 sm:$0xff]  }
 0x423   :  { %1852 = vmatpush1.bf16.msra.mxu1 %v5046_v61  ;;  %v5124_v61 = vld [vmem:[#allocation3 + $0x480] ss:$8 sps:$4 sm:$0xff]  }
 0x424   :  { %1853 = vmatprep.subr.bf16.mxu1 %v5051_v62  ;;  %v5129_v62 = vld [vmem:[#allocation3 + $0x494] ss:$8 sps:$4 sm:$0xff]  }
 0x427   :  { %1854 = vmatpush1.bf16.msra.mxu1 %v5049_v63  ;;  %v5127_v63 = vld [vmem:[#allocation3 + $0x490] ss:$8 sps:$4 sm:$0xff]  }
 0x428   :  { %1864 = vmatprep.subr.bf16.mxu1 %v5054_v4  ;;  %v5132_v4 = vld [vmem:[#allocation3 + $0x4a4] ss:$8 sps:$4 sm:$0xff]  }
 0x42a   :  { %1856 = vmatmul.mubr.bf16.vlgmr.msra.gmra.mrb[4].mxu1 %v667_v7  ;;  %v5135_v7 = vld [vmem:[#allocation3 + $0x4b4] ss:$8 sps:$4 sm:$0xff]  }
 0x42b   :  { %1865 = vmatpush1.bf16.msra.mxu1 %v5052_v6  ;;  %1896 = vmatprep.mubr.bf16.mxu1 %v670_v10  ;;  %v5130_v6 = vld [vmem:[#allocation3 + $0x4a0] ss:$8 sps:$4 sm:$0xff]   ;;  %v5138_v10 = vld [vmem:[#allocation3 + $0x4c4] ss:$8 sps:$4 sm:$0xff]  }
 0x42c   :  { %1866 = vmatprep.subr.bf16.mxu1 %v5057_v9  ;;  %v5133_v9 = vld [vmem:[#allocation3 + $0x4b0] ss:$8 sps:$4 sm:$0xff]  }
 0x42f   :  { %1867 = vmatpush1.bf16.msra.mxu1 %v5055_v11  ;;  %v5136_v11 = vld [vmem:[#allocation3 + $0x4c0] ss:$8 sps:$4 sm:$0xff]  }
 0x430   :  { %1868 = vmatprep.subr.bf16.mxu1 %v5060_v12  ;;  %v5141_v12 = vld [vmem:[#allocation3 + $0x4d4] ss:$8 sps:$4 sm:$0xff]  }
 0x433   :  { %1869 = vmatpush1.bf16.msra.mxu1 %v5058_v15  ;;  %v5139_v15 = vld [vmem:[#allocation3 + $0x4d0] ss:$8 sps:$4 sm:$0xff]  }
 0x434   :  { %1870 = vmatprep.subr.bf16.mxu1 %v5063_v5  ;;  %v5144_v5 = vld [vmem:[#allocation3 + $0x4e4] ss:$8 sps:$4 sm:$0xff]  }
 0x437   :  { %1871 = vmatpush1.bf16.msra.mxu1 %v5061_v1  ;;  %v5142_v1 = vld [vmem:[#allocation3 + $0x4e0] ss:$8 sps:$4 sm:$0xff]  }
 0x438   :  { %1872 = vmatprep.subr.bf16.mxu1 %v5066_v3  ;;  %v5147_v3 = vld [vmem:[#allocation3 + $0x4f4] ss:$8 sps:$4 sm:$0xff]  }
 0x43b   :  { %1873 = vmatpush1.bf16.msra.mxu1 %v5064_v38  ;;  %v5145_v38 = vld [vmem:[#allocation3 + $0x4f0] ss:$8 sps:$4 sm:$0xff]  }
 0x43c   :  { %1874 = vmatprep.subr.bf16.mxu1 %v5069_v8  ;;  %v5150_v8 = vld [vmem:[#allocation3 + $0x504] ss:$8 sps:$4 sm:$0xff]  }
 0x43f   :  { %1875 = vmatpush1.bf16.msra.mxu1 %v5067_v49  ;;  %v5148_v49 = vld [vmem:[#allocation3 + $0x500] ss:$8 sps:$4 sm:$0xff]  }
 0x440   :  { %1876 = vmatprep.subr.bf16.mxu1 %v5072_v16  ;;  %v671_v16 = vpack.c.bf16 %v5939_v54, %v5939_v54  ;;  %v5165_v54 = vld [vmem:[#allocation3 + $0x554] ss:$8 sps:$4 sm:$0xff]  }
 0x443   :  { %1877 = vmatpush1.bf16.msra.mxu1 %v5070_v17  ;;  %v5153_v17 = vld [vmem:[#allocation3 + $0x514] ss:$8 sps:$4 sm:$0xff]  }
 0x444   :  { %1878 = vmatprep.subr.bf16.mxu1 %v5075_v18  ;;  %v5151_v18 = vld [vmem:[#allocation3 + $0x510] ss:$8 sps:$4 sm:$0xff]  }
 0x447   :  { %1879 = vmatpush1.bf16.msra.mxu1 %v5073_v19  ;;  %v5156_v19 = vld [vmem:[#allocation3 + $0x524] ss:$8 sps:$4 sm:$0xff]  }
 0x448   :  { %1880 = vmatprep.subr.bf16.mxu1 %v5078_v20  ;;  %v5154_v20 = vld [vmem:[#allocation3 + $0x520] ss:$8 sps:$4 sm:$0xff]  }
 0x44b   :  { %1881 = vmatpush1.bf16.msra.mxu1 %v5076_v23  ;;  %v5159_v23 = vld [vmem:[#allocation3 + $0x534] ss:$8 sps:$4 sm:$0xff]  }
 0x44c   :  { %1882 = vmatprep.subr.bf16.mxu1 %v5081_v24  ;;  %v5157_v24 = vld [vmem:[#allocation3 + $0x530] ss:$8 sps:$4 sm:$0xff]  }
 0x44f   :  { %1883 = vmatpush1.bf16.msra.mxu1 %v5079_v25  ;;  %v5162_v25 = vld [vmem:[#allocation3 + $0x544] ss:$8 sps:$4 sm:$0xff]  }
 0x450   :  { %1884 = vmatprep.subr.bf16.mxu1 %v5084_v26  ;;  %v5160_v26 = vld [vmem:[#allocation3 + $0x540] ss:$8 sps:$4 sm:$0xff]  }
 0x453   :  { %1885 = vmatpush1.bf16.msra.mxu1 %v5082_v27  ;;  %v5163_v27 = vld [vmem:[#allocation3 + $0x550] ss:$8 sps:$4 sm:$0xff]  }
 0x454   :  { %1886 = vmatprep.subr.bf16.mxu1 %v5087_v28  ;;  %v5168_v28 = vld [vmem:[#allocation3 + $0x564] ss:$8 sps:$4 sm:$0xff]  }
 0x457   :  { %1887 = vmatpush1.bf16.msra.mxu1 %v5085_v29  ;;  %v5166_v29 = vld [vmem:[#allocation3 + $0x560] ss:$8 sps:$4 sm:$0xff]  }
 0x458   :  { %1888 = vmatprep.subr.bf16.mxu1 %v5090_v30  ;;  %v5171_v30 = vld [vmem:[#allocation3 + $0x574] ss:$8 sps:$4 sm:$0xff]  }
 0x45b   :  { %1889 = vmatpush1.bf16.msra.mxu1 %v5088_v31  ;;  %v5169_v31 = vld [vmem:[#allocation3 + $0x570] ss:$8 sps:$4 sm:$0xff]  }
 0x45c   :  { %1890 = vmatprep.subr.bf16.mxu1 %v5093_v32  ;;  %v673_v32 = vpack.c.bf16 %v5942_v55, %v5942_v55  ;;  %v2002_v55 = vld [vmem:[#allocation9 + $0xb8] sm:$0xff] }
 0x45f   :  { %1891 = vmatpush1.bf16.msra.mxu1 %v5091_v33  ;;  %v1995_v33 = vld [vmem:[#allocation9 + $0x80] sm:$0xff] }
 0x460   :  { %1892 = vmatprep.subr.bf16.mxu1 %v5096_v39  ;;  %v1996_v39 = vld [vmem:[#allocation9 + $0x88] sm:$0xff] }
 0x463   :  { %1893 = vmatpush1.bf16.msra.mxu1 %v5094_v21  ;;  %v4728_v21 = vpack.c.bf16 %v1996_v39, %v1995_v33  ;;  %v5172_v33 = vld [vmem:[#allocation6] ss:$8 sps:$4 sm:$0xff]  }
 0x464   :  { %1894 = vmatprep.subr.bf16.mxu1 %v5099_v40  ;;  %v1997_v40 = vld [vmem:[#allocation9 + $0x90] sm:$0xff] }
 0x465   :  { %4729 = vmatpush3.bf16.msra.mxu0 %v4728_v21 }
 0x466   :  { %4730 = vmatprep.subr.bf16.mxu0 %v5621_v13 }
 0x467   :  { %1895 = vmatpush1.bf16.msra.mxu1 %v5097_v36  ;;  %v1998_v36 = vld [vmem:[#allocation9 + $0x98] sm:$0xff] }
 0x468   :  { %1905 = vmatprep.subr.bf16.mxu1 %v5102_v41  ;;  %v1999_v41 = vld [vmem:[#allocation9 + $0xa0] sm:$0xff] }
 0x46a   :  { %1897 = vmatmul.mubr.bf16.vlgmr.msra.gmra.mrb[4].mxu1 %v669_v43  ;;  %v2000_v43 = vld [vmem:[#allocation9 + $0xa8] sm:$0xff] }
 0x46b   :  { %1906 = vmatpush1.bf16.msra.mxu1 %v5100_v42  ;;  %1937 = vmatprep.mubr.bf16.mxu1 %v672_v2  ;;  %v4731_v42 = vpack.c.bf16 %v1998_v36, %v1997_v40  ;;  %v2001_v2 = vld [vmem:[#allocation9 + $0xb0] sm:$0xff]  ;;  %v5180_v36 = vld [vmem:[#allocation6 + $0x24] ss:$8 sps:$4 sm:$0xff]  }
 0x46c   :  { %1907 = vmatprep.subr.bf16.mxu1 %v5105_v44  ;;  %v4734_v44 = vpack.c.bf16 %v2000_v43, %v1999_v41  ;;  %v5175_v40 = vld [vmem:[#allocation6 + $0x10] ss:$8 sps:$4 sm:$0xff]   ;;  %v5178_v41 = vld [vmem:[#allocation6 + $0x20] ss:$8 sps:$4 sm:$0xff]  }
 0x46d   :  { %4732 = vmatpush3.bf16.msra.mxu0 %v4731_v42  ;;  %v5181_v43 = vld [vmem:[#allocation6 + $0x30] ss:$8 sps:$4 sm:$0xff]  }
 0x46e   :  { %4733 = vmatprep.subr.bf16.mxu0 %v5621_v13 }
 0x46f   :  { %1908 = vmatpush1.bf16.msra.mxu1 %v5103_v45  ;;  %v4737_v45 = vpack.c.bf16 %v2002_v55, %v2001_v2  ;;  %v5184_v2 = vld [vmem:[#allocation6 + $0x40] ss:$8 sps:$4 sm:$0xff]   ;;  %v5189_v55 = vld [vmem:[#allocation6 + $0x54] ss:$8 sps:$4 sm:$0xff]  }
 0x470   :  { %1909 = vmatprep.subr.bf16.mxu1 %v5108_v0  ;;  %v2003_v0 = vld [vmem:[#allocation9 + $0xc0] sm:$0xff] }
 0x471   :  { %4735 = vmatpush3.bf16.msra.mxu0 %v4734_v44 }
 0x472   :  { %4736 = vmatprep.subr.bf16.mxu0 %v5621_v13 }
 0x473   :  { %1910 = vmatpush1.bf16.msra.mxu1 %v5106_v46  ;;  %v2004_v46 = vld [vmem:[#allocation9 + $0xc8] sm:$0xff] }
 0x474   :  { %1911 = vmatprep.subr.bf16.mxu1 %v5111_v47  ;;  %v4740_v47 = vpack.c.bf16 %v2004_v46, %v2003_v0  ;;  %v5192_v0 = vld [vmem:[#allocation6 + $0x64] ss:$8 sps:$4 sm:$0xff]   ;;  %v5190_v46 = vld [vmem:[#allocation6 + $0x60] ss:$8 sps:$4 sm:$0xff]  }
 0x475   :  { %4738 = vmatpush3.bf16.msra.mxu0 %v4737_v45 }
 0x476   :  { %4739 = vmatprep.subr.bf16.mxu0 %v5621_v13 }
 0x477   :  { %1912 = vmatpush1.bf16.msra.mxu1 %v5109_v48  ;;  %v2005_v48 = vld [vmem:[#allocation9 + $0xd0] sm:$0xff] }
 0x478   :  { %1913 = vmatprep.subr.bf16.mxu1 %v5114_v50  ;;  %v2006_v50 = vld [vmem:[#allocation9 + $0xd8] sm:$0xff] }
 0x479   :  { %4741 = vmatpush3.bf16.msra.mxu0 %v4740_v47 }
 0x47a   :  { %4742 = vmatprep.subr.bf16.mxu0 %v5621_v13 }
 0x47b   :  { %1914 = vmatpush1.bf16.msra.mxu1 %v5112_v56  ;;  %v4743_v56 = vpack.c.bf16 %v2006_v50, %v2005_v48  ;;  %v5193_v48 = vld [vmem:[#allocation6 + $0x70] ss:$8 sps:$4 sm:$0xff]   ;;  %v5198_v50 = vld [vmem:[#allocation6 + $0x84] ss:$8 sps:$4 sm:$0xff]  }
 0x47c   :  { %1915 = vmatprep.subr.bf16.mxu1 %v5117_v52  ;;  %v2007_v52 = vld [vmem:[#allocation9 + $0xe0] sm:$0xff] }
 0x47d   :  { %4744 = vmatpush3.bf16.msra.mxu0 %v4743_v56 }
 0x47e   :  { %4745 = vmatprep.subr.bf16.mxu0 %v5621_v13 }
 0x47f   :  { %1916 = vmatpush1.bf16.msra.mxu1 %v5115_v51  ;;  %v2008_v51 = vld [vmem:[#allocation9 + $0xe8] sm:$0xff] }
 0x480   :  { %1917 = vmatprep.subr.bf16.mxu1 %v5120_v53  ;;  %v4746_v53 = vpack.c.bf16 %v2008_v51, %v2007_v52  ;;  %v5201_v52 = vld [vmem:[#allocation6 + $0x94] ss:$8 sps:$4 sm:$0xff]   ;;  %v5199_v51 = vld [vmem:[#allocation6 + $0x90] ss:$8 sps:$4 sm:$0xff]  }
 0x482   :  { %4747 = vmatpush3.bf16.msra.mxu0 %v4746_v53 }
 0x483   :  { %1918 = vmatpush1.bf16.msra.mxu1 %v5118_v57  ;;  %v2009_v57 = vld [vmem:[#allocation9 + $0xf0] sm:$0xff]  ;;  %4748 = vmatprep.subr.bf16.mxu0 %v5621_v13 }
 0x484   :  { %1919 = vmatprep.subr.bf16.mxu1 %v5123_v58  ;;  %v2010_v58 = vld [vmem:[#allocation9 + $0xf8] sm:$0xff] }
 0x487   :  { %1920 = vmatpush1.bf16.msra.mxu1 %v5121_v59  ;;  %v4749_v59 = vpack.c.bf16 %v2010_v58, %v2009_v57  ;;  %v5202_v57 = vld [vmem:[#allocation6 + $0xa0] ss:$8 sps:$4 sm:$0xff]   ;;  %v5207_v58 = vld [vmem:[#allocation6 + $0xb4] ss:$8 sps:$4 sm:$0xff]  }
 0x488   :  { %1921 = vmatprep.subr.bf16.mxu1 %v5126_v60  ;;  %v587_v60 = vld [vmem:[#allocation8 + $0x1] ss:$8 sm:$0x3] }
 0x489   :  { %4750 = vmatpush3.bf16.msra.mxu0 %v4749_v59 }
 0x48a   :  { %4751 = vmatprep.subr.bf16.mxu0 %v5621_v13 }
 0x48b   :  { %1922 = vmatpush1.bf16.msra.mxu1 %v5124_v61  ;;  %v854_v61 = vrot.slane %v587_v60, %v5899_v35 }
 0x48c   :  { %1923 = vmatprep.subr.bf16.mxu1 %v5129_v62  ;;  %v858_v62 = vrot.slane %v587_v60, %v5902_v37  ;;  %v5210_v60 = vld [vmem:[#allocation6 + $0xc4] ss:$8 sps:$4 sm:$0xff]  }
 0x48f   :  { %1924 = vmatpush1.bf16.msra.mxu1 %v5127_v63 }
 0x490   :  { %1925 = vmatprep.subr.bf16.mxu1 %v5132_v4 }
 0x493   :  { %1926 = vmatpush1.bf16.msra.mxu1 %v5130_v6 }
 0x494   :  { %1927 = vmatprep.subr.bf16.mxu1 %v5135_v7 }
 0x497   :  { %1928 = vmatpush1.bf16.msra.mxu1 %v5133_v9 }
 0x498   :  { %1929 = vmatprep.subr.bf16.mxu1 %v5138_v10 }
 0x49b   :  { %1930 = vmatpush1.bf16.msra.mxu1 %v5136_v11 }
 0x49c   :  { %1931 = vmatprep.subr.bf16.mxu1 %v5141_v12 }
 0x49f   :  { %1932 = vmatpush1.bf16.msra.mxu1 %v5139_v15 }
 0x4a0   :  { %1933 = vmatprep.subr.bf16.mxu1 %v5144_v5 }
 0x4a3   :  { %1934 = vmatpush1.bf16.msra.mxu1 %v5142_v1 }
 0x4a4   :  { %1935 = vmatprep.subr.bf16.mxu1 %v5147_v3 }
 0x4a7   :  { %1936 = vmatpush1.bf16.msra.mxu1 %v5145_v38 }
 0x4a8   :  { %1946 = vmatprep.subr.bf16.mxu1 %v5150_v8 }
 0x4aa   :  { %1938 = vmatmul.mubr.bf16.vlgmr.msra.gmra.mrb[4].mxu1 %v671_v16 }
 0x4ab   :  { %1947 = vmatpush1.bf16.msra.mxu1 %v5148_v49  ;;  %1978 = vmatprep.mubr.bf16.mxu1 %v5618_v14 }
 0x4ac   :  { %1948 = vmatprep.subr.bf16.mxu1 %v5153_v17 }
 0x4af   :  { %1949 = vmatpush1.bf16.msra.mxu1 %v5151_v18 }
 0x4b0   :  { %1950 = vmatprep.subr.bf16.mxu1 %v5156_v19 }
 0x4b3   :  { %1951 = vmatpush1.bf16.msra.mxu1 %v5154_v20  ;;  %v5174_v20 = vld [vmem:[#allocation6 + $0x4] ss:$8 sps:$4 sm:$0xff]  }
 0x4b4   :  { %1952 = vmatprep.subr.bf16.mxu1 %v5159_v23 }
 0x4b7   :  { %1953 = vmatpush1.bf16.msra.mxu1 %v5157_v24 }
 0x4b8   :  { %1954 = vmatprep.subr.bf16.mxu1 %v5162_v25 }
 0x4bb   :  { %1955 = vmatpush1.bf16.msra.mxu1 %v5160_v26 }
 0x4bc   :  { %1956 = vmatprep.subr.bf16.mxu1 %v5165_v54 }
 0x4bf   :  { %1957 = vmatpush1.bf16.msra.mxu1 %v5163_v27 }
 0x4c0   :  { %1958 = vmatprep.subr.bf16.mxu1 %v5168_v28 }
 0x4c3   :  { %1959 = vmatpush1.bf16.msra.mxu1 %v5166_v29 }
 0x4c4   :  { %1960 = vmatprep.subr.bf16.mxu1 %v5171_v30 }
 0x4c7   :  { %1961 = vmatpush1.bf16.msra.mxu1 %v5169_v31 }
 0x4ca   :  { %1979 = vmatmul.mubr.bf16.vlgmr.msra.gmra.mrb[4].mxu1 %v673_v32 }
 0x4cb   :  { %3743 = vmatprep.mubr.bf16.mxu1 %v5618_v14 }
 0x59d   :  { %v1980_v63 = vpop.f32.mrb[4].mxu1 }
 0x59e   :  { %v4775_v4 = vadd.f32 %v1980_v63, %v854_v61  ;;  %v1982_v6 = vpop.f32.mrb[5].mxu1  ;;  %v5208_v61 = vld [vmem:[#allocation6 + $0xc0] ss:$8 sps:$4 sm:$0xff]   ;;  %v5211_v63 = vld [vmem:[#allocation6 + $0xd0] ss:$8 sps:$4 sm:$0xff]  }
 0x59f   :  { %v4776_v7 = vadd.f32 %v1982_v6, %v858_v62  ;;  %v1984_v9 = vpop.f32.mrb[6].mxu1  ;;  %v5213_v62 = vld [vmem:[#allocation6 + $0xd4] ss:$8 sps:$4 sm:$0xff]   ;;  %v5214_v6 = vld [vmem:[#allocation6 + $0xe0] ss:$8 sps:$4 sm:$0xff]  }
 0x5a0   :  { %v1987_v10 = vmax.f32 %v4775_v4, 0.0  ;;  %v1985_v11 = vpop.f32.mrb[7].mxu1  ;;  %v5216_v4 = vld [vmem:[#allocation6 + $0xe4] ss:$8 sps:$4 sm:$0xff]   ;;  %v5217_v9 = vld [vmem:[#allocation6 + $0xf0] ss:$8 sps:$4 sm:$0xff]  }
 0x5a1   :  { %v1988_v12 = vmax.f32 %v4776_v7, 0.0  ;;  %v5219_v7 = vld [vmem:[#allocation6 + $0xf4] ss:$8 sps:$4 sm:$0xff]  }
 0x5a3   :  { %v1989_v15 = vmax.f32 %v1987_v10, %v1988_v12  ;;  %v5222_v10 = vld [vmem:[#allocation6 + $0x104] ss:$8 sps:$4 sm:$0xff]  }
 0x5a5   :  { %1990 = vst [vmem:[#allocation2] sm:$0xff] %v1989_v15 }
 0x5ac   :  { %v1991_v5 = vld [vmem:[#allocation2] ss:$2 sm:$0xf]  ;;  %v1992_v1 = vld [vmem:[#allocation2 + $0x1] ss:$2 sm:$0xf] }
 0x5ad   :  { %v1993_v3 = vmax.f32 %v1991_v5, %v1992_v1  ;;  %v2011_v1 = vld [vmem:[#allocation8 + $0x5] ss:$0 sm:$0xff] }
 0x5af   :  { %v2013_v38 = vsel %vm117_vm3, %v1993_v3, 0.0 }
 0x5b0   :  { %v2014_v8 = vrot.slane %v2013_v38, 4 }
 0x5b2   :  { %v2015_v49 = vadd.f32 %v2014_v8, %v2013_v38 }
 0x5b4   :  { %v2016_v16 = vrot.slane %v2015_v49, 2 }
 0x5b6   :  { %v2017_v17 = vadd.f32 %v2016_v16, %v2015_v49  ;;  %v2012_v49 = vld [vmem:[#allocation8 + $0x6] ss:$0 sm:$0xff] }
 0x5b8   :  { %v2018_v18 = vrot.slane %v2017_v17, 1 }
 0x5ba   :  { %v2019_v19 = vadd.f32 %v2018_v18, %v2017_v17 }
 0x5bc   :  { %4642 = vmatmul.mubr.f32.vlgmr.msra.gmra.mrb[6].mxu0 %v2019_v19 }
 0x5bd   :  { %4753 = vmatpush3.bf16.msra.mxu0 %v4728_v21  ;;  %4676 = vmatprep.mubr.msk.f32.mxu0 %vm5622_vm8, %v5623_v22  ;;  %v5177_v21 = vld [vmem:[#allocation6 + $0x14] ss:$8 sps:$4 sm:$0xff]  }
 0x5be   :  { %4754 = vmatprep.subr.bf16.mxu0 %v5621_v13 }
 0x5c1   :  { %4756 = vmatpush3.bf16.msra.mxu0 %v4731_v42  ;;  %v5183_v42 = vld [vmem:[#allocation6 + $0x34] ss:$8 sps:$4 sm:$0xff]  }
 0x5c2   :  { %4757 = vmatprep.subr.bf16.mxu0 %v5621_v13 }
 0x5c5   :  { %4759 = vmatpush3.bf16.msra.mxu0 %v4734_v44  ;;  %v5186_v44 = vld [vmem:[#allocation6 + $0x44] ss:$8 sps:$4 sm:$0xff]  }
 0x5c6   :  { %4760 = vmatprep.subr.bf16.mxu0 %v5621_v13 }
 0x5c9   :  { %4762 = vmatpush3.bf16.msra.mxu0 %v4737_v45  ;;  %v5187_v45 = vld [vmem:[#allocation6 + $0x50] ss:$8 sps:$4 sm:$0xff]  }
 0x5ca   :  { %4763 = vmatprep.subr.bf16.mxu0 %v5621_v13 }
 0x5cd   :  { %4765 = vmatpush3.bf16.msra.mxu0 %v4740_v47  ;;  %v5195_v47 = vld [vmem:[#allocation6 + $0x74] ss:$8 sps:$4 sm:$0xff]  }
 0x5ce   :  { %4766 = vmatprep.subr.bf16.mxu0 %v5621_v13 }
 0x5d1   :  { %4768 = vmatpush3.bf16.msra.mxu0 %v4743_v56  ;;  %v5196_v56 = vld [vmem:[#allocation6 + $0x80] ss:$8 sps:$4 sm:$0xff]  }
 0x5d2   :  { %4769 = vmatprep.subr.bf16.mxu0 %v5621_v13 }
 0x5d5   :  { %4771 = vmatpush3.bf16.msra.mxu0 %v4746_v53  ;;  %v5204_v53 = vld [vmem:[#allocation6 + $0xa4] ss:$8 sps:$4 sm:$0xff]  }
 0x5d6   :  { %4772 = vmatprep.subr.bf16.mxu0 %v5621_v13 }
 0x5d9   :  { %4774 = vmatpush3.bf16.msra.mxu0 %v4749_v59  ;;  %v5205_v59 = vld [vmem:[#allocation6 + $0xb0] ss:$8 sps:$4 sm:$0xff]  }
 0x5da   :  { %3336 = vmatprep.subr.bf16.mxu0 %v5174_v20 }
 0x68f   :  { %v2086_v23 = vpop.f32.mrb[6].mxu0 }
 0x690   :  { %v2090_v24 = vmul.f32 0.125, %v2086_v23  ;;  %v4643_v25 = vpop.f32.mrb[7].mxu0 }
 0x692   :  { %v2094_v26 = vrot.slane %v2090_v24, %v5899_v35 }
 0x694   :  { %v5986_v54 = vsub.f32 %v1993_v3, %v2094_v26  ;;  %v2210_v26 = vrot.slane %v5623_v22, 7 }
 0x696   :  { %v2096_v27 = vmul.f32 %v5986_v54, %v5986_v54 }
 0x698   :  { %v2097_v28 = vsel %vm117_vm3, %v2096_v27, 0.0  ;;  %vm4014_vm3 = vcmask 74752  }
 0x699   :  { %v2098_v29 = vrot.slane %v2097_v28, 4 }
 0x69b   :  { %v2099_v30 = vadd.f32 %v2098_v29, %v2097_v28 }
 0x69d   :  { %v2100_v31 = vrot.slane %v2099_v30, 2 }
 0x69f   :  { %v2101_v32 = vadd.f32 %v2100_v31, %v2099_v30 }
 0x6a1   :  { %v2102_v13 = vrot.slane %v2101_v32, 1 }
 0x6a3   :  { %v2103_v39 = vadd.f32 %v2102_v13, %v2101_v32 }
 0x6a5   :  { %4677 = vmatmul.mubr.f32.vlgmr.msra.gmra.mrb[8].mxu0 %v2103_v39 }
 0x6a6   :  { %3337 = vmatpush1.bf16.msra.mxu0 %v5172_v33 }
 0x6a7   :  { %3338 = vmatprep.subr.bf16.mxu0 %v5177_v21 }
 0x6aa   :  { %3339 = vmatpush1.bf16.msra.mxu0 %v5175_v40 }
 0x6ab   :  { %3340 = vmatprep.subr.bf16.mxu0 %v5180_v36 }
 0x6ae   :  { %3341 = vmatpush1.bf16.msra.mxu0 %v5178_v41  ;;  %v5220_v41 = vld [vmem:[#allocation6 + $0x100] ss:$8 sps:$4 sm:$0xff]  }
 0x6af   :  { %3342 = vmatprep.subr.bf16.mxu0 %v5183_v42 }
 0x6b2   :  { %3343 = vmatpush1.bf16.msra.mxu0 %v5181_v43 }
 0x6b3   :  { %3344 = vmatprep.subr.bf16.mxu0 %v5186_v44 }
 0x6b6   :  { %3345 = vmatpush1.bf16.msra.mxu0 %v5184_v2  ;;  %v5225_v2 = vld [vmem:[#allocation6 + $0x114] ss:$8 sps:$4 sm:$0xff]  }
 0x6b7   :  { %3346 = vmatprep.subr.bf16.mxu0 %v5189_v55 }
 0x6ba   :  { %3347 = vmatpush1.bf16.msra.mxu0 %v5187_v45 }
 0x6bb   :  { %3348 = vmatprep.subr.bf16.mxu0 %v5192_v0 }
 0x6be   :  { %3349 = vmatpush1.bf16.msra.mxu0 %v5190_v46 }
 0x6bf   :  { %3350 = vmatprep.subr.bf16.mxu0 %v5195_v47 }
 0x6c2   :  { %3351 = vmatpush1.bf16.msra.mxu0 %v5193_v48 }
 0x6c3   :  { %3352 = vmatprep.subr.bf16.mxu0 %v5198_v50  ;;  %v5223_v50 = vld [vmem:[#allocation6 + $0x110] ss:$8 sps:$4 sm:$0xff]  }
 0x6c6   :  { %3353 = vmatpush1.bf16.msra.mxu0 %v5196_v56 }
 0x6c7   :  { %3354 = vmatprep.subr.bf16.mxu0 %v5201_v52 }
 0x6ca   :  { %3355 = vmatpush1.bf16.msra.mxu0 %v5199_v51 }
 0x6cb   :  { %3356 = vmatprep.subr.bf16.mxu0 %v5204_v53  ;;  %v5228_v53 = vld [vmem:[#allocation6 + $0x124] ss:$8 sps:$4 sm:$0xff]  }
 0x6ce   :  { %3357 = vmatpush1.bf16.msra.mxu0 %v5202_v57 }
 0x6cf   :  { %3358 = vmatprep.subr.bf16.mxu0 %v5207_v58 }
 0x6d2   :  { %3359 = vmatpush1.bf16.msra.mxu0 %v5205_v59  ;;  %v5226_v59 = vld [vmem:[#allocation6 + $0x120] ss:$8 sps:$4 sm:$0xff]  }
 0x6d3   :  { %3360 = vmatprep.subr.bf16.mxu0 %v5210_v60  ;;  %v5231_v60 = vld [vmem:[#allocation6 + $0x134] ss:$8 sps:$4 sm:$0xff]  }
 0x6d6   :  { %3361 = vmatpush1.bf16.msra.mxu0 %v5208_v61  ;;  %v5229_v61 = vld [vmem:[#allocation6 + $0x130] ss:$8 sps:$4 sm:$0xff]  }
 0x6d7   :  { %3362 = vmatprep.subr.bf16.mxu0 %v5213_v62  ;;  %v5234_v62 = vld [vmem:[#allocation6 + $0x144] ss:$8 sps:$4 sm:$0xff]  }
 0x6da   :  { %3363 = vmatpush1.bf16.msra.mxu0 %v5211_v63  ;;  %v5232_v63 = vld [vmem:[#allocation6 + $0x140] ss:$8 sps:$4 sm:$0xff]  }
 0x6db   :  { %3364 = vmatprep.subr.bf16.mxu0 %v5216_v4  ;;  %v5237_v4 = vld [vmem:[#allocation6 + $0x154] ss:$8 sps:$4 sm:$0xff]  }
 0x6de   :  { %3365 = vmatpush1.bf16.msra.mxu0 %v5214_v6  ;;  %v5235_v6 = vld [vmem:[#allocation6 + $0x150] ss:$8 sps:$4 sm:$0xff]  }
 0x6df   :  { %3366 = vmatprep.subr.bf16.mxu0 %v5219_v7  ;;  %v5240_v7 = vld [vmem:[#allocation6 + $0x164] ss:$8 sps:$4 sm:$0xff]  }
 0x6e2   :  { %3367 = vmatpush1.bf16.msra.mxu0 %v5217_v9  ;;  %v5238_v9 = vld [vmem:[#allocation6 + $0x160] ss:$8 sps:$4 sm:$0xff]  }
 0x6e3   :  { %3377 = vmatprep.subr.bf16.mxu0 %v5222_v10  ;;  %v5243_v10 = vld [vmem:[#allocation6 + $0x174] ss:$8 sps:$4 sm:$0xff]  }
 0x778   :  { %v2170_v11 = vpop.f32.mrb[8].mxu0 }
 0x779   :  { %v2174_v12 = vmul.f32 0.125, %v2170_v11  ;;  %v4678_v15 = vpop.f32.mrb[9].mxu0  ;;  %v5241_v11 = vld [vmem:[#allocation6 + $0x170] ss:$8 sps:$4 sm:$0xff]  }
 0x77a   :  { %v5244_v15 = vld [vmem:[#allocation6 + $0x180] ss:$8 sps:$4 sm:$0xff]  }
 0x77b   :  { %v2175_v5 = vadd.f32 1e-05, %v2174_v12  ;;  %v5246_v12 = vld [vmem:[#allocation6 + $0x184] ss:$8 sps:$4 sm:$0xff]  }
 0x77d   :  { %5478 = vrsqrt.f32 %v2175_v5  ;;  %v5249_v5 = vld [vmem:[#allocation6 + $0x194] ss:$8 sps:$4 sm:$0xff]  }
 0x787   :  { %v5479_v3 = vpop.eup %5478 }
 0x788   :  { %v2177_v38 = vmul.f32 %v5479_v3, %v2011_v1  ;;  %v5247_v1 = vld [vmem:[#allocation6 + $0x190] ss:$8 sps:$4 sm:$0xff]   ;;  %v5252_v3 = vld [vmem:[#allocation6 + $0x1a4] ss:$8 sps:$4 sm:$0xff]  }
 0x78a   :  { %v2181_v8 = vrot.slane %v2177_v38, %v5899_v35  ;;  %v5250_v38 = vld [vmem:[#allocation6 + $0x1a0] ss:$8 sps:$4 sm:$0xff]  }
 0x78c   :  { %v2182_v16 = vmul.f32 %v2181_v8, %v5986_v54  ;;  %v5255_v8 = vld [vmem:[#allocation6 + $0x1b4] ss:$8 sps:$4 sm:$0xff]  }
 0x78e   :  { %v2183_v17 = vadd.f32 %v2182_v16, %v2012_v49  ;;  %v5253_v49 = vld [vmem:[#allocation6 + $0x1b0] ss:$8 sps:$4 sm:$0xff]   ;;  %v5258_v16 = vld [vmem:[#allocation6 + $0x1c4] ss:$8 sps:$4 sm:$0xff]  }
 0x790   :  { %v2185_v18 = vrot.slane %v2183_v17, 3  ;;  %v2189_v19 = vrot.slane %v2183_v17, 5  ;;  %v5256_v17 = vld [vmem:[#allocation6 + $0x1c0] ss:$8 sps:$4 sm:$0xff]  }
 0x792   :  { %v2187_v20 = vsel %vm110_vm1, 0.0, %v2185_v18  ;;  %v2191_v23 = vsel %vm110_vm1, 0.0, %v2189_v19  ;;  %v5261_v18 = vld [vmem:[#allocation6 + $0x1d4] ss:$8 sps:$4 sm:$0xff]   ;;  %v5259_v19 = vld [vmem:[#allocation6 + $0x1d0] ss:$8 sps:$4 sm:$0xff]  }
 0x793   :  { %v2188_v24 = vsel %vm96_vm0, %v2187_v20, 0.0  ;;  %v2192_v25 = vsel %vm96_vm0, %v2191_v23, 0.0  ;;  %v5264_v20 = vld [vmem:[#allocation6 + $0x1e4] ss:$8 sps:$4 sm:$0xff]   ;;  %v5262_v23 = vld [vmem:[#allocation6 + $0x1e0] ss:$8 sps:$4 sm:$0xff]   ;;  %vm4412_vm0 = vmneg %vm131_vm5 }
 0x794   :  { %v2196_v27 = vrot.slane %v2188_v24, 1  ;;  %v2224_v28 = vrot.slane %v2192_v25, 7  ;;  %v2223_v29 = vrot.slane %v2192_v25, 6  ;;  %v2200_v30 = vrot.slane %v2188_v24, 3  ;;  %vm4414_vm1 = vmpackc.low %vm4412_vm0, %vm4412_vm0 }
 0x795   :  { %v4233_v31 = vrot.slane %v2192_v25, 9  ;;  %v2198_v32 = vrot.slane %v2188_v24, 2  ;;  %v2204_v54 = vrot.slane %v2188_v24, 5  ;;  %v4235_v13 = vrot.slane %v2192_v25, 11 }
 0x796   :  { %v2248_v33 = vsel %vm131_vm5, %v2196_v27, %v2224_v28  ;;  %v2247_v39 = vsel %vm131_vm5, %v2188_v24, %v2223_v29  ;;  %v2202_v21 = vrot.slane %v2188_v24, 4  ;;  %v4234_v40 = vrot.slane %v2192_v25, 10  ;;  %v5268_v27 = vld [vmem:[#allocation6 + $0x200] ss:$8 sps:$4 sm:$0xff]  }
 0x797   :  { %v2259_v36 = vpack.c.bf16 %v2248_v33, %v2248_v33  ;;  %v2258_v42 = vpack.c.bf16 %v2247_v39, %v2247_v39  ;;  %v2250_v43 = vsel %vm131_vm5, %v2200_v30, %v4233_v31  ;;  %v6002_v44 = vsel %vm131_vm5, %v2198_v32, %v2192_v25  ;;  %v5265_v25 = vld [vmem:[#allocation6 + $0x1f0] ss:$8 sps:$4 sm:$0xff]   ;;  %v5276_v32 = vld [vmem:[#allocation6 + $0x224] ss:$8 sps:$4 sm:$0xff]  }
 0x798   :  { %v6005_v55 = vsel %vm131_vm5, %v2204_v54, %v4235_v13  ;;  %v6008_v45 = vsel %vm131_vm5, %v2202_v21, %v4234_v40  ;;  %v2261_v0 = vpack.c.bf16 %v2250_v43, %v2250_v43  ;;  %v2209_v46 = vrot.slane %v2188_v24, 7  ;;  %v5271_v31 = vld [vmem:[#allocation6 + $0x210] ss:$8 sps:$4 sm:$0xff]   ;;  %v5274_v54 = vld [vmem:[#allocation6 + $0x220] ss:$8 sps:$4 sm:$0xff]  }
 0x799   :  { %3368 = vmatprep.mubr.bf16.mxu0 %v2259_v36  ;;  %v2225_v47 = vsel %vm138_vm6, %v2224_v28, %v2210_v26  ;;  %v2206_v52 = vrot.slane %v2188_v24, 6  ;;  %v2231_v51 = vrot.slane %v2223_v29, 6  ;;  %v5267_v24 = vld [vmem:[#allocation6 + $0x1f4] ss:$8 sps:$4 sm:$0xff]   ;;  %v2260_v28 = vpack.c.bf16 %v6002_v44, %v6002_v44  ;;  %v5277_v33 = vld [vmem:[#allocation6 + $0x230] ss:$8 sps:$4 sm:$0xff]  }
 0x79a   :  { %3369 = vmatmul.mubr.bf16.vlgmr.msra.gmra.mrb[12].mxu0 %v2258_v42  ;;  %v2232_v48 = vrot.slane %v2225_v47, 6  ;;  %v2211_v56 = vsel %vm138_vm6, %v2209_v46, %v2210_v26  ;;  %v5270_v26 = vld [vmem:[#allocation6 + $0x204] ss:$8 sps:$4 sm:$0xff]   ;;  %v5273_v29 = vld [vmem:[#allocation6 + $0x214] ss:$8 sps:$4 sm:$0xff]   ;;  %v2263_v30 = vpack.c.bf16 %v6005_v55, %v6005_v55 }
 0x79b   :  { %3378 = vmatpush1.bf16.msra.mxu0 %v5220_v41  ;;  %3409 = vmatprep.mubr.bf16.mxu0 %v2261_v0  ;;  %v6016_v58 = vsel %vm131_vm5, %v2206_v52, %v2231_v51  ;;  %v5279_v13 = vld [vmem:[#allocation6 + $0x234] ss:$8 sps:$4 sm:$0xff]   ;;  %v5282_v39 = vld [vmem:[#allocation6 + $0x244] ss:$8 sps:$4 sm:$0xff]   ;;  %v5280_v21 = vld [vmem:[#allocation6 + $0x240] ss:$8 sps:$4 sm:$0xff]  }
 0x79c   :  { %3379 = vmatprep.subr.bf16.mxu0 %v5225_v2  ;;  %v6013_v57 = vsel %vm131_vm5, %v2211_v56, %v2232_v48  ;;  %v5285_v40 = vld [vmem:[#allocation6 + $0x254] ss:$8 sps:$4 sm:$0xff]   ;;  %v5283_v36 = vld [vmem:[#allocation6 + $0x250] ss:$8 sps:$4 sm:$0xff]   ;;  %v5288_v41 = vld [vmem:[#allocation6 + $0x264] ss:$8 sps:$4 sm:$0xff]  }
 0x79d   :  { %v5286_v42 = vld [vmem:[#allocation6 + $0x260] ss:$8 sps:$4 sm:$0xff]   ;;  %v5291_v43 = vld [vmem:[#allocation6 + $0x274] ss:$8 sps:$4 sm:$0xff]   ;;  %v5289_v44 = vld [vmem:[#allocation6 + $0x270] ss:$8 sps:$4 sm:$0xff]  }
 0x79e   :  { %v5294_v2 = vld [vmem:[#allocation6 + $0x284] ss:$8 sps:$4 sm:$0xff]   ;;  %v5292_v55 = vld [vmem:[#allocation6 + $0x280] ss:$8 sps:$4 sm:$0xff]   ;;  %v5297_v0 = vld [vmem:[#allocation6 + $0x294] ss:$8 sps:$4 sm:$0xff]  }
 0x79f   :  { %3380 = vmatpush1.bf16.msra.mxu0 %v5223_v50  ;;  %v5295_v46 = vld [vmem:[#allocation6 + $0x290] ss:$8 sps:$4 sm:$0xff]   ;;  %v5300_v47 = vld [vmem:[#allocation6 + $0x2a4] ss:$8 sps:$4 sm:$0xff]   ;;  %v5298_v48 = vld [vmem:[#allocation6 + $0x2a0] ss:$8 sps:$4 sm:$0xff]  }
 0x7a0   :  { %3381 = vmatprep.subr.bf16.mxu0 %v5228_v53  ;;  %v5303_v50 = vld [vmem:[#allocation6 + $0x2b4] ss:$8 sps:$4 sm:$0xff]   ;;  %v5301_v56 = vld [vmem:[#allocation6 + $0x2b0] ss:$8 sps:$4 sm:$0xff]   ;;  %v5306_v52 = vld [vmem:[#allocation6 + $0x2c4] ss:$8 sps:$4 sm:$0xff]  }
 0x7a1   :  { %v5304_v51 = vld [vmem:[#allocation6 + $0x2c0] ss:$8 sps:$4 sm:$0xff]   ;;  %v5309_v53 = vld [vmem:[#allocation6 + $0x2d4] ss:$8 sps:$4 sm:$0xff]  }
 0x7a3   :  { %3382 = vmatpush1.bf16.msra.mxu0 %v5226_v59  ;;  %v5307_v59 = vld [vmem:[#allocation6 + $0x2d0] ss:$8 sps:$4 sm:$0xff]  }
 0x7a4   :  { %3383 = vmatprep.subr.bf16.mxu0 %v5231_v60  ;;  %v5312_v60 = vld [vmem:[#allocation6 + $0x2e4] ss:$8 sps:$4 sm:$0xff]  }
 0x7a7   :  { %3384 = vmatpush1.bf16.msra.mxu0 %v5229_v61  ;;  %v5310_v61 = vld [vmem:[#allocation6 + $0x2e0] ss:$8 sps:$4 sm:$0xff]  }
 0x7a8   :  { %3385 = vmatprep.subr.bf16.mxu0 %v5234_v62  ;;  %v5315_v62 = vld [vmem:[#allocation6 + $0x2f4] ss:$8 sps:$4 sm:$0xff]  }
 0x7ab   :  { %3386 = vmatpush1.bf16.msra.mxu0 %v5232_v63  ;;  %v5313_v63 = vld [vmem:[#allocation6 + $0x2f0] ss:$8 sps:$4 sm:$0xff]  }
 0x7ac   :  { %3387 = vmatprep.subr.bf16.mxu0 %v5237_v4  ;;  %v5318_v4 = vld [vmem:[#allocation6 + $0x304] ss:$8 sps:$4 sm:$0xff]  }
 0x7af   :  { %3388 = vmatpush1.bf16.msra.mxu0 %v5235_v6  ;;  %v5316_v6 = vld [vmem:[#allocation6 + $0x300] ss:$8 sps:$4 sm:$0xff]  }
 0x7b0   :  { %3389 = vmatprep.subr.bf16.mxu0 %v5240_v7  ;;  %v2262_v7 = vpack.c.bf16 %v6008_v45, %v6008_v45  ;;  %v5328_v45 = vld [vmem:[#allocation6 + $0x340] ss:$8 sps:$4 sm:$0xff]  }
 0x7b3   :  { %3390 = vmatpush1.bf16.msra.mxu0 %v5238_v9  ;;  %v5321_v9 = vld [vmem:[#allocation6 + $0x314] ss:$8 sps:$4 sm:$0xff]  }
 0x7b4   :  { %3391 = vmatprep.subr.bf16.mxu0 %v5243_v10  ;;  %v2265_v10 = vpack.c.bf16 %v6013_v57, %v6013_v57  ;;  %v5331_v57 = vld [vmem:[#allocation6 + $0x350] ss:$8 sps:$4 sm:$0xff]  }
 0x7b7   :  { %3392 = vmatpush1.bf16.msra.mxu0 %v5241_v11  ;;  %v5319_v11 = vld [vmem:[#allocation6 + $0x310] ss:$8 sps:$4 sm:$0xff]  }
 0x7b8   :  { %3393 = vmatprep.subr.bf16.mxu0 %v5246_v12  ;;  %v5324_v12 = vld [vmem:[#allocation6 + $0x324] ss:$8 sps:$4 sm:$0xff]  }
 0x7bb   :  { %3394 = vmatpush1.bf16.msra.mxu0 %v5244_v15  ;;  %v5322_v15 = vld [vmem:[#allocation6 + $0x320] ss:$8 sps:$4 sm:$0xff]  }
 0x7bc   :  { %3395 = vmatprep.subr.bf16.mxu0 %v5249_v5  ;;  %v5327_v5 = vld [vmem:[#allocation6 + $0x334] ss:$8 sps:$4 sm:$0xff]  }
 0x7bf   :  { %3396 = vmatpush1.bf16.msra.mxu0 %v5247_v1  ;;  %v5325_v1 = vld [vmem:[#allocation6 + $0x330] ss:$8 sps:$4 sm:$0xff]  }
 0x7c0   :  { %3397 = vmatprep.subr.bf16.mxu0 %v5252_v3  ;;  %v5330_v3 = vld [vmem:[#allocation6 + $0x344] ss:$8 sps:$4 sm:$0xff]  }
 0x7c3   :  { %3398 = vmatpush1.bf16.msra.mxu0 %v5250_v38  ;;  %v5333_v38 = vld [vmem:[#allocation6 + $0x354] ss:$8 sps:$4 sm:$0xff]  }
 0x7c4   :  { %3399 = vmatprep.subr.bf16.mxu0 %v5255_v8  ;;  %v5336_v8 = vld [vmem:[#allocation6 + $0x364] ss:$8 sps:$4 sm:$0xff]  }
 0x7c7   :  { %3400 = vmatpush1.bf16.msra.mxu0 %v5253_v49  ;;  %v5334_v49 = vld [vmem:[#allocation6 + $0x360] ss:$8 sps:$4 sm:$0xff]  }
 0x7c8   :  { %3401 = vmatprep.subr.bf16.mxu0 %v5258_v16  ;;  %v5339_v16 = vld [vmem:[#allocation6 + $0x374] ss:$8 sps:$4 sm:$0xff]  }
 0x7cb   :  { %3402 = vmatpush1.bf16.msra.mxu0 %v5256_v17  ;;  %v5337_v17 = vld [vmem:[#allocation6 + $0x370] ss:$8 sps:$4 sm:$0xff]  }
 0x7cc   :  { %3403 = vmatprep.subr.bf16.mxu0 %v5261_v18  ;;  %v5342_v18 = vld [vmem:[#allocation6 + $0x384] ss:$8 sps:$4 sm:$0xff]  }
 0x7cf   :  { %3404 = vmatpush1.bf16.msra.mxu0 %v5259_v19  ;;  %v5340_v19 = vld [vmem:[#allocation6 + $0x380] ss:$8 sps:$4 sm:$0xff]  }
 0x7d0   :  { %3405 = vmatprep.subr.bf16.mxu0 %v5264_v20  ;;  %v5345_v20 = vld [vmem:[#allocation6 + $0x394] ss:$8 sps:$4 sm:$0xff]  }
 0x7d3   :  { %3406 = vmatpush1.bf16.msra.mxu0 %v5262_v23  ;;  %v5343_v23 = vld [vmem:[#allocation6 + $0x390] ss:$8 sps:$4 sm:$0xff]  }
 0x7d4   :  { %3407 = vmatprep.subr.bf16.mxu0 %v5267_v24  ;;  %v5348_v24 = vld [vmem:[#allocation6 + $0x3a4] ss:$8 sps:$4 sm:$0xff]  }
 0x7d7   :  { %3408 = vmatpush1.bf16.msra.mxu0 %v5265_v25  ;;  %v5346_v25 = vld [vmem:[#allocation6 + $0x3a0] ss:$8 sps:$4 sm:$0xff]  }
 0x7d8   :  { %3418 = vmatprep.subr.bf16.mxu0 %v5270_v26  ;;  %v5351_v26 = vld [vmem:[#allocation6 + $0x3b4] ss:$8 sps:$4 sm:$0xff]  }
 0x7da   :  { %3410 = vmatmul.mubr.bf16.vlgmr.msra.gmra.mrb[12].mxu0 %v2260_v28  ;;  %v5354_v28 = vld [vmem:[#allocation6 + $0x3c4] ss:$8 sps:$4 sm:$0xff]  }
 0x7db   :  { %3419 = vmatpush1.bf16.msra.mxu0 %v5268_v27  ;;  %3450 = vmatprep.mubr.bf16.mxu0 %v2263_v30  ;;  %v5349_v27 = vld [vmem:[#allocation6 + $0x3b0] ss:$8 sps:$4 sm:$0xff]   ;;  %v5357_v30 = vld [vmem:[#allocation6 + $0x3d4] ss:$8 sps:$4 sm:$0xff]  }
 0x7dc   :  { %3420 = vmatprep.subr.bf16.mxu0 %v5273_v29  ;;  %v5352_v29 = vld [vmem:[#allocation6 + $0x3c0] ss:$8 sps:$4 sm:$0xff]  }
 0x7df   :  { %3421 = vmatpush1.bf16.msra.mxu0 %v5271_v31  ;;  %v5355_v31 = vld [vmem:[#allocation6 + $0x3d0] ss:$8 sps:$4 sm:$0xff]  }
 0x7e0   :  { %3422 = vmatprep.subr.bf16.mxu0 %v5276_v32  ;;  %v5360_v32 = vld [vmem:[#allocation6 + $0x3e4] ss:$8 sps:$4 sm:$0xff]  }
 0x7e3   :  { %3423 = vmatpush1.bf16.msra.mxu0 %v5274_v54  ;;  %v2213_v54 = vrot.slane %v5623_v22, 1 }
 0x7e4   :  { %3424 = vmatprep.subr.bf16.mxu0 %v5279_v13  ;;  %v5358_v13 = vld [vmem:[#allocation6 + $0x3e0] ss:$8 sps:$4 sm:$0xff]  }
 0x7e7   :  { %3425 = vmatpush1.bf16.msra.mxu0 %v5277_v33  ;;  %v5363_v33 = vld [vmem:[#allocation6 + $0x3f4] ss:$8 sps:$4 sm:$0xff]  }
 0x7e8   :  { %3426 = vmatprep.subr.bf16.mxu0 %v5282_v39  ;;  %v2234_v39 = vrot.slane %v2213_v54, 6 }
 0x7eb   :  { %3427 = vmatpush1.bf16.msra.mxu0 %v5280_v21  ;;  %v5361_v21 = vld [vmem:[#allocation6 + $0x3f0] ss:$8 sps:$4 sm:$0xff]  }
 0x7ec   :  { %3428 = vmatprep.subr.bf16.mxu0 %v5285_v40  ;;  %v5366_v40 = vld [vmem:[#allocation6 + $0x404] ss:$8 sps:$4 sm:$0xff]  }
 0x7ef   :  { %3429 = vmatpush1.bf16.msra.mxu0 %v5283_v36  ;;  %v2256_v36 = vsel %vm131_vm5, %v2213_v54, %v2234_v39  ;;  %v5441_v39 = vld [vmem:[%s6160_s4 + $0x14] ss:$8 sps:$4 sm:$0xff]  }
 0x7f0   :  { %3430 = vmatprep.subr.bf16.mxu0 %v5288_v41  ;;  %v5364_v41 = vld [vmem:[#allocation6 + $0x400] ss:$8 sps:$4 sm:$0xff]  }
 0x7f3   :  { %3431 = vmatpush1.bf16.msra.mxu0 %v5286_v42  ;;  %v2267_v42 = vpack.c.bf16 %v2256_v36, %v2256_v36  ;;  %v5442_v36 = vld [vmem:[%s6160_s4 + $0x20] ss:$8 sps:$4 sm:$0xff]  }
 0x7f4   :  { %3432 = vmatprep.subr.bf16.mxu0 %v5291_v43  ;;  %v2264_v43 = vpack.c.bf16 %v6016_v58, %v6016_v58  ;;  %v5381_v58 = vld [vmem:[#allocation6 + $0x454] ss:$8 sps:$4 sm:$0xff]  }
 0x7f7   :  { %3433 = vmatpush1.bf16.msra.mxu0 %v5289_v44  ;;  %v5369_v44 = vld [vmem:[#allocation6 + $0x414] ss:$8 sps:$4 sm:$0xff]  }
 0x7f8   :  { %3434 = vmatprep.subr.bf16.mxu0 %v5294_v2  ;;  %v5367_v2 = vld [vmem:[#allocation6 + $0x410] ss:$8 sps:$4 sm:$0xff]  }
 0x7fb   :  { %3435 = vmatpush1.bf16.msra.mxu0 %v5292_v55  ;;  %v5372_v55 = vld [vmem:[#allocation6 + $0x424] ss:$8 sps:$4 sm:$0xff]  }
 0x7fc   :  { %3436 = vmatprep.subr.bf16.mxu0 %v5297_v0  ;;  %v5370_v0 = vld [vmem:[#allocation6 + $0x420] ss:$8 sps:$4 sm:$0xff]  }
 0x7ff   :  { %3437 = vmatpush1.bf16.msra.mxu0 %v5295_v46  ;;  %v5375_v46 = vld [vmem:[#allocation6 + $0x434] ss:$8 sps:$4 sm:$0xff]  }
 0x800   :  { %3438 = vmatprep.subr.bf16.mxu0 %v5300_v47  ;;  %v5373_v47 = vld [vmem:[#allocation6 + $0x430] ss:$8 sps:$4 sm:$0xff]  }
 0x803   :  { %3439 = vmatpush1.bf16.msra.mxu0 %v5298_v48  ;;  %v5378_v48 = vld [vmem:[#allocation6 + $0x444] ss:$8 sps:$4 sm:$0xff]  }
 0x804   :  { %3440 = vmatprep.subr.bf16.mxu0 %v5303_v50  ;;  %v5376_v50 = vld [vmem:[#allocation6 + $0x440] ss:$8 sps:$4 sm:$0xff]  }
 0x807   :  { %3441 = vmatpush1.bf16.msra.mxu0 %v5301_v56  ;;  %v5379_v56 = vld [vmem:[#allocation6 + $0x450] ss:$8 sps:$4 sm:$0xff]  }
 0x808   :  { %3442 = vmatprep.subr.bf16.mxu0 %v5306_v52  ;;  %v5384_v52 = vld [vmem:[#allocation6 + $0x464] ss:$8 sps:$4 sm:$0xff]  }
 0x80b   :  { %3443 = vmatpush1.bf16.msra.mxu0 %v5304_v51  ;;  %v5382_v51 = vld [vmem:[#allocation6 + $0x460] ss:$8 sps:$4 sm:$0xff]  }
 0x80c   :  { %3444 = vmatprep.subr.bf16.mxu0 %v5309_v53  ;;  %v5387_v53 = vld [vmem:[#allocation6 + $0x474] ss:$8 sps:$4 sm:$0xff]  }
 0x80f   :  { %3445 = vmatpush1.bf16.msra.mxu0 %v5307_v59  ;;  %v5385_v59 = vld [vmem:[#allocation6 + $0x470] ss:$8 sps:$4 sm:$0xff]  }
 0x810   :  { %3446 = vmatprep.subr.bf16.mxu0 %v5312_v60  ;;  %v5390_v60 = vld [vmem:[#allocation6 + $0x484] ss:$8 sps:$4 sm:$0xff]  }
 0x813   :  { %3447 = vmatpush1.bf16.msra.mxu0 %v5310_v61  ;;  %v5388_v61 = vld [vmem:[#allocation6 + $0x480] ss:$8 sps:$4 sm:$0xff]  }
 0x814   :  { %3448 = vmatprep.subr.bf16.mxu0 %v5315_v62  ;;  %v5393_v62 = vld [vmem:[#allocation6 + $0x494] ss:$8 sps:$4 sm:$0xff]  }
 0x817   :  { %3449 = vmatpush1.bf16.msra.mxu0 %v5313_v63  ;;  %v5391_v63 = vld [vmem:[#allocation6 + $0x490] ss:$8 sps:$4 sm:$0xff]  }
 0x818   :  { %3459 = vmatprep.subr.bf16.mxu0 %v5318_v4  ;;  %v5396_v4 = vld [vmem:[#allocation6 + $0x4a4] ss:$8 sps:$4 sm:$0xff]  }
 0x81a   :  { %3451 = vmatmul.mubr.bf16.vlgmr.msra.gmra.mrb[12].mxu0 %v2262_v7  ;;  %v5399_v7 = vld [vmem:[#allocation6 + $0x4b4] ss:$8 sps:$4 sm:$0xff]  }
 0x81b   :  { %3460 = vmatpush1.bf16.msra.mxu0 %v5316_v6  ;;  %3491 = vmatprep.mubr.bf16.mxu0 %v2265_v10  ;;  %v5394_v6 = vld [vmem:[#allocation6 + $0x4a0] ss:$8 sps:$4 sm:$0xff]   ;;  %v5402_v10 = vld [vmem:[#allocation6 + $0x4c4] ss:$8 sps:$4 sm:$0xff]  }
 0x81c   :  { %3461 = vmatprep.subr.bf16.mxu0 %v5321_v9  ;;  %v5397_v9 = vld [vmem:[#allocation6 + $0x4b0] ss:$8 sps:$4 sm:$0xff]  }
 0x81f   :  { %3462 = vmatpush1.bf16.msra.mxu0 %v5319_v11  ;;  %v5400_v11 = vld [vmem:[#allocation6 + $0x4c0] ss:$8 sps:$4 sm:$0xff]  }
 0x820   :  { %3463 = vmatprep.subr.bf16.mxu0 %v5324_v12  ;;  %v5405_v12 = vld [vmem:[#allocation6 + $0x4d4] ss:$8 sps:$4 sm:$0xff]  }
 0x823   :  { %3464 = vmatpush1.bf16.msra.mxu0 %v5322_v15  ;;  %v5403_v15 = vld [vmem:[#allocation6 + $0x4d0] ss:$8 sps:$4 sm:$0xff]  }
 0x824   :  { %3465 = vmatprep.subr.bf16.mxu0 %v5327_v5  ;;  %v5408_v5 = vld [vmem:[#allocation6 + $0x4e4] ss:$8 sps:$4 sm:$0xff]  }
 0x827   :  { %3466 = vmatpush1.bf16.msra.mxu0 %v5325_v1  ;;  %v5406_v1 = vld [vmem:[#allocation6 + $0x4e0] ss:$8 sps:$4 sm:$0xff]  }
 0x828   :  { %3467 = vmatprep.subr.bf16.mxu0 %v5330_v3  ;;  %v5411_v3 = vld [vmem:[#allocation6 + $0x4f4] ss:$8 sps:$4 sm:$0xff]  }
 0x82b   :  { %3468 = vmatpush1.bf16.msra.mxu0 %v5328_v45  ;;  %v2233_v45 = vrot.slane %v5623_v22, 6 }
 0x82c   :  { %3469 = vmatprep.subr.bf16.mxu0 %v5333_v38  ;;  %v5409_v38 = vld [vmem:[#allocation6 + $0x4f0] ss:$8 sps:$4 sm:$0xff]  }
 0x82f   :  { %3470 = vmatpush1.bf16.msra.mxu0 %v5331_v57  ;;  %v5414_v57 = vld [vmem:[#allocation6 + $0x504] ss:$8 sps:$4 sm:$0xff]  }
 0x830   :  { %3471 = vmatprep.subr.bf16.mxu0 %v5336_v8  ;;  %v4415_v8 = vpack.c.bf16 %v2233_v45, %v2233_v45 }
 0x833   :  { %3472 = vmatpush1.bf16.msra.mxu0 %v5334_v49  ;;  %v5412_v49 = vld [vmem:[#allocation6 + $0x500] ss:$8 sps:$4 sm:$0xff]  }
 0x834   :  { %3473 = vmatprep.subr.bf16.mxu0 %v5339_v16  ;;  %v5417_v16 = vld [vmem:[#allocation6 + $0x514] ss:$8 sps:$4 sm:$0xff]  }
 0x837   :  { %3474 = vmatpush1.bf16.msra.mxu0 %v5337_v17  ;;  %v5415_v17 = vld [vmem:[#allocation6 + $0x510] ss:$8 sps:$4 sm:$0xff]  }
 0x838   :  { %3475 = vmatprep.subr.bf16.mxu0 %v5342_v18  ;;  %v5420_v18 = vld [vmem:[#allocation6 + $0x524] ss:$8 sps:$4 sm:$0xff]  }
 0x83b   :  { %3476 = vmatpush1.bf16.msra.mxu0 %v5340_v19  ;;  %v5418_v19 = vld [vmem:[#allocation6 + $0x520] ss:$8 sps:$4 sm:$0xff]  }
 0x83c   :  { %3477 = vmatprep.subr.bf16.mxu0 %v5345_v20  ;;  %v5423_v20 = vld [vmem:[#allocation6 + $0x534] ss:$8 sps:$4 sm:$0xff]  }
 0x83f   :  { %3478 = vmatpush1.bf16.msra.mxu0 %v5343_v23  ;;  %v5421_v23 = vld [vmem:[#allocation6 + $0x530] ss:$8 sps:$4 sm:$0xff]  }
 0x840   :  { %3479 = vmatprep.subr.bf16.mxu0 %v5348_v24  ;;  %v5426_v24 = vld [vmem:[#allocation6 + $0x544] ss:$8 sps:$4 sm:$0xff]  }
 0x843   :  { %3480 = vmatpush1.bf16.msra.mxu0 %v5346_v25  ;;  %v5424_v25 = vld [vmem:[#allocation6 + $0x540] ss:$8 sps:$4 sm:$0xff]  }
 0x844   :  { %3481 = vmatprep.subr.bf16.mxu0 %v5351_v26  ;;  %v5429_v26 = vld [vmem:[#allocation6 + $0x554] ss:$8 sps:$4 sm:$0xff]  }
 0x847   :  { %3482 = vmatpush1.bf16.msra.mxu0 %v5349_v27  ;;  %v5427_v27 = vld [vmem:[#allocation6 + $0x550] ss:$8 sps:$4 sm:$0xff]  }
 0x848   :  { %3483 = vmatprep.subr.bf16.mxu0 %v5354_v28  ;;  %v2215_v28 = vrot.slane %v5623_v22, 2  ;;  %v5438_v22 = vld [vmem:[%s6160_s4 + $0x4] ss:$8 sps:$4 sm:$0xff]  }
 0x849   :  { %3711 = vmatprep.subr.bf16.mxu1 %v5438_v22  ;;  %v5465_v22 = vld [vmem:[%s6161_s5 + $0x10] sm:$0xff]  }
 0x84b   :  { %3484 = vmatpush1.bf16.msra.mxu0 %v5352_v29  ;;  %v5430_v29 = vld [vmem:[#allocation6 + $0x560] ss:$8 sps:$4 sm:$0xff]  }
 0x84c   :  { %3485 = vmatprep.subr.bf16.mxu0 %v5357_v30  ;;  %v2235_v30 = vrot.slane %v2215_v28, 6 }
 0x84e   :  { %v2257_v54 = vsel %vm131_vm5, %v2215_v28, %v2235_v30  ;;  %v3590_v28 = vld [vmem:[#allocation8 + $0x10] ss:$0 sm:$0xff] }
 0x84f   :  { %3486 = vmatpush1.bf16.msra.mxu0 %v5355_v31  ;;  %v5435_v31 = vld [vmem:[#allocation6 + $0x574] ss:$8 sps:$4 sm:$0xff]  }
 0x850   :  { %3487 = vmatprep.subr.bf16.mxu0 %v5360_v32  ;;  %v5433_v32 = vld [vmem:[#allocation6 + $0x570] ss:$8 sps:$4 sm:$0xff]  }
 0x853   :  { %3488 = vmatpush1.bf16.msra.mxu0 %v5358_v13  ;;  %v2268_v13 = vpack.c.bf16 %v2257_v54, %v2257_v54  ;;  %v5462_v54 = vld [vmem:[%s6161_s5 + $0x48] sm:$0xff]  }
 0x854   :  { %3489 = vmatprep.subr.bf16.mxu0 %v5363_v33  ;;  %v5436_v33 = vld [vmem:[%s6160_s4] ss:$8 sps:$4 sm:$0xff]  }
 0x855   :  { %3712 = vmatpush1.bf16.msra.mxu1 %v5436_v33  ;;  %v5464_v33 = vld [vmem:[%s6161_s5 + $0x50] sm:$0xff]  }
 0x856   :  { %3713 = vmatprep.subr.bf16.mxu1 %v5441_v39  ;;  %v5466_v39 = vld [vmem:[%s6161_s5 + $0x58] sm:$0xff]  }
 0x857   :  { %3490 = vmatpush1.bf16.msra.mxu0 %v5361_v21  ;;  %v5439_v21 = vld [vmem:[%s6160_s4 + $0x10] ss:$8 sps:$4 sm:$0xff]  }
 0x858   :  { %3500 = vmatprep.subr.bf16.mxu0 %v5366_v40  ;;  %v5444_v40 = vld [vmem:[%s6160_s4 + $0x24] ss:$8 sps:$4 sm:$0xff]  }
 0x859   :  { %3714 = vmatpush1.bf16.msra.mxu1 %v5439_v21  ;;  %v5467_v21 = vld [vmem:[%s6161_s5 + $0x18] sm:$0xff]  }
 0x85a   :  { %3492 = vmatmul.mubr.bf16.vlgmr.msra.gmra.mrb[12].mxu0 %v2264_v43  ;;  %3715 = vmatprep.subr.bf16.mxu1 %v5444_v40  ;;  %v5450_v43 = vld [vmem:[%s6160_s4 + $0x44] ss:$8 sps:$4 sm:$0xff]  }
 0x85b   :  { %3501 = vmatpush1.bf16.msra.mxu0 %v5364_v41  ;;  %3532 = vmatprep.mubr.bf16.mxu0 %v2267_v42  ;;  %v5447_v41 = vld [vmem:[%s6160_s4 + $0x34] ss:$8 sps:$4 sm:$0xff]   ;;  %v5445_v42 = vld [vmem:[%s6160_s4 + $0x30] ss:$8 sps:$4 sm:$0xff]   ;;  %v5468_v40 = vld [vmem:[%s6161_s5 + $0x60] sm:$0xff]  }
 0x85c   :  { %3502 = vmatprep.subr.bf16.mxu0 %v5369_v44  ;;  %v5448_v44 = vld [vmem:[%s6160_s4 + $0x40] ss:$8 sps:$4 sm:$0xff]  }
 0x85d   :  { %3716 = vmatpush1.bf16.msra.mxu1 %v5442_v36  ;;  %v5469_v36 = vld [vmem:[%s6161_s5 + $0x20] sm:$0xff]  }
 0x85e   :  { %3717 = vmatprep.subr.bf16.mxu1 %v5447_v41  ;;  %v5470_v41 = vld [vmem:[%s6161_s5 + $0x68] sm:$0xff]  }
 0x85f   :  { %3503 = vmatpush1.bf16.msra.mxu0 %v5367_v2  ;;  %v5453_v2 = vld [vmem:[%s6160_s4 + $0x54] ss:$8 sps:$4 sm:$0xff]  }
 0x860   :  { %3504 = vmatprep.subr.bf16.mxu0 %v5372_v55  ;;  %v5451_v55 = vld [vmem:[%s6160_s4 + $0x50] ss:$8 sps:$4 sm:$0xff]  }
 0x861   :  { %3718 = vmatpush1.bf16.msra.mxu1 %v5445_v42  ;;  %v5471_v42 = vld [vmem:[%s6161_s5 + $0x28] sm:$0xff]  }
 0x862   :  { %3719 = vmatprep.subr.bf16.mxu1 %v5450_v43  ;;  %v5472_v43 = vld [vmem:[%s6161_s5 + $0x70] sm:$0xff]  }
 0x863   :  { %3505 = vmatpush1.bf16.msra.mxu0 %v5370_v0  ;;  %v5456_v0 = vld [vmem:[%s6160_s4 + $0x64] ss:$8 sps:$4 sm:$0xff]  }
 0x864   :  { %3506 = vmatprep.subr.bf16.mxu0 %v5375_v46  ;;  %v5454_v46 = vld [vmem:[%s6160_s4 + $0x60] ss:$8 sps:$4 sm:$0xff]  }
 0x865   :  { %3720 = vmatpush1.bf16.msra.mxu1 %v5448_v44  ;;  %v5473_v44 = vld [vmem:[%s6161_s5 + $0x30] sm:$0xff]  }
 0x866   :  { %3721 = vmatprep.subr.bf16.mxu1 %v5453_v2  ;;  %v5474_v2 = vld [vmem:[%s6161_s5 + $0x78] sm:$0xff]  }
 0x867   :  { %3507 = vmatpush1.bf16.msra.mxu0 %v5373_v47  ;;  %v5459_v47 = vld [vmem:[%s6160_s4 + $0x74] ss:$8 sps:$4 sm:$0xff]  }
 0x868   :  { %3508 = vmatprep.subr.bf16.mxu0 %v5378_v48  ;;  %v5457_v48 = vld [vmem:[%s6160_s4 + $0x70] ss:$8 sps:$4 sm:$0xff]  }
 0x869   :  { %3722 = vmatpush1.bf16.msra.mxu1 %v5451_v55  ;;  %v5475_v55 = vld [vmem:[%s6161_s5 + $0x38] sm:$0xff]  }
 0x86a   :  { %3723 = vmatprep.subr.bf16.mxu1 %v5456_v0 }
 0x86b   :  { %3509 = vmatpush1.bf16.msra.mxu0 %v5376_v50  ;;  %v2194_v50 = vld [vmem:[#allocation8 + $0x2] ss:$8 sm:$0x3] }
 0x86c   :  { %3510 = vmatprep.subr.bf16.mxu0 %v5381_v58  ;;  %v2449_v58 = vrot.slane %v2194_v50, %v5899_v35 }
 0x86d   :  { %3724 = vmatpush1.bf16.msra.mxu1 %v5454_v46 }
 0x86e   :  { %3725 = vmatprep.subr.bf16.mxu1 %v5459_v47 }
 0x86f   :  { %3511 = vmatpush1.bf16.msra.mxu0 %v5379_v56  ;;  %v2453_v56 = vrot.slane %v2194_v50, %v5902_v37 }
 0x870   :  { %3512 = vmatprep.subr.bf16.mxu0 %v5384_v52 }
 0x871   :  { %3726 = vmatpush1.bf16.msra.mxu1 %v5457_v48 }
 0x873   :  { %3513 = vmatpush1.bf16.msra.mxu0 %v5382_v51 }
 0x874   :  { %3514 = vmatprep.subr.bf16.mxu0 %v5387_v53 }
 0x877   :  { %3515 = vmatpush1.bf16.msra.mxu0 %v5385_v59 }
 0x878   :  { %3516 = vmatprep.subr.bf16.mxu0 %v5390_v60 }
 0x87b   :  { %3517 = vmatpush1.bf16.msra.mxu0 %v5388_v61 }
 0x87c   :  { %3518 = vmatprep.subr.bf16.mxu0 %v5393_v62 }
 0x87f   :  { %3519 = vmatpush1.bf16.msra.mxu0 %v5391_v63 }
 0x880   :  { %3520 = vmatprep.subr.bf16.mxu0 %v5396_v4 }
 0x883   :  { %3521 = vmatpush1.bf16.msra.mxu0 %v5394_v6 }
 0x884   :  { %3522 = vmatprep.subr.bf16.mxu0 %v5399_v7 }
 0x887   :  { %3523 = vmatpush1.bf16.msra.mxu0 %v5397_v9 }
 0x888   :  { %3524 = vmatprep.subr.bf16.mxu0 %v5402_v10 }
 0x88b   :  { %3525 = vmatpush1.bf16.msra.mxu0 %v5400_v11 }
 0x88c   :  { %3526 = vmatprep.subr.bf16.mxu0 %v5405_v12 }
 0x88f   :  { %3527 = vmatpush1.bf16.msra.mxu0 %v5403_v15 }
 0x890   :  { %3528 = vmatprep.subr.bf16.mxu0 %v5408_v5 }
 0x893   :  { %3529 = vmatpush1.bf16.msra.mxu0 %v5406_v1 }
 0x894   :  { %3530 = vmatprep.subr.bf16.mxu0 %v5411_v3 }
 0x897   :  { %3531 = vmatpush1.bf16.msra.mxu0 %v5409_v38 }
 0x898   :  { %3541 = vmatprep.subr.bf16.mxu0 %v5414_v57 }
 0x89a   :  { %4416 = vmatmul.mubr.msk.bf16.vlgmr.msra.gmra.mrb[12].mxu0 %vm4414_vm1, %v4415_v8 }
 0x89b   :  { %3542 = vmatpush1.bf16.msra.mxu0 %v5412_v49  ;;  %3573 = vmatprep.mubr.bf16.mxu0 %v5618_v14  ;;  %v5432_v14 = vld [vmem:[#allocation6 + $0x564] ss:$8 sps:$4 sm:$0xff]  }
 0x89c   :  { %3543 = vmatprep.subr.bf16.mxu0 %v5417_v16 }
 0x89f   :  { %3544 = vmatpush1.bf16.msra.mxu0 %v5415_v17 }
 0x8a0   :  { %3545 = vmatprep.subr.bf16.mxu0 %v5420_v18 }
 0x8a3   :  { %3546 = vmatpush1.bf16.msra.mxu0 %v5418_v19 }
 0x8a4   :  { %3547 = vmatprep.subr.bf16.mxu0 %v5423_v20 }
 0x8a7   :  { %3548 = vmatpush1.bf16.msra.mxu0 %v5421_v23 }
 0x8a8   :  { %3549 = vmatprep.subr.bf16.mxu0 %v5426_v24 }
 0x8ab   :  { %3550 = vmatpush1.bf16.msra.mxu0 %v5424_v25  ;;  %v3589_v25 = vld [vmem:[#allocation8 + $0x7] ss:$0 sm:$0xff] }
 0x8ac   :  { %3551 = vmatprep.subr.bf16.mxu0 %v5429_v26 }
 0x8af   :  { %3552 = vmatpush1.bf16.msra.mxu0 %v5427_v27 }
 0x8b0   :  { %3553 = vmatprep.subr.bf16.mxu0 %v5432_v14 }
 0x8b3   :  { %3554 = vmatpush1.bf16.msra.mxu0 %v5430_v29 }
 0x8b4   :  { %3555 = vmatprep.subr.bf16.mxu0 %v5435_v31  ;;  %v5460_v31 = vld [vmem:[%s6161_s5 + $0x40] sm:$0xff]  }
 0x8b5   :  { %4517 = vmatprep.subr.bf16.mxu1 %v5460_v31 }
 0x8b7   :  { %3556 = vmatpush1.bf16.msra.mxu0 %v5433_v32  ;;  %v5461_v32 = vld [vmem:[%s6161_s5] sm:$0xff]  }
 0x8ba   :  { %3574 = vmatmul.mubr.bf16.vlgmr.msra.gmra.mrb[12].mxu0 %v2268_v13  ;;  %v5463_v13 = vld [vmem:[%s6161_s5 + $0x8] sm:$0xff]   ;;  %s5625_s5 = smov [#allocation11]  }
 0x8bb   :  { %s4022_s28 = sshll.u32 %s5625_s5, 4  ;;  %s4023_s28 = int_to_ptr.vmem [resolvable:$true] %s4022_s28 }
 0x8bc   :  { %s5574_s9 = scalar_lea.vmem %s4023_s28, 32  ;;  %p5579_p5 = scmp.lt.s32.totalorder %s4023_s28, %s4023_s28 }
 0x8bd   :  { %p5575_p4 = scmp.ne.s32.totalorder %s4023_s28, %s5574_s9  ;;  %p5580_p6 = scmp.lt.s32.totalorder %s5574_s9, %s5574_s9 }
 0x8bf   :  { %p5581_p7 = por %p5580_p6, %p5579_p5 }
 0x8c1   :  { %p5582_p8 = pnand %p5581_p7, %p5575_p4 }
 0x98d   :  { %v3575_v52 = vpop.f32.mrb[12].mxu0 }
 0x98e   :  { %v4777_v51 = vadd.f32 %v3575_v52, %v2449_v58  ;;  %v3577_v53 = vpop.f32.mrb[13].mxu0 }
 0x98f   :  { %v4778_v59 = vadd.f32 %v3577_v53, %v2453_v56  ;;  %v3579_v60 = vpop.f32.mrb[14].mxu0 }
 0x990   :  { %v3582_v61 = vmax.f32 %v4777_v51, 0.0  ;;  %v3580_v62 = vpop.f32.mrb[15].mxu0 }
 0x991   :  { %v3583_v63 = vmax.f32 %v4778_v59, 0.0 }
 0x993   :  { %v3584_v4 = vmax.f32 %v3582_v61, %v3583_v63 }
 0x995   :  { %3585 = vst [vmem:[#allocation2] sm:$0xf] %v3584_v4 }
 0x99c   :  { %v3586_v6 = vld [vmem:[#allocation2] ss:$2 sm:$0x3]  ;;  %v3587_v7 = vld [vmem:[#allocation2 + $0x1] ss:$2 sm:$0x3] }
 0x99d   :  { %v3588_v9 = vmax.f32 %v3586_v6, %v3587_v7 }
 0x99f   :  { %v3591_v10 = vsel %vm131_vm5, %v3588_v9, 0.0 }
 0x9a0   :  { %v3592_v11 = vrot.slane %v3591_v10, 4 }
 0x9a2   :  { %v3593_v12 = vadd.f32 %v3592_v11, %v3591_v10 }
 0x9a4   :  { %v3594_v15 = vrot.slane %v3593_v12, 2 }
 0x9a6   :  { %v3595_v5 = vadd.f32 %v3594_v15, %v3593_v12 }
 0x9a8   :  { %v3596_v1 = vrot.slane %v3595_v5, 1 }
 0x9aa   :  { %v3597_v3 = vadd.f32 %v3596_v1, %v3595_v5 }
 0x9ac   :  { %v3598_v45 = vmul.f32 0.5, %v3597_v3 }
 0x9ae   :  { %v3599_v38 = vsub.f32 %v3588_v9, %v3598_v45 }
 0x9b0   :  { %v3600_v57 = vmul.f32 %v3599_v38, %v3599_v38 }
 0x9b2   :  { %v3601_v8 = vsel %vm131_vm5, %v3600_v57, 0.0 }
 0x9b3   :  { %v3602_v49 = vrot.slane %v3601_v8, 4 }
 0x9b5   :  { %v3603_v16 = vadd.f32 %v3602_v49, %v3601_v8 }
 0x9b7   :  { %v3604_v17 = vrot.slane %v3603_v16, 2 }
 0x9b9   :  { %v3605_v18 = vadd.f32 %v3604_v17, %v3603_v16 }
 0x9bb   :  { %v3606_v19 = vrot.slane %v3605_v18, 1 }
 0x9bd   :  { %v3607_v20 = vadd.f32 %v3606_v19, %v3605_v18 }
 0x9bf   :  { %v3608_v23 = vmul.f32 0.5, %v3607_v20 }
 0x9c1   :  { %v3609_v24 = vadd.f32 1e-05, %v3608_v23 }
 0x9c3   :  { %5480 = vrsqrt.f32 %v3609_v24 }
 0x9cd   :  { %v5481_v26 = vpop.eup %5480 }
 0x9ce   :  { %v3611_v27 = vmul.f32 %v5481_v26, %v3589_v25 }
 0x9d0   :  { %v3612_v14 = vmul.f32 %v3611_v27, %v3599_v38 }
 0x9d2   :  { %v3613_v29 = vadd.f32 %v3612_v14, %v3590_v28  ;;  %v5624_v14 = vmov 1966171168  }
 0x9d4   :  { %v3614_v30 = vpack.c.bf16 %v3613_v29, %v3613_v29  ;;  %v3800_v29 = vunpack.c.l.s4 %v5624_v14 }
 0x9d6   :  { %3744 = vmatmul.mubr.bf16.vlgmr.msra.gmra.mrb[8].mxu1 %v3614_v30  ;;  %v3801_v30 = vunpack.c.0.s8 %v3800_v29 }
 0x9d7   :  { %4518 = vmatpush3.bf16.msra.mxu1 %v5461_v32 }
 0x9d8   :  { %4519 = vmatprep.subr.bf16.mxu1 %v5462_v54  ;;  %v3804_v32 = vsub.s32 %v3801_v30, %v5896_v34 }
 0x9db   :  { %4520 = vmatpush3.bf16.msra.mxu1 %v5463_v13 }
 0x9dc   :  { %4521 = vmatprep.subr.bf16.mxu1 %v5464_v33 }
 0x9df   :  { %4522 = vmatpush3.bf16.msra.mxu1 %v5465_v22  ;;  %v3753_v22 = vld [vmem:[#allocation8 + $0x11] ss:$8 sm:$0x3] }
 0x9e0   :  { %4523 = vmatprep.subr.bf16.mxu1 %v5466_v39 }
 0x9e3   :  { %4524 = vmatpush3.bf16.msra.mxu1 %v5467_v21  ;;  %v3755_v21 = vld [vmem:[#allocation8 + $0x12] ss:$8 sm:$0x3] }
 0x9e4   :  { %4525 = vmatprep.subr.bf16.mxu1 %v5468_v40 }
 0x9e7   :  { %4526 = vmatpush3.bf16.msra.mxu1 %v5469_v36 }
 0x9e8   :  { %4527 = vmatprep.subr.bf16.mxu1 %v5470_v41 }
 0x9eb   :  { %4528 = vmatpush3.bf16.msra.mxu1 %v5471_v42  ;;  %v3832_v42 = vrot.slane %v3755_v21, %v5899_v35 }
 0x9ec   :  { %4529 = vmatprep.subr.bf16.mxu1 %v5472_v43  ;;  %v3836_v43 = vrot.slane %v3755_v21, %v5902_v37 }
 0x9ef   :  { %4530 = vmatpush3.bf16.msra.mxu1 %v5473_v44 }
 0x9f0   :  { %4531 = vmatprep.subr.bf16.mxu1 %v5474_v2 }
 0x9f3   :  { %4532 = vmatpush3.bf16.msra.mxu1 %v5475_v55 }
 0xaa9   :  { %v3745_v0 = vpop.f32.mrb[8].mxu1 }
 0xaaa   :  { %v3756_v46 = vsel %vm131_vm5, %v3745_v0, 0.0  ;;  %v3747_v47 = vpop.f32.mrb[9].mxu1 }
 0xaab   :  { %v3757_v48 = vrot.slane %v3756_v46, 4  ;;  %v3763_v50 = vsel %vm131_vm5, %v3747_v47, 0.0  ;;  %v3749_v58 = vpop.f32.mrb[10].mxu1 }
 0xaac   :  { %v3764_v56 = vrot.slane %v3763_v50, 4  ;;  %v3750_v52 = vpop.f32.mrb[11].mxu1  ;;  %v3877_v58 = vld [vmem:[#allocation8 + $0x13] ss:$0 sm:$0xff] }
 0xaad   :  { %v3758_v51 = vadd.f32 %v3757_v48, %v3756_v46 }
 0xaae   :  { %v3765_v53 = vadd.f32 %v3764_v56, %v3763_v50 }
 0xaaf   :  { %v3759_v59 = vrot.slane %v3758_v51, 2 }
 0xab0   :  { %v3766_v60 = vrot.slane %v3765_v53, 2 }
 0xab1   :  { %v3760_v61 = vadd.f32 %v3759_v59, %v3758_v51 }
 0xab2   :  { %v3767_v62 = vadd.f32 %v3766_v60, %v3765_v53 }
 0xab3   :  { %v3761_v63 = vrot.slane %v3760_v61, 1 }
 0xab4   :  { %v3768_v4 = vrot.slane %v3767_v62, 1 }
 0xab5   :  { %v3762_v6 = vadd.f32 %v3761_v63, %v3760_v61 }
 0xab6   :  { %v3769_v7 = vadd.f32 %v3768_v4, %v3767_v62 }
 0xab7   :  { %v3770_v9 = vmul.f32 0.5, %v3762_v6 }
 0xab8   :  { %v3771_v10 = vmul.f32 0.5, %v3769_v7 }
 0xab9   :  { %v3772_v11 = vsub.f32 %v3745_v0, %v3770_v9 }
 0xaba   :  { %v3773_v12 = vsub.f32 %v3747_v47, %v3771_v10 }
 0xabb   :  { %v3774_v15 = vmul.f32 %v3772_v11, %v3772_v11 }
 0xabc   :  { %v3775_v5 = vmul.f32 %v3773_v12, %v3773_v12 }
 0xabd   :  { %v3776_v1 = vsel %vm131_vm5, %v3774_v15, 0.0 }
 0xabe   :  { %v3777_v3 = vrot.slane %v3776_v1, 4  ;;  %v3783_v45 = vsel %vm131_vm5, %v3775_v5, 0.0 }
 0xabf   :  { %v3784_v38 = vrot.slane %v3783_v45, 4 }
 0xac0   :  { %v3778_v57 = vadd.f32 %v3777_v3, %v3776_v1 }
 0xac1   :  { %v3785_v8 = vadd.f32 %v3784_v38, %v3783_v45 }
 0xac2   :  { %v3779_v49 = vrot.slane %v3778_v57, 2 }
 0xac3   :  { %v3786_v16 = vrot.slane %v3785_v8, 2 }
 0xac4   :  { %v3780_v17 = vadd.f32 %v3779_v49, %v3778_v57 }
 0xac5   :  { %v3787_v18 = vadd.f32 %v3786_v16, %v3785_v8 }
 0xac6   :  { %v3781_v19 = vrot.slane %v3780_v17, 1 }
 0xac7   :  { %v3788_v20 = vrot.slane %v3787_v18, 1 }
 0xac8   :  { %v3782_v23 = vadd.f32 %v3781_v19, %v3780_v17 }
 0xac9   :  { %v3789_v24 = vadd.f32 %v3788_v20, %v3787_v18 }
 0xaca   :  { %v3790_v25 = vmul.f32 0.5, %v3782_v23 }
 0xacb   :  { %v3791_v26 = vmul.f32 0.5, %v3789_v24 }
 0xacc   :  { %v3792_v27 = vadd.f32 1e-05, %v3790_v25 }
 0xacd   :  { %v3793_v28 = vadd.f32 1e-05, %v3791_v26 }
 0xace   :  { %5482 = vrsqrt.f32 %v3792_v27 }
 0xacf   :  { %5484 = vrsqrt.f32 %v3793_v28 }
 0xad8   :  { %v5483_v31 = vpop.eup %5482 }
 0xad9   :  { %v5485_v54 = vpop.eup %5484 }
 0xada   :  { %v3798_v13 = vcombine.low %v5483_v31, %v5485_v54 }
 0xadc   :  { %v3805_v33 = vrot.slane %v3798_v13, %v3804_v32 }
 0xade   :  { %v3812_v39 = vrot.slane %v3805_v33, %v3804_v32 }
 0xae0   :  { %v3814_v40 = vmul.f32 %v3812_v39, %v3753_v22 }
 0xae2   :  { %v3819_v36 = vrot.slane %v3814_v40, %v5899_v35  ;;  %v3823_v41 = vrot.slane %v3814_v40, %v5902_v37 }
 0xae4   :  { %v3827_v44 = vmul.f32 %v3823_v41, %v3773_v12  ;;  %v3826_v2 = vmul.f32 %v3819_v36, %v3772_v11 }
 0xae6   :  { %v3840_v55 = vadd.f32 %v3836_v43, %v3827_v44  ;;  %v3839_v0 = vadd.f32 %v3832_v42, %v3826_v2 }
 0xae8   :  { %v3842_v34 = vmax.f32 %v3840_v55, 0.0  ;;  %v3841_v46 = vmax.f32 %v3839_v0, 0.0 }
 0xaea   :  { %v3844_v47 = vpack.c.bf16 %v3842_v34, %v3842_v34  ;;  %v3843_v48 = vpack.c.bf16 %v3841_v46, %v3841_v46 }
 0xaec   :  { %4006 = vmatprep.mubr.bf16.mxu1 %v3844_v47 }
 0xaed   :  { %4007 = vmatmul.mubr.bf16.vlgmr.msra.gmra.mrb[12].mxu1 %v3843_v48 }
 0xbc0   :  { %v4533_v50 = vpop.f32.mrb[12].mxu1 }
 0xbc1   :  { %v4534_v56 = vpop.f32.mrb[13].mxu1 }
 0xbc2   :  { %v4535_v52 = vadd.f32 %v4534_v56, %v4533_v50  ;;  %v4536_v51 = vpop.f32.mrb[14].mxu1 }
 0xbc3   :  { %v4537_v35 = vpop.f32.mrb[15].mxu1 }
 0xbc4   :  { %v4009_v37 = vadd.f32 %v4535_v52, %v3877_v58 }
 0xbc6   :  { %4015 = vst.msk [vmem:[#allocation11] sm:$0x3] %vm4014_vm3, %v4009_v37 }
 0xbc7   :  { %5585 = shalt.err (!%p5582_p8)
}
 0xbc8   :  { %s5586_s6 = scalar_lea.hbm %s6164_s8, 32 }
 0xbc9   :  { %p5587_p9 = scmp.ne.s32.totalorder %s6164_s8, %s5586_s6  ;;  %p5590_p10 = scmp.lt.u32.totalorder %s5586_s6, %s6164_s8 }
 0xbcb   :  { %p5592_p11 = pnand %p5590_p10, %p5587_p9 }
 0xbcd   :  { %5595 = shalt.err (!%p5592_p11)
}
 0xbce   :  { %4025 = dma.vmem_to_hbm [thread:$0]  %s4023_s28, 32, %s6164_s8, [#allocation5]  }
 0xbcf   :  { %5602 = dma.done.wait [#allocation5], 32  }
 0xbd0   :  { %5603 = vsyncadd [#allocation5], 4294967264 }
 0xbd1   :  { %4029 = vsyncpa [#allocation4], 1 }
 0xbd2   :  { %4030 = vsyncpa [#allocation7], 1 }
 0xbd3   :  { %4031 = vsyncpa [#allocation10], 1 }
 0xbd4   :  { %4032 = vsyncpa [#allocation5], 1 }

</bundles_post_ra>
